<compile_context>
chip_gen: v7x
topology: tpu7x:2x2x1
jax: 0.10.0
libtpu: 0.0.40
codegen_flags: <defaults>
</compile_context>

<pallas_src>
import jax
import jax.numpy as jnp
from jax import lax
from jax.experimental import pallas as pl
from jax.experimental.pallas import tpu as pltpu

_LANE = 128          # lane width: batch axis padded to a multiple of this
_CHUNK = 8           # sublanes per f32 vreg: time steps per load/store


def _highpass_kernel(coef_ref, x_ref, o_ref, state_ref):
    # coef_ref (SMEM, (5,)): [b0, b1, b2, a1, a2], already divided by a0.
    # x_ref / o_ref: (TILE_T, LANE) VMEM time tile.
    # state_ref: (4, LANE) VMEM scratch carrying [x1, x2, y1, y2] across tiles.
    t_idx = pl.program_id(1)

    @pl.when(t_idx == 0)
    def _():
        state_ref[...] = jnp.zeros_like(state_ref)

    tile_t, lane = x_ref.shape
    n_chunks = tile_t // _CHUNK

    b0 = coef_ref[0]
    b1 = coef_ref[1]
    b2 = coef_ref[2]
    a1 = coef_ref[3]
    a2 = coef_ref[4]

    # Hoisted coefficient broadcasts (reused by every chunk iteration).
    b0v = jnp.full((_CHUNK, lane), b0, jnp.float32)
    b1v = jnp.full((_CHUNK, lane), b1, jnp.float32)
    b2v = jnp.full((_CHUNK, lane), b2, jnp.float32)
    a1v = jnp.full((1, lane), a1, jnp.float32)
    a2v = jnp.full((1, lane), a2, jnp.float32)

    x1_0 = state_ref[0:1, :]
    x2_0 = state_ref[1:2, :]
    y1_0 = state_ref[2:3, :]
    y2_0 = state_ref[3:4, :]

    def chunk_body(c, carry):
        x1, x2, y1, y2 = carry
        start = pl.multiple_of(c * _CHUNK, _CHUNK)

        xc = x_ref[pl.ds(start, _CHUNK), :]                       # (8, lane)

        # FIR half, vectorized over the whole chunk (sublane shifts).
        xs1 = jnp.concatenate([x1, xc[0:_CHUNK - 1, :]], axis=0)  # x[n-1]
        xs2 = jnp.concatenate([x2, x1, xc[0:_CHUNK - 2, :]], axis=0)  # x[n-2]
        w = b0v * xc + b1v * xs1 + b2v * xs2                      # (8, lane)

        # Serial IIR half: 2 mul + 2 sub per step on the critical path.
        rows = []
        for i in range(_CHUNK):
            yi = w[i:i + 1, :] - a1v * y1 - a2v * y2
            rows.append(yi)
            y2 = y1
            y1 = yi
        y_chunk = jnp.concatenate(rows, axis=0)                   # (8, lane)

        # torchaudio lfilter(clamp=True): clamp only the stored output; the
        # carried y1/y2 recursion state stays unclamped.
        o_ref[pl.ds(start, _CHUNK), :] = jnp.clip(y_chunk, -1.0, 1.0)

        return (xc[_CHUNK - 1:_CHUNK, :], xc[_CHUNK - 2:_CHUNK - 1, :], y1, y2)

    x1f, x2f, y1f, y2f = lax.fori_loop(
        0, n_chunks, chunk_body, (x1_0, x2_0, y1_0, y2_0), unroll=True)

    state_ref[0:1, :] = x1f
    state_ref[1:2, :] = x2f
    state_ref[2:3, :] = y1f
    state_ref[3:4, :] = y2f


def _run_biquad(x_tb, coefs, tile_t=128):
    """Run the biquad IIR kernel on a (T, B) float32 slab."""
    T, B = x_tb.shape
    assert tile_t % _CHUNK == 0
    b_pad = ((B + _LANE - 1) // _LANE) * _LANE
    t_pad = ((T + tile_t - 1) // tile_t) * tile_t
    x_pad = jnp.pad(x_tb, ((0, t_pad - T), (0, b_pad - B)))

    grid = (b_pad // _LANE, t_pad // tile_t)   # (batch blocks, time tiles)

    y_pad = pl.pallas_call(
        _highpass_kernel,
        out_shape=jax.ShapeDtypeStruct((t_pad, b_pad), jnp.float32),
        grid_spec=pltpu.PrefetchScalarGridSpec(
            num_scalar_prefetch=0,
            grid=grid,
            in_specs=[
                pl.BlockSpec(memory_space=pltpu.MemorySpace.SMEM),   # coefs
                pl.BlockSpec((tile_t, _LANE), lambda b, t: (t, b)),  # x tile
            ],
            out_specs=pl.BlockSpec((tile_t, _LANE), lambda b, t: (t, b)),
            scratch_shapes=[pltpu.VMEM((4, _LANE), jnp.float32)],
        ),
        compiler_params=pltpu.CompilerParams(
            dimension_semantics=("parallel", "arbitrary")),
    )(coefs, x_pad)

    return y_pad[:T, :B]


def _highpass_coeffs(cutoff_freq, sample_rate, Q=0.707):
    w0 = 2.0 * jnp.pi * cutoff_freq / sample_rate
    alpha = jnp.sin(w0) / (2.0 * Q)
    cosw0 = jnp.cos(w0)
    b0 = (1.0 + cosw0) / 2.0
    b1 = -(1.0 + cosw0)
    b2 = b0
    a0 = 1.0 + alpha
    a1 = -2.0 * cosw0
    a2 = 1.0 - alpha
    return jnp.stack([b0 / a0, b1 / a0, b2 / a0, a1 / a0, a2 / a0]).astype(jnp.float32)


def _check_cutoff_freq(cutoff_freq, sample_rate):
    if cutoff_freq > sample_rate / 2:
        raise ValueError(
            f"cutoff_freq must be less than or equal to sample_rate / 2, "
            f"got {cutoff_freq} > {sample_rate / 2}")
    if cutoff_freq < 0:
        raise ValueError(f"cutoff_freq must be greater than 0, got {cutoff_freq}")


def _sample_cutoff(key, cutoff_freq_min, cutoff_freq_max):
    log_fmin = jnp.log(jnp.asarray(cutoff_freq_min, jnp.float32))
    log_fmax = jnp.log(jnp.asarray(cutoff_freq_max, jnp.float32))
    u = jax.random.uniform(key, (), dtype=jnp.float32)
    return jnp.exp(u * (log_fmax - log_fmin) + log_fmin)


class HighPassFilterAugmentation:
    def __init__(self, sample_rate=16000, cutoff_freq_max=1000, cutoff_freq_min=50):
        self.sample_rate = sample_rate
        self.cutoff_freq_max = cutoff_freq_max
        self.cutoff_freq_min = cutoff_freq_min
        _check_cutoff_freq(self.cutoff_freq_max, self.sample_rate)
        _check_cutoff_freq(self.cutoff_freq_min, self.sample_rate)

    def __call__(self, x, key):
        if x.ndim != 3:
            raise ValueError(f"Expected 3D tensor, got {x.ndim}D tensor")
        if x.shape[1] != 1:
            raise ValueError(f"Expected mono audio, got {x.shape[1]} channels")

        cutoff = _sample_cutoff(key, self.cutoff_freq_min, self.cutoff_freq_max)
        coefs = _highpass_coeffs(cutoff, float(self.sample_rate))

        # (B, 1, T) -> (T, B), run IIR kernel, back to (B, 1, T)
        x_tb = jnp.transpose(x[:, 0, :], (1, 0)).astype(jnp.float32)
        y_tb = _run_biquad(x_tb, coefs)
        y = jnp.transpose(y_tb, (1, 0))[:, None, :].astype(x.dtype)
        return y


def _reference_biquad(x_tb, coefs):
    """Pure-JAX lax.scan reference (same recurrence) for correctness checks."""
    b0, b1, b2, a1, a2 = [coefs[i] for i in range(5)]

    def step(carry, xt):
        x1, x2, y1, y2 = carry
        w = b0 * xt + b1 * x1 + b2 * x2
        yt = w - a1 * y1 - a2 * y2
        return (xt, x1, yt, y1), jnp.clip(yt, -1.0, 1.0)

    B = x_tb.shape[1]
    z = jnp.zeros((B,), jnp.float32)
    _, y = lax.scan(step, (z, z, z, z), x_tb)
    return y


if __name__ == "__main__":
    key = jax.random.PRNGKey(0)
    k_data, k_cutoff = jax.random.split(key)

    B, C, T = 2, 1, 300   # non-multiple of the time tile: exercises padding + state carry
    x = jax.random.uniform(k_data, (B, C, T), dtype=jnp.float32, minval=-1.0, maxval=1.0)

    aug = HighPassFilterAugmentation(sample_rate=16000, cutoff_freq_max=1000,
                                     cutoff_freq_min=50)
    y = aug(x, k_cutoff)
    y = jax.block_until_ready(y)

    # Sanity check against a pure-JAX reference with the *same* sampled cutoff.
    cutoff = _sample_cutoff(k_cutoff, 50.0, 1000.0)
    coefs = _highpass_coeffs(cutoff, 16000.0)
    y_ref = _reference_biquad(jnp.transpose(x[:, 0, :], (1, 0)), coefs)
    y_ref = jnp.transpose(y_ref, (1, 0))[:, None, :]

    assert y.shape == (B, C, T)
    assert jnp.allclose(y, y_ref, atol=1e-3), (
        f"mismatch vs reference, max abs diff {jnp.max(jnp.abs(y - y_ref))}")

    print("KERNEL_OK")
</pallas_src>

<mosaic_0001>
module attributes {stable_mosaic.version = 11 : i64} {
  func.func @_highpass_kernel(%arg0: i32, %arg1: i32, %arg2: memref<5xf32, #tpu.memory_space<smem>>, %arg3: memref<128x128xf32, #tpu.memory_space<vmem>>, %arg4: memref<128x128xf32, #tpu.memory_space<vmem>>, %arg5: memref<4x128xf32, #tpu.memory_space<vmem>>) attributes {dimension_semantics = [#tpu.dimension_semantics<parallel>, #tpu.dimension_semantics<arbitrary>], iteration_bounds = array<i64: 1, 3>, scalar_prefetch = 0 : i64, scratch_operands = 1 : i64, tpu.core_type = #tpu.core_type<tc>, window_params = [{transform_indices = @transform_0, window_bounds = array<i64: 5>}, {transform_indices = @transform_1, window_bounds = array<i64: 128, 128>}, {transform_indices = @transform_2, window_bounds = array<i64: 128, 128>}]} {
    %c0_i32 = arith.constant 0 : i32
    %0 = arith.cmpi eq, %arg1, %c0_i32 : i32
    %1 = arith.extui %0 : i1 to i32
    %c0_i32_0 = arith.constant 0 : i32
    %2 = arith.cmpi ne, %1, %c0_i32_0 : i32
    scf.if %2 {
      %cst_97 = arith.constant 0.000000e+00 : f32
      %1013 = vector.broadcast %cst_97 : f32 to vector<4x128xf32>
      %c0_98 = arith.constant 0 : index
      %c0_99 = arith.constant 0 : index
      %1014 = vector.load %arg5[%c0_98, %c0_99] : memref<4x128xf32, #tpu.memory_space<vmem>>, vector<4x128xf32>
      tpu.vector_store %arg5[%c0_98, %c0_99], %1013 {strides = array<i32>} : memref<4x128xf32, #tpu.memory_space<vmem>>, vector<4x128xf32>,
    } else {
    }
    %c0 = arith.constant 0 : index
    %3 = memref.load %arg2[%c0] : memref<5xf32, #tpu.memory_space<smem>>
    %c1 = arith.constant 1 : index
    %4 = memref.load %arg2[%c1] : memref<5xf32, #tpu.memory_space<smem>>
    %c2 = arith.constant 2 : index
    %5 = memref.load %arg2[%c2] : memref<5xf32, #tpu.memory_space<smem>>
    %c3 = arith.constant 3 : index
    %6 = memref.load %arg2[%c3] : memref<5xf32, #tpu.memory_space<smem>>
    %c4 = arith.constant 4 : index
    %7 = memref.load %arg2[%c4] : memref<5xf32, #tpu.memory_space<smem>>
    %8 = vector.broadcast %3 : f32 to vector<8x128xf32>
    %9 = vector.broadcast %4 : f32 to vector<8x128xf32>
    %10 = vector.broadcast %5 : f32 to vector<8x128xf32>
    %11 = vector.broadcast %6 : f32 to vector<1x128xf32>
    %12 = vector.broadcast %7 : f32 to vector<1x128xf32>
    %c0_1 = arith.constant 0 : index
    %c0_2 = arith.constant 0 : index
    %13 = vector.load %arg5[%c0_1, %c0_2] : memref<4x128xf32, #tpu.memory_space<vmem>>, vector<1x128xf32>
    %c1_3 = arith.constant 1 : index
    %c0_4 = arith.constant 0 : index
    %14 = vector.load %arg5[%c1_3, %c0_4] : memref<4x128xf32, #tpu.memory_space<vmem>>, vector<1x128xf32>
    %c2_5 = arith.constant 2 : index
    %c0_6 = arith.constant 0 : index
    %15 = vector.load %arg5[%c2_5, %c0_6] : memref<4x128xf32, #tpu.memory_space<vmem>>, vector<1x128xf32>
    %c3_7 = arith.constant 3 : index
    %c0_8 = arith.constant 0 : index
    %16 = vector.load %arg5[%c3_7, %c0_8] : memref<4x128xf32, #tpu.memory_space<vmem>>, vector<1x128xf32>
    %c0_i32_9 = arith.constant 0 : i32
    %c8_i32 = arith.constant 8 : i32
    %17 = arith.muli %c0_i32_9, %c8_i32 : i32
    %18 = tpu.assume_multiple %17, 8 : i32
    %19 = arith.index_cast %18 : i32 to index
    %c0_10 = arith.constant 0 : index
    %20 = vector.load %arg3[%19, %c0_10] : memref<128x128xf32, #tpu.memory_space<vmem>>, vector<8x128xf32>
    %21 = vector.extract_strided_slice %20 {offsets = [0, 0], sizes = [7, 128], strides = [1, 1]} : vector<8x128xf32> to vector<7x128xf32>
    %22 = tpu.concatenate %13, %21 in 0 : vector<1x128xf32>, vector<7x128xf32> -> vector<8x128xf32>
    %23 = vector.extract_strided_slice %20 {offsets = [0, 0], sizes = [6, 128], strides = [1, 1]} : vector<8x128xf32> to vector<6x128xf32>
    %24 = tpu.concatenate %14, %13, %23 in 0 : vector<1x128xf32>, vector<1x128xf32>, vector<6x128xf32> -> vector<8x128xf32>
    %25 = arith.mulf %8, %20 : vector<8x128xf32>
    %26 = arith.mulf %9, %22 : vector<8x128xf32>
    %27 = arith.addf %25, %26 : vector<8x128xf32>
    %28 = arith.mulf %10, %24 : vector<8x128xf32>
    %29 = arith.addf %27, %28 : vector<8x128xf32>
    %30 = vector.extract_strided_slice %29 {offsets = [0, 0], sizes = [1, 128], strides = [1, 1]} : vector<8x128xf32> to vector<1x128xf32>
    %31 = arith.mulf %11, %15 : vector<1x128xf32>
    %32 = arith.subf %30, %31 : vector<1x128xf32>
    %33 = arith.mulf %12, %16 : vector<1x128xf32>
    %34 = arith.subf %32, %33 : vector<1x128xf32>
    %35 = vector.extract_strided_slice %29 {offsets = [1, 0], sizes = [1, 128], strides = [1, 1]} : vector<8x128xf32> to vector<1x128xf32>
    %36 = arith.mulf %11, %34 : vector<1x128xf32>
    %37 = arith.subf %35, %36 : vector<1x128xf32>
    %38 = arith.mulf %12, %15 : vector<1x128xf32>
    %39 = arith.subf %37, %38 : vector<1x128xf32>
    %40 = vector.extract_strided_slice %29 {offsets = [2, 0], sizes = [1, 128], strides = [1, 1]} : vector<8x128xf32> to vector<1x128xf32>
    %41 = arith.mulf %11, %39 : vector<1x128xf32>
    %42 = arith.subf %40, %41 : vector<1x128xf32>
    %43 = arith.mulf %12, %34 : vector<1x128xf32>
    %44 = arith.subf %42, %43 : vector<1x128xf32>
    %45 = vector.extract_strided_slice %29 {offsets = [3, 0], sizes = [1, 128], strides = [1, 1]} : vector<8x128xf32> to vector<1x128xf32>
    %46 = arith.mulf %11, %44 : vector<1x128xf32>
    %47 = arith.subf %45, %46 : vector<1x128xf32>
    %48 = arith.mulf %12, %39 : vector<1x128xf32>
    %49 = arith.subf %47, %48 : vector<1x128xf32>
    %50 = vector.extract_strided_slice %29 {offsets = [4, 0], sizes = [1, 128], strides = [1, 1]} : vector<8x128xf32> to vector<1x128xf32>
    %51 = arith.mulf %11, %49 : vector<1x128xf32>
    %52 = arith.subf %50, %51 : vector<1x128xf32>
    %53 = arith.mulf %12, %44 : vector<1x128xf32>
    %54 = arith.subf %52, %53 : vector<1x128xf32>
    %55 = vector.extract_strided_slice %29 {offsets = [5, 0], sizes = [1, 128], strides = [1, 1]} : vector<8x128xf32> to vector<1x128xf32>
    %56 = arith.mulf %11, %54 : vector<1x128xf32>
    %57 = arith.subf %55, %56 : vector<1x128xf32>
    %58 = arith.mulf %12, %49 : vector<1x128xf32>
    %59 = arith.subf %57, %58 : vector<1x128xf32>
    %60 = vector.extract_strided_slice %29 {offsets = [6, 0], sizes = [1, 128], strides = [1, 1]} : vector<8x128xf32> to vector<1x128xf32>
    %61 = arith.mulf %11, %59 : vector<1x128xf32>
    %62 = arith.subf %60, %61 : vector<1x128xf32>
    %63 = arith.mulf %12, %54 : vector<1x128xf32>
    %64 = arith.subf %62, %63 : vector<1x128xf32>
    %65 = vector.extract_strided_slice %29 {offsets = [7, 0], sizes = [1, 128], strides = [1, 1]} : vector<8x128xf32> to vector<1x128xf32>
    %66 = arith.mulf %11, %64 : vector<1x128xf32>
    %67 = arith.subf %65, %66 : vector<1x128xf32>
    %68 = arith.mulf %12, %59 : vector<1x128xf32>
    %69 = arith.subf %67, %68 : vector<1x128xf32>
    %70 = tpu.concatenate %34, %39, %44, %49, %54, %59, %64, %69 in 0 : vector<1x128xf32>, vector<1x128xf32>, vector<1x128xf32>, vector<1x128xf32>, vector<1x128xf32>, vector<1x128xf32>, vector<1x128xf32>, vector<1x128xf32> -> vector<8x128xf32>
    %cst = arith.constant -1.000000e+00 : f32
    %cst_11 = arith.constant 1.000000e+00 : f32
    %71 = vector.broadcast %cst : f32 to vector<8x128xf32>
    %72 = arith.maximumf %71, %70 : vector<8x128xf32>
    %73 = vector.broadcast %cst_11 : f32 to vector<8x128xf32>
    %74 = arith.minimumf %73, %72 : vector<8x128xf32>
    %75 = arith.index_cast %18 : i32 to index
    %c0_12 = arith.constant 0 : index
    %76 = vector.load %arg4[%75, %c0_12] : memref<128x128xf32, #tpu.memory_space<vmem>>, vector<8x128xf32>
    tpu.vector_store %arg4[%75, %c0_12], %74 {strides = array<i32>} : memref<128x128xf32, #tpu.memory_space<vmem>>, vector<8x128xf32>,
    %77 = vector.extract_strided_slice %20 {offsets = [7, 0], sizes = [1, 128], strides = [1, 1]} : vector<8x128xf32> to vector<1x128xf32>
    %78 = vector.extract_strided_slice %20 {offsets = [6, 0], sizes = [1, 128], strides = [1, 1]} : vector<8x128xf32> to vector<1x128xf32>
    %c1_i32 = arith.constant 1 : i32
    %c8_i32_13 = arith.constant 8 : i32
    %79 = arith.muli %c1_i32, %c8_i32_13 : i32
    %80 = tpu.assume_multiple %79, 8 : i32
    %81 = arith.index_cast %80 : i32 to index
    %c0_14 = arith.constant 0 : index
    %82 = vector.load %arg3[%81, %c0_14] : memref<128x128xf32, #tpu.memory_space<vmem>>, vector<8x128xf32>
    %83 = vector.extract_strided_slice %82 {offsets = [0, 0], sizes = [7, 128], strides = [1, 1]} : vector<8x128xf32> to vector<7x128xf32>
    %84 = tpu.concatenate %77, %83 in 0 : vector<1x128xf32>, vector<7x128xf32> -> vector<8x128xf32>
    %85 = vector.extract_strided_slice %82 {offsets = [0, 0], sizes = [6, 128], strides = [1, 1]} : vector<8x128xf32> to vector<6x128xf32>
    %86 = tpu.concatenate %78, %77, %85 in 0 : vector<1x128xf32>, vector<1x128xf32>, vector<6x128xf32> -> vector<8x128xf32>
    %87 = arith.mulf %8, %82 : vector<8x128xf32>
    %88 = arith.mulf %9, %84 : vector<8x128xf32>
    %89 = arith.addf %87, %88 : vector<8x128xf32>
    %90 = arith.mulf %10, %86 : vector<8x128xf32>
    %91 = arith.addf %89, %90 : vector<8x128xf32>
    %92 = vector.extract_strided_slice %91 {offsets = [0, 0], sizes = [1, 128], strides = [1, 1]} : vector<8x128xf32> to vector<1x128xf32>
    %93 = arith.mulf %11, %69 : vector<1x128xf32>
    %94 = arith.subf %92, %93 : vector<1x128xf32>
    %95 = arith.mulf %12, %64 : vector<1x128xf32>
    %96 = arith.subf %94, %95 : vector<1x128xf32>
    %97 = vector.extract_strided_slice %91 {offsets = [1, 0], sizes = [1, 128], strides = [1, 1]} : vector<8x128xf32> to vector<1x128xf32>
    %98 = arith.mulf %11, %96 : vector<1x128xf32>
    %99 = arith.subf %97, %98 : vector<1x128xf32>
    %100 = arith.mulf %12, %69 : vector<1x128xf32>
    %101 = arith.subf %99, %100 : vector<1x128xf32>
    %102 = vector.extract_strided_slice %91 {offsets = [2, 0], sizes = [1, 128], strides = [1, 1]} : vector<8x128xf32> to vector<1x128xf32>
    %103 = arith.mulf %11, %101 : vector<1x128xf32>
    %104 = arith.subf %102, %103 : vector<1x128xf32>
    %105 = arith.mulf %12, %96 : vector<1x128xf32>
    %106 = arith.subf %104, %105 : vector<1x128xf32>
    %107 = vector.extract_strided_slice %91 {offsets = [3, 0], sizes = [1, 128], strides = [1, 1]} : vector<8x128xf32> to vector<1x128xf32>
    %108 = arith.mulf %11, %106 : vector<1x128xf32>
    %109 = arith.subf %107, %108 : vector<1x128xf32>
    %110 = arith.mulf %12, %101 : vector<1x128xf32>
    %111 = arith.subf %109, %110 : vector<1x128xf32>
    %112 = vector.extract_strided_slice %91 {offsets = [4, 0], sizes = [1, 128], strides = [1, 1]} : vector<8x128xf32> to vector<1x128xf32>
    %113 = arith.mulf %11, %111 : vector<1x128xf32>
    %114 = arith.subf %112, %113 : vector<1x128xf32>
    %115 = arith.mulf %12, %106 : vector<1x128xf32>
    %116 = arith.subf %114, %115 : vector<1x128xf32>
    %117 = vector.extract_strided_slice %91 {offsets = [5, 0], sizes = [1, 128], strides = [1, 1]} : vector<8x128xf32> to vector<1x128xf32>
    %118 = arith.mulf %11, %116 : vector<1x128xf32>
    %119 = arith.subf %117, %118 : vector<1x128xf32>
    %120 = arith.mulf %12, %111 : vector<1x128xf32>
    %121 = arith.subf %119, %120 : vector<1x128xf32>
    %122 = vector.extract_strided_slice %91 {offsets = [6, 0], sizes = [1, 128], strides = [1, 1]} : vector<8x128xf32> to vector<1x128xf32>
    %123 = arith.mulf %11, %121 : vector<1x128xf32>
    %124 = arith.subf %122, %123 : vector<1x128xf32>
    %125 = arith.mulf %12, %116 : vector<1x128xf32>
    %126 = arith.subf %124, %125 : vector<1x128xf32>
    %127 = vector.extract_strided_slice %91 {offsets = [7, 0], sizes = [1, 128], strides = [1, 1]} : vector<8x128xf32> to vector<1x128xf32>
    %128 = arith.mulf %11, %126 : vector<1x128xf32>
    %129 = arith.subf %127, %128 : vector<1x128xf32>
    %130 = arith.mulf %12, %121 : vector<1x128xf32>
    %131 = arith.subf %129, %130 : vector<1x128xf32>
    %132 = tpu.concatenate %96, %101, %106, %111, %116, %121, %126, %131 in 0 : vector<1x128xf32>, vector<1x128xf32>, vector<1x128xf32>, vector<1x128xf32>, vector<1x128xf32>, vector<1x128xf32>, vector<1x128xf32>, vector<1x128xf32> -> vector<8x128xf32>
    %cst_15 = arith.constant -1.000000e+00 : f32
    %cst_16 = arith.constant 1.000000e+00 : f32
    %133 = vector.broadcast %cst_15 : f32 to vector<8x128xf32>
    %134 = arith.maximumf %133, %132 : vector<8x128xf32>
    %135 = vector.broadcast %cst_16 : f32 to vector<8x128xf32>
    %136 = arith.minimumf %135, %134 : vector<8x128xf32>
    %137 = arith.index_cast %80 : i32 to index
    %c0_17 = arith.constant 0 : index
    %138 = vector.load %arg4[%137, %c0_17] : memref<128x128xf32, #tpu.memory_space<vmem>>, vector<8x128xf32>
    tpu.vector_store %arg4[%137, %c0_17], %136 {strides = array<i32>} : memref<128x128xf32, #tpu.memory_space<vmem>>, vector<8x128xf32>,
    %139 = vector.extract_strided_slice %82 {offsets = [7, 0], sizes = [1, 128], strides = [1, 1]} : vector<8x128xf32> to vector<1x128xf32>
    %140 = vector.extract_strided_slice %82 {offsets = [6, 0], sizes = [1, 128], strides = [1, 1]} : vector<8x128xf32> to vector<1x128xf32>
    %c2_i32 = arith.constant 2 : i32
    %c8_i32_18 = arith.constant 8 : i32
    %141 = arith.muli %c2_i32, %c8_i32_18 : i32
    %142 = tpu.assume_multiple %141, 8 : i32
    %143 = arith.index_cast %142 : i32 to index
    %c0_19 = arith.constant 0 : index
    %144 = vector.load %arg3[%143, %c0_19] : memref<128x128xf32, #tpu.memory_space<vmem>>, vector<8x128xf32>
    %145 = vector.extract_strided_slice %144 {offsets = [0, 0], sizes = [7, 128], strides = [1, 1]} : vector<8x128xf32> to vector<7x128xf32>
    %146 = tpu.concatenate %139, %145 in 0 : vector<1x128xf32>, vector<7x128xf32> -> vector<8x128xf32>
    %147 = vector.extract_strided_slice %144 {offsets = [0, 0], sizes = [6, 128], strides = [1, 1]} : vector<8x128xf32> to vector<6x128xf32>
    %148 = tpu.concatenate %140, %139, %147 in 0 : vector<1x128xf32>, vector<1x128xf32>, vector<6x128xf32> -> vector<8x128xf32>
    %149 = arith.mulf %8, %144 : vector<8x128xf32>
    %150 = arith.mulf %9, %146 : vector<8x128xf32>
    %151 = arith.addf %149, %150 : vector<8x128xf32>
    %152 = arith.mulf %10, %148 : vector<8x128xf32>
    %153 = arith.addf %151, %152 : vector<8x128xf32>
    %154 = vector.extract_strided_slice %153 {offsets = [0, 0], sizes = [1, 128], strides = [1, 1]} : vector<8x128xf32> to vector<1x128xf32>
    %155 = arith.mulf %11, %131 : vector<1x128xf32>
    %156 = arith.subf %154, %155 : vector<1x128xf32>
    %157 = arith.mulf %12, %126 : vector<1x128xf32>
    %158 = arith.subf %156, %157 : vector<1x128xf32>
    %159 = vector.extract_strided_slice %153 {offsets = [1, 0], sizes = [1, 128], strides = [1, 1]} : vector<8x128xf32> to vector<1x128xf32>
    %160 = arith.mulf %11, %158 : vector<1x128xf32>
    %161 = arith.subf %159, %160 : vector<1x128xf32>
    %162 = arith.mulf %12, %131 : vector<1x128xf32>
    %163 = arith.subf %161, %162 : vector<1x128xf32>
    %164 = vector.extract_strided_slice %153 {offsets = [2, 0], sizes = [1, 128], strides = [1, 1]} : vector<8x128xf32> to vector<1x128xf32>
    %165 = arith.mulf %11, %163 : vector<1x128xf32>
    %166 = arith.subf %164, %165 : vector<1x128xf32>
    %167 = arith.mulf %12, %158 : vector<1x128xf32>
    %168 = arith.subf %166, %167 : vector<1x128xf32>
    %169 = vector.extract_strided_slice %153 {offsets = [3, 0], sizes = [1, 128], strides = [1, 1]} : vector<8x128xf32> to vector<1x128xf32>
    %170 = arith.mulf %11, %168 : vector<1x128xf32>
    %171 = arith.subf %169, %170 : vector<1x128xf32>
    %172 = arith.mulf %12, %163 : vector<1x128xf32>
    %173 = arith.subf %171, %172 : vector<1x128xf32>
    %174 = vector.extract_strided_slice %153 {offsets = [4, 0], sizes = [1, 128], strides = [1, 1]} : vector<8x128xf32> to vector<1x128xf32>
    %175 = arith.mulf %11, %173 : vector<1x128xf32>
    %176 = arith.subf %174, %175 : vector<1x128xf32>
    %177 = arith.mulf %12, %168 : vector<1x128xf32>
    %178 = arith.subf %176, %177 : vector<1x128xf32>
    %179 = vector.extract_strided_slice %153 {offsets = [5, 0], sizes = [1, 128], strides = [1, 1]} : vector<8x128xf32> to vector<1x128xf32>
    %180 = arith.mulf %11, %178 : vector<1x128xf32>
    %181 = arith.subf %179, %180 : vector<1x128xf32>
    %182 = arith.mulf %12, %173 : vector<1x128xf32>
    %183 = arith.subf %181, %182 : vector<1x128xf32>
    %184 = vector.extract_strided_slice %153 {offsets = [6, 0], sizes = [1, 128], strides = [1, 1]} : vector<8x128xf32> to vector<1x128xf32>
    %185 = arith.mulf %11, %183 : vector<1x128xf32>
    %186 = arith.subf %184, %185 : vector<1x128xf32>
    %187 = arith.mulf %12, %178 : vector<1x128xf32>
    %188 = arith.subf %186, %187 : vector<1x128xf32>
    %189 = vector.extract_strided_slice %153 {offsets = [7, 0], sizes = [1, 128], strides = [1, 1]} : vector<8x128xf32> to vector<1x128xf32>
    %190 = arith.mulf %11, %188 : vector<1x128xf32>
    %191 = arith.subf %189, %190 : vector<1x128xf32>
    %192 = arith.mulf %12, %183 : vector<1x128xf32>
    %193 = arith.subf %191, %192 : vector<1x128xf32>
    %194 = tpu.concatenate %158, %163, %168, %173, %178, %183, %188, %193 in 0 : vector<1x128xf32>, vector<1x128xf32>, vector<1x128xf32>, vector<1x128xf32>, vector<1x128xf32>, vector<1x128xf32>, vector<1x128xf32>, vector<1x128xf32> -> vector<8x128xf32>
    %cst_20 = arith.constant -1.000000e+00 : f32
    %cst_21 = arith.constant 1.000000e+00 : f32
    %195 = vector.broadcast %cst_20 : f32 to vector<8x128xf32>
    %196 = arith.maximumf %195, %194 : vector<8x128xf32>
    %197 = vector.broadcast %cst_21 : f32 to vector<8x128xf32>
    %198 = arith.minimumf %197, %196 : vector<8x128xf32>
    %199 = arith.index_cast %142 : i32 to index
    %c0_22 = arith.constant 0 : index
    %200 = vector.load %arg4[%199, %c0_22] : memref<128x128xf32, #tpu.memory_space<vmem>>, vector<8x128xf32>
    tpu.vector_store %arg4[%199, %c0_22], %198 {strides = array<i32>} : memref<128x128xf32, #tpu.memory_space<vmem>>, vector<8x128xf32>,
    %201 = vector.extract_strided_slice %144 {offsets = [7, 0], sizes = [1, 128], strides = [1, 1]} : vector<8x128xf32> to vector<1x128xf32>
    %202 = vector.extract_strided_slice %144 {offsets = [6, 0], sizes = [1, 128], strides = [1, 1]} : vector<8x128xf32> to vector<1x128xf32>
    %c3_i32 = arith.constant 3 : i32
    %c8_i32_23 = arith.constant 8 : i32
    %203 = arith.muli %c3_i32, %c8_i32_23 : i32
    %204 = tpu.assume_multiple %203, 8 : i32
    %205 = arith.index_cast %204 : i32 to index
    %c0_24 = arith.constant 0 : index
    %206 = vector.load %arg3[%205, %c0_24] : memref<128x128xf32, #tpu.memory_space<vmem>>, vector<8x128xf32>
    %207 = vector.extract_strided_slice %206 {offsets = [0, 0], sizes = [7, 128], strides = [1, 1]} : vector<8x128xf32> to vector<7x128xf32>
    %208 = tpu.concatenate %201, %207 in 0 : vector<1x128xf32>, vector<7x128xf32> -> vector<8x128xf32>
    %209 = vector.extract_strided_slice %206 {offsets = [0, 0], sizes = [6, 128], strides = [1, 1]} : vector<8x128xf32> to vector<6x128xf32>
    %210 = tpu.concatenate %202, %201, %209 in 0 : vector<1x128xf32>, vector<1x128xf32>, vector<6x128xf32> -> vector<8x128xf32>
    %211 = arith.mulf %8, %206 : vector<8x128xf32>
    %212 = arith.mulf %9, %208 : vector<8x128xf32>
    %213 = arith.addf %211, %212 : vector<8x128xf32>
    %214 = arith.mulf %10, %210 : vector<8x128xf32>
    %215 = arith.addf %213, %214 : vector<8x128xf32>
    %216 = vector.extract_strided_slice %215 {offsets = [0, 0], sizes = [1, 128], strides = [1, 1]} : vector<8x128xf32> to vector<1x128xf32>
    %217 = arith.mulf %11, %193 : vector<1x128xf32>
    %218 = arith.subf %216, %217 : vector<1x128xf32>
    %219 = arith.mulf %12, %188 : vector<1x128xf32>
    %220 = arith.subf %218, %219 : vector<1x128xf32>
    %221 = vector.extract_strided_slice %215 {offsets = [1, 0], sizes = [1, 128], strides = [1, 1]} : vector<8x128xf32> to vector<1x128xf32>
    %222 = arith.mulf %11, %220 : vector<1x128xf32>
    %223 = arith.subf %221, %222 : vector<1x128xf32>
    %224 = arith.mulf %12, %193 : vector<1x128xf32>
    %225 = arith.subf %223, %224 : vector<1x128xf32>
    %226 = vector.extract_strided_slice %215 {offsets = [2, 0], sizes = [1, 128], strides = [1, 1]} : vector<8x128xf32> to vector<1x128xf32>
    %227 = arith.mulf %11, %225 : vector<1x128xf32>
    %228 = arith.subf %226, %227 : vector<1x128xf32>
    %229 = arith.mulf %12, %220 : vector<1x128xf32>
    %230 = arith.subf %228, %229 : vector<1x128xf32>
    %231 = vector.extract_strided_slice %215 {offsets = [3, 0], sizes = [1, 128], strides = [1, 1]} : vector<8x128xf32> to vector<1x128xf32>
    %232 = arith.mulf %11, %230 : vector<1x128xf32>
    %233 = arith.subf %231, %232 : vector<1x128xf32>
    %234 = arith.mulf %12, %225 : vector<1x128xf32>
    %235 = arith.subf %233, %234 : vector<1x128xf32>
    %236 = vector.extract_strided_slice %215 {offsets = [4, 0], sizes = [1, 128], strides = [1, 1]} : vector<8x128xf32> to vector<1x128xf32>
    %237 = arith.mulf %11, %235 : vector<1x128xf32>
    %238 = arith.subf %236, %237 : vector<1x128xf32>
    %239 = arith.mulf %12, %230 : vector<1x128xf32>
    %240 = arith.subf %238, %239 : vector<1x128xf32>
    %241 = vector.extract_strided_slice %215 {offsets = [5, 0], sizes = [1, 128], strides = [1, 1]} : vector<8x128xf32> to vector<1x128xf32>
    %242 = arith.mulf %11, %240 : vector<1x128xf32>
    %243 = arith.subf %241, %242 : vector<1x128xf32>
    %244 = arith.mulf %12, %235 : vector<1x128xf32>
    %245 = arith.subf %243, %244 : vector<1x128xf32>
    %246 = vector.extract_strided_slice %215 {offsets = [6, 0], sizes = [1, 128], strides = [1, 1]} : vector<8x128xf32> to vector<1x128xf32>
    %247 = arith.mulf %11, %245 : vector<1x128xf32>
    %248 = arith.subf %246, %247 : vector<1x128xf32>
    %249 = arith.mulf %12, %240 : vector<1x128xf32>
    %250 = arith.subf %248, %249 : vector<1x128xf32>
    %251 = vector.extract_strided_slice %215 {offsets = [7, 0], sizes = [1, 128], strides = [1, 1]} : vector<8x128xf32> to vector<1x128xf32>
    %252 = arith.mulf %11, %250 : vector<1x128xf32>
    %253 = arith.subf %251, %252 : vector<1x128xf32>
    %254 = arith.mulf %12, %245 : vector<1x128xf32>
    %255 = arith.subf %253, %254 : vector<1x128xf32>
    %256 = tpu.concatenate %220, %225, %230, %235, %240, %245, %250, %255 in 0 : vector<1x128xf32>, vector<1x128xf32>, vector<1x128xf32>, vector<1x128xf32>, vector<1x128xf32>, vector<1x128xf32>, vector<1x128xf32>, vector<1x128xf32> -> vector<8x128xf32>
    %cst_25 = arith.constant -1.000000e+00 : f32
    %cst_26 = arith.constant 1.000000e+00 : f32
    %257 = vector.broadcast %cst_25 : f32 to vector<8x128xf32>
    %258 = arith.maximumf %257, %256 : vector<8x128xf32>
    %259 = vector.broadcast %cst_26 : f32 to vector<8x128xf32>
    %260 = arith.minimumf %259, %258 : vector<8x128xf32>
    %261 = arith.index_cast %204 : i32 to index
    %c0_27 = arith.constant 0 : index
    %262 = vector.load %arg4[%261, %c0_27] : memref<128x128xf32, #tpu.memory_space<vmem>>, vector<8x128xf32>
    tpu.vector_store %arg4[%261, %c0_27], %260 {strides = array<i32>} : memref<128x128xf32, #tpu.memory_space<vmem>>, vector<8x128xf32>,
    %263 = vector.extract_strided_slice %206 {offsets = [7, 0], sizes = [1, 128], strides = [1, 1]} : vector<8x128xf32> to vector<1x128xf32>
    %264 = vector.extract_strided_slice %206 {offsets = [6, 0], sizes = [1, 128], strides = [1, 1]} : vector<8x128xf32> to vector<1x128xf32>
    %c4_i32 = arith.constant 4 : i32
    %c8_i32_28 = arith.constant 8 : i32
    %265 = arith.muli %c4_i32, %c8_i32_28 : i32
    %266 = tpu.assume_multiple %265, 8 : i32
    %267 = arith.index_cast %266 : i32 to index
    %c0_29 = arith.constant 0 : index
    %268 = vector.load %arg3[%267, %c0_29] : memref<128x128xf32, #tpu.memory_space<vmem>>, vector<8x128xf32>
    %269 = vector.extract_strided_slice %268 {offsets = [0, 0], sizes = [7, 128], strides = [1, 1]} : vector<8x128xf32> to vector<7x128xf32>
    %270 = tpu.concatenate %263, %269 in 0 : vector<1x128xf32>, vector<7x128xf32> -> vector<8x128xf32>
    %271 = vector.extract_strided_slice %268 {offsets = [0, 0], sizes = [6, 128], strides = [1, 1]} : vector<8x128xf32> to vector<6x128xf32>
    %272 = tpu.concatenate %264, %263, %271 in 0 : vector<1x128xf32>, vector<1x128xf32>, vector<6x128xf32> -> vector<8x128xf32>
    %273 = arith.mulf %8, %268 : vector<8x128xf32>
    %274 = arith.mulf %9, %270 : vector<8x128xf32>
    %275 = arith.addf %273, %274 : vector<8x128xf32>
    %276 = arith.mulf %10, %272 : vector<8x128xf32>
    %277 = arith.addf %275, %276 : vector<8x128xf32>
    %278 = vector.extract_strided_slice %277 {offsets = [0, 0], sizes = [1, 128], strides = [1, 1]} : vector<8x128xf32> to vector<1x128xf32>
    %279 = arith.mulf %11, %255 : vector<1x128xf32>
    %280 = arith.subf %278, %279 : vector<1x128xf32>
    %281 = arith.mulf %12, %250 : vector<1x128xf32>
    %282 = arith.subf %280, %281 : vector<1x128xf32>
    %283 = vector.extract_strided_slice %277 {offsets = [1, 0], sizes = [1, 128], strides = [1, 1]} : vector<8x128xf32> to vector<1x128xf32>
    %284 = arith.mulf %11, %282 : vector<1x128xf32>
    %285 = arith.subf %283, %284 : vector<1x128xf32>
    %286 = arith.mulf %12, %255 : vector<1x128xf32>
    %287 = arith.subf %285, %286 : vector<1x128xf32>
    %288 = vector.extract_strided_slice %277 {offsets = [2, 0], sizes = [1, 128], strides = [1, 1]} : vector<8x128xf32> to vector<1x128xf32>
    %289 = arith.mulf %11, %287 : vector<1x128xf32>
    %290 = arith.subf %288, %289 : vector<1x128xf32>
    %291 = arith.mulf %12, %282 : vector<1x128xf32>
    %292 = arith.subf %290, %291 : vector<1x128xf32>
    %293 = vector.extract_strided_slice %277 {offsets = [3, 0], sizes = [1, 128], strides = [1, 1]} : vector<8x128xf32> to vector<1x128xf32>
    %294 = arith.mulf %11, %292 : vector<1x128xf32>
    %295 = arith.subf %293, %294 : vector<1x128xf32>
    %296 = arith.mulf %12, %287 : vector<1x128xf32>
    %297 = arith.subf %295, %296 : vector<1x128xf32>
    %298 = vector.extract_strided_slice %277 {offsets = [4, 0], sizes = [1, 128], strides = [1, 1]} : vector<8x128xf32> to vector<1x128xf32>
    %299 = arith.mulf %11, %297 : vector<1x128xf32>
    %300 = arith.subf %298, %299 : vector<1x128xf32>
    %301 = arith.mulf %12, %292 : vector<1x128xf32>
    %302 = arith.subf %300, %301 : vector<1x128xf32>
    %303 = vector.extract_strided_slice %277 {offsets = [5, 0], sizes = [1, 128], strides = [1, 1]} : vector<8x128xf32> to vector<1x128xf32>
    %304 = arith.mulf %11, %302 : vector<1x128xf32>
    %305 = arith.subf %303, %304 : vector<1x128xf32>
    %306 = arith.mulf %12, %297 : vector<1x128xf32>
    %307 = arith.subf %305, %306 : vector<1x128xf32>
    %308 = vector.extract_strided_slice %277 {offsets = [6, 0], sizes = [1, 128], strides = [1, 1]} : vector<8x128xf32> to vector<1x128xf32>
    %309 = arith.mulf %11, %307 : vector<1x128xf32>
    %310 = arith.subf %308, %309 : vector<1x128xf32>
    %311 = arith.mulf %12, %302 : vector<1x128xf32>
    %312 = arith.subf %310, %311 : vector<1x128xf32>
    %313 = vector.extract_strided_slice %277 {offsets = [7, 0], sizes = [1, 128], strides = [1, 1]} : vector<8x128xf32> to vector<1x128xf32>
    %314 = arith.mulf %11, %312 : vector<1x128xf32>
    %315 = arith.subf %313, %314 : vector<1x128xf32>
    %316 = arith.mulf %12, %307 : vector<1x128xf32>
    %317 = arith.subf %315, %316 : vector<1x128xf32>
    %318 = tpu.concatenate %282, %287, %292, %297, %302, %307, %312, %317 in 0 : vector<1x128xf32>, vector<1x128xf32>, vector<1x128xf32>, vector<1x128xf32>, vector<1x128xf32>, vector<1x128xf32>, vector<1x128xf32>, vector<1x128xf32> -> vector<8x128xf32>
    %cst_30 = arith.constant -1.000000e+00 : f32
    %cst_31 = arith.constant 1.000000e+00 : f32
    %319 = vector.broadcast %cst_30 : f32 to vector<8x128xf32>
    %320 = arith.maximumf %319, %318 : vector<8x128xf32>
    %321 = vector.broadcast %cst_31 : f32 to vector<8x128xf32>
    %322 = arith.minimumf %321, %320 : vector<8x128xf32>
    %323 = arith.index_cast %266 : i32 to index
    %c0_32 = arith.constant 0 : index
    %324 = vector.load %arg4[%323, %c0_32] : memref<128x128xf32, #tpu.memory_space<vmem>>, vector<8x128xf32>
    tpu.vector_store %arg4[%323, %c0_32], %322 {strides = array<i32>} : memref<128x128xf32, #tpu.memory_space<vmem>>, vector<8x128xf32>,
    %325 = vector.extract_strided_slice %268 {offsets = [7, 0], sizes = [1, 128], strides = [1, 1]} : vector<8x128xf32> to vector<1x128xf32>
    %326 = vector.extract_strided_slice %268 {offsets = [6, 0], sizes = [1, 128], strides = [1, 1]} : vector<8x128xf32> to vector<1x128xf32>
    %c5_i32 = arith.constant 5 : i32
    %c8_i32_33 = arith.constant 8 : i32
    %327 = arith.muli %c5_i32, %c8_i32_33 : i32
    %328 = tpu.assume_multiple %327, 8 : i32
    %329 = arith.index_cast %328 : i32 to index
    %c0_34 = arith.constant 0 : index
    %330 = vector.load %arg3[%329, %c0_34] : memref<128x128xf32, #tpu.memory_space<vmem>>, vector<8x128xf32>
    %331 = vector.extract_strided_slice %330 {offsets = [0, 0], sizes = [7, 128], strides = [1, 1]} : vector<8x128xf32> to vector<7x128xf32>
    %332 = tpu.concatenate %325, %331 in 0 : vector<1x128xf32>, vector<7x128xf32> -> vector<8x128xf32>
    %333 = vector.extract_strided_slice %330 {offsets = [0, 0], sizes = [6, 128], strides = [1, 1]} : vector<8x128xf32> to vector<6x128xf32>
    %334 = tpu.concatenate %326, %325, %333 in 0 : vector<1x128xf32>, vector<1x128xf32>, vector<6x128xf32> -> vector<8x128xf32>
    %335 = arith.mulf %8, %330 : vector<8x128xf32>
    %336 = arith.mulf %9, %332 : vector<8x128xf32>
    %337 = arith.addf %335, %336 : vector<8x128xf32>
    %338 = arith.mulf %10, %334 : vector<8x128xf32>
    %339 = arith.addf %337, %338 : vector<8x128xf32>
    %340 = vector.extract_strided_slice %339 {offsets = [0, 0], sizes = [1, 128], strides = [1, 1]} : vector<8x128xf32> to vector<1x128xf32>
    %341 = arith.mulf %11, %317 : vector<1x128xf32>
    %342 = arith.subf %340, %341 : vector<1x128xf32>
    %343 = arith.mulf %12, %312 : vector<1x128xf32>
    %344 = arith.subf %342, %343 : vector<1x128xf32>
    %345 = vector.extract_strided_slice %339 {offsets = [1, 0], sizes = [1, 128], strides = [1, 1]} : vector<8x128xf32> to vector<1x128xf32>
    %346 = arith.mulf %11, %344 : vector<1x128xf32>
    %347 = arith.subf %345, %346 : vector<1x128xf32>
    %348 = arith.mulf %12, %317 : vector<1x128xf32>
    %349 = arith.subf %347, %348 : vector<1x128xf32>
    %350 = vector.extract_strided_slice %339 {offsets = [2, 0], sizes = [1, 128], strides = [1, 1]} : vector<8x128xf32> to vector<1x128xf32>
    %351 = arith.mulf %11, %349 : vector<1x128xf32>
    %352 = arith.subf %350, %351 : vector<1x128xf32>
    %353 = arith.mulf %12, %344 : vector<1x128xf32>
    %354 = arith.subf %352, %353 : vector<1x128xf32>
    %355 = vector.extract_strided_slice %339 {offsets = [3, 0], sizes = [1, 128], strides = [1, 1]} : vector<8x128xf32> to vector<1x128xf32>
    %356 = arith.mulf %11, %354 : vector<1x128xf32>
    %357 = arith.subf %355, %356 : vector<1x128xf32>
    %358 = arith.mulf %12, %349 : vector<1x128xf32>
    %359 = arith.subf %357, %358 : vector<1x128xf32>
    %360 = vector.extract_strided_slice %339 {offsets = [4, 0], sizes = [1, 128], strides = [1, 1]} : vector<8x128xf32> to vector<1x128xf32>
    %361 = arith.mulf %11, %359 : vector<1x128xf32>
    %362 = arith.subf %360, %361 : vector<1x128xf32>
    %363 = arith.mulf %12, %354 : vector<1x128xf32>
    %364 = arith.subf %362, %363 : vector<1x128xf32>
    %365 = vector.extract_strided_slice %339 {offsets = [5, 0], sizes = [1, 128], strides = [1, 1]} : vector<8x128xf32> to vector<1x128xf32>
    %366 = arith.mulf %11, %364 : vector<1x128xf32>
    %367 = arith.subf %365, %366 : vector<1x128xf32>
    %368 = arith.mulf %12, %359 : vector<1x128xf32>
    %369 = arith.subf %367, %368 : vector<1x128xf32>
    %370 = vector.extract_strided_slice %339 {offsets = [6, 0], sizes = [1, 128], strides = [1, 1]} : vector<8x128xf32> to vector<1x128xf32>
    %371 = arith.mulf %11, %369 : vector<1x128xf32>
    %372 = arith.subf %370, %371 : vector<1x128xf32>
    %373 = arith.mulf %12, %364 : vector<1x128xf32>
    %374 = arith.subf %372, %373 : vector<1x128xf32>
    %375 = vector.extract_strided_slice %339 {offsets = [7, 0], sizes = [1, 128], strides = [1, 1]} : vector<8x128xf32> to vector<1x128xf32>
    %376 = arith.mulf %11, %374 : vector<1x128xf32>
    %377 = arith.subf %375, %376 : vector<1x128xf32>
    %378 = arith.mulf %12, %369 : vector<1x128xf32>
    %379 = arith.subf %377, %378 : vector<1x128xf32>
    %380 = tpu.concatenate %344, %349, %354, %359, %364, %369, %374, %379 in 0 : vector<1x128xf32>, vector<1x128xf32>, vector<1x128xf32>, vector<1x128xf32>, vector<1x128xf32>, vector<1x128xf32>, vector<1x128xf32>, vector<1x128xf32> -> vector<8x128xf32>
    %cst_35 = arith.constant -1.000000e+00 : f32
    %cst_36 = arith.constant 1.000000e+00 : f32
    %381 = vector.broadcast %cst_35 : f32 to vector<8x128xf32>
    %382 = arith.maximumf %381, %380 : vector<8x128xf32>
    %383 = vector.broadcast %cst_36 : f32 to vector<8x128xf32>
    %384 = arith.minimumf %383, %382 : vector<8x128xf32>
    %385 = arith.index_cast %328 : i32 to index
    %c0_37 = arith.constant 0 : index
    %386 = vector.load %arg4[%385, %c0_37] : memref<128x128xf32, #tpu.memory_space<vmem>>, vector<8x128xf32>
    tpu.vector_store %arg4[%385, %c0_37], %384 {strides = array<i32>} : memref<128x128xf32, #tpu.memory_space<vmem>>, vector<8x128xf32>,
    %387 = vector.extract_strided_slice %330 {offsets = [7, 0], sizes = [1, 128], strides = [1, 1]} : vector<8x128xf32> to vector<1x128xf32>
    %388 = vector.extract_strided_slice %330 {offsets = [6, 0], sizes = [1, 128], strides = [1, 1]} : vector<8x128xf32> to vector<1x128xf32>
    %c6_i32 = arith.constant 6 : i32
    %c8_i32_38 = arith.constant 8 : i32
    %389 = arith.muli %c6_i32, %c8_i32_38 : i32
    %390 = tpu.assume_multiple %389, 8 : i32
    %391 = arith.index_cast %390 : i32 to index
    %c0_39 = arith.constant 0 : index
    %392 = vector.load %arg3[%391, %c0_39] : memref<128x128xf32, #tpu.memory_space<vmem>>, vector<8x128xf32>
    %393 = vector.extract_strided_slice %392 {offsets = [0, 0], sizes = [7, 128], strides = [1, 1]} : vector<8x128xf32> to vector<7x128xf32>
    %394 = tpu.concatenate %387, %393 in 0 : vector<1x128xf32>, vector<7x128xf32> -> vector<8x128xf32>
    %395 = vector.extract_strided_slice %392 {offsets = [0, 0], sizes = [6, 128], strides = [1, 1]} : vector<8x128xf32> to vector<6x128xf32>
    %396 = tpu.concatenate %388, %387, %395 in 0 : vector<1x128xf32>, vector<1x128xf32>, vector<6x128xf32> -> vector<8x128xf32>
    %397 = arith.mulf %8, %392 : vector<8x128xf32>
    %398 = arith.mulf %9, %394 : vector<8x128xf32>
    %399 = arith.addf %397, %398 : vector<8x128xf32>
    %400 = arith.mulf %10, %396 : vector<8x128xf32>
    %401 = arith.addf %399, %400 : vector<8x128xf32>
    %402 = vector.extract_strided_slice %401 {offsets = [0, 0], sizes = [1, 128], strides = [1, 1]} : vector<8x128xf32> to vector<1x128xf32>
    %403 = arith.mulf %11, %379 : vector<1x128xf32>
    %404 = arith.subf %402, %403 : vector<1x128xf32>
    %405 = arith.mulf %12, %374 : vector<1x128xf32>
    %406 = arith.subf %404, %405 : vector<1x128xf32>
    %407 = vector.extract_strided_slice %401 {offsets = [1, 0], sizes = [1, 128], strides = [1, 1]} : vector<8x128xf32> to vector<1x128xf32>
    %408 = arith.mulf %11, %406 : vector<1x128xf32>
    %409 = arith.subf %407, %408 : vector<1x128xf32>
    %410 = arith.mulf %12, %379 : vector<1x128xf32>
    %411 = arith.subf %409, %410 : vector<1x128xf32>
    %412 = vector.extract_strided_slice %401 {offsets = [2, 0], sizes = [1, 128], strides = [1, 1]} : vector<8x128xf32> to vector<1x128xf32>
    %413 = arith.mulf %11, %411 : vector<1x128xf32>
    %414 = arith.subf %412, %413 : vector<1x128xf32>
    %415 = arith.mulf %12, %406 : vector<1x128xf32>
    %416 = arith.subf %414, %415 : vector<1x128xf32>
    %417 = vector.extract_strided_slice %401 {offsets = [3, 0], sizes = [1, 128], strides = [1, 1]} : vector<8x128xf32> to vector<1x128xf32>
    %418 = arith.mulf %11, %416 : vector<1x128xf32>
    %419 = arith.subf %417, %418 : vector<1x128xf32>
    %420 = arith.mulf %12, %411 : vector<1x128xf32>
    %421 = arith.subf %419, %420 : vector<1x128xf32>
    %422 = vector.extract_strided_slice %401 {offsets = [4, 0], sizes = [1, 128], strides = [1, 1]} : vector<8x128xf32> to vector<1x128xf32>
    %423 = arith.mulf %11, %421 : vector<1x128xf32>
    %424 = arith.subf %422, %423 : vector<1x128xf32>
    %425 = arith.mulf %12, %416 : vector<1x128xf32>
    %426 = arith.subf %424, %425 : vector<1x128xf32>
    %427 = vector.extract_strided_slice %401 {offsets = [5, 0], sizes = [1, 128], strides = [1, 1]} : vector<8x128xf32> to vector<1x128xf32>
    %428 = arith.mulf %11, %426 : vector<1x128xf32>
    %429 = arith.subf %427, %428 : vector<1x128xf32>
    %430 = arith.mulf %12, %421 : vector<1x128xf32>
    %431 = arith.subf %429, %430 : vector<1x128xf32>
    %432 = vector.extract_strided_slice %401 {offsets = [6, 0], sizes = [1, 128], strides = [1, 1]} : vector<8x128xf32> to vector<1x128xf32>
    %433 = arith.mulf %11, %431 : vector<1x128xf32>
    %434 = arith.subf %432, %433 : vector<1x128xf32>
    %435 = arith.mulf %12, %426 : vector<1x128xf32>
    %436 = arith.subf %434, %435 : vector<1x128xf32>
    %437 = vector.extract_strided_slice %401 {offsets = [7, 0], sizes = [1, 128], strides = [1, 1]} : vector<8x128xf32> to vector<1x128xf32>
    %438 = arith.mulf %11, %436 : vector<1x128xf32>
    %439 = arith.subf %437, %438 : vector<1x128xf32>
    %440 = arith.mulf %12, %431 : vector<1x128xf32>
    %441 = arith.subf %439, %440 : vector<1x128xf32>
    %442 = tpu.concatenate %406, %411, %416, %421, %426, %431, %436, %441 in 0 : vector<1x128xf32>, vector<1x128xf32>, vector<1x128xf32>, vector<1x128xf32>, vector<1x128xf32>, vector<1x128xf32>, vector<1x128xf32>, vector<1x128xf32> -> vector<8x128xf32>
    %cst_40 = arith.constant -1.000000e+00 : f32
    %cst_41 = arith.constant 1.000000e+00 : f32
    %443 = vector.broadcast %cst_40 : f32 to vector<8x128xf32>
    %444 = arith.maximumf %443, %442 : vector<8x128xf32>
    %445 = vector.broadcast %cst_41 : f32 to vector<8x128xf32>
    %446 = arith.minimumf %445, %444 : vector<8x128xf32>
    %447 = arith.index_cast %390 : i32 to index
    %c0_42 = arith.constant 0 : index
    %448 = vector.load %arg4[%447, %c0_42] : memref<128x128xf32, #tpu.memory_space<vmem>>, vector<8x128xf32>
    tpu.vector_store %arg4[%447, %c0_42], %446 {strides = array<i32>} : memref<128x128xf32, #tpu.memory_space<vmem>>, vector<8x128xf32>,
    %449 = vector.extract_strided_slice %392 {offsets = [7, 0], sizes = [1, 128], strides = [1, 1]} : vector<8x128xf32> to vector<1x128xf32>
    %450 = vector.extract_strided_slice %392 {offsets = [6, 0], sizes = [1, 128], strides = [1, 1]} : vector<8x128xf32> to vector<1x128xf32>
    %c7_i32 = arith.constant 7 : i32
    %c8_i32_43 = arith.constant 8 : i32
    %451 = arith.muli %c7_i32, %c8_i32_43 : i32
    %452 = tpu.assume_multiple %451, 8 : i32
    %453 = arith.index_cast %452 : i32 to index
    %c0_44 = arith.constant 0 : index
    %454 = vector.load %arg3[%453, %c0_44] : memref<128x128xf32, #tpu.memory_space<vmem>>, vector<8x128xf32>
    %455 = vector.extract_strided_slice %454 {offsets = [0, 0], sizes = [7, 128], strides = [1, 1]} : vector<8x128xf32> to vector<7x128xf32>
    %456 = tpu.concatenate %449, %455 in 0 : vector<1x128xf32>, vector<7x128xf32> -> vector<8x128xf32>
    %457 = vector.extract_strided_slice %454 {offsets = [0, 0], sizes = [6, 128], strides = [1, 1]} : vector<8x128xf32> to vector<6x128xf32>
    %458 = tpu.concatenate %450, %449, %457 in 0 : vector<1x128xf32>, vector<1x128xf32>, vector<6x128xf32> -> vector<8x128xf32>
    %459 = arith.mulf %8, %454 : vector<8x128xf32>
    %460 = arith.mulf %9, %456 : vector<8x128xf32>
    %461 = arith.addf %459, %460 : vector<8x128xf32>
    %462 = arith.mulf %10, %458 : vector<8x128xf32>
    %463 = arith.addf %461, %462 : vector<8x128xf32>
    %464 = vector.extract_strided_slice %463 {offsets = [0, 0], sizes = [1, 128], strides = [1, 1]} : vector<8x128xf32> to vector<1x128xf32>
    %465 = arith.mulf %11, %441 : vector<1x128xf32>
    %466 = arith.subf %464, %465 : vector<1x128xf32>
    %467 = arith.mulf %12, %436 : vector<1x128xf32>
    %468 = arith.subf %466, %467 : vector<1x128xf32>
    %469 = vector.extract_strided_slice %463 {offsets = [1, 0], sizes = [1, 128], strides = [1, 1]} : vector<8x128xf32> to vector<1x128xf32>
    %470 = arith.mulf %11, %468 : vector<1x128xf32>
    %471 = arith.subf %469, %470 : vector<1x128xf32>
    %472 = arith.mulf %12, %441 : vector<1x128xf32>
    %473 = arith.subf %471, %472 : vector<1x128xf32>
    %474 = vector.extract_strided_slice %463 {offsets = [2, 0], sizes = [1, 128], strides = [1, 1]} : vector<8x128xf32> to vector<1x128xf32>
    %475 = arith.mulf %11, %473 : vector<1x128xf32>
    %476 = arith.subf %474, %475 : vector<1x128xf32>
    %477 = arith.mulf %12, %468 : vector<1x128xf32>
    %478 = arith.subf %476, %477 : vector<1x128xf32>
    %479 = vector.extract_strided_slice %463 {offsets = [3, 0], sizes = [1, 128], strides = [1, 1]} : vector<8x128xf32> to vector<1x128xf32>
    %480 = arith.mulf %11, %478 : vector<1x128xf32>
    %481 = arith.subf %479, %480 : vector<1x128xf32>
    %482 = arith.mulf %12, %473 : vector<1x128xf32>
    %483 = arith.subf %481, %482 : vector<1x128xf32>
    %484 = vector.extract_strided_slice %463 {offsets = [4, 0], sizes = [1, 128], strides = [1, 1]} : vector<8x128xf32> to vector<1x128xf32>
    %485 = arith.mulf %11, %483 : vector<1x128xf32>
    %486 = arith.subf %484, %485 : vector<1x128xf32>
    %487 = arith.mulf %12, %478 : vector<1x128xf32>
    %488 = arith.subf %486, %487 : vector<1x128xf32>
    %489 = vector.extract_strided_slice %463 {offsets = [5, 0], sizes = [1, 128], strides = [1, 1]} : vector<8x128xf32> to vector<1x128xf32>
    %490 = arith.mulf %11, %488 : vector<1x128xf32>
    %491 = arith.subf %489, %490 : vector<1x128xf32>
    %492 = arith.mulf %12, %483 : vector<1x128xf32>
    %493 = arith.subf %491, %492 : vector<1x128xf32>
    %494 = vector.extract_strided_slice %463 {offsets = [6, 0], sizes = [1, 128], strides = [1, 1]} : vector<8x128xf32> to vector<1x128xf32>
    %495 = arith.mulf %11, %493 : vector<1x128xf32>
    %496 = arith.subf %494, %495 : vector<1x128xf32>
    %497 = arith.mulf %12, %488 : vector<1x128xf32>
    %498 = arith.subf %496, %497 : vector<1x128xf32>
    %499 = vector.extract_strided_slice %463 {offsets = [7, 0], sizes = [1, 128], strides = [1, 1]} : vector<8x128xf32> to vector<1x128xf32>
    %500 = arith.mulf %11, %498 : vector<1x128xf32>
    %501 = arith.subf %499, %500 : vector<1x128xf32>
    %502 = arith.mulf %12, %493 : vector<1x128xf32>
    %503 = arith.subf %501, %502 : vector<1x128xf32>
    %504 = tpu.concatenate %468, %473, %478, %483, %488, %493, %498, %503 in 0 : vector<1x128xf32>, vector<1x128xf32>, vector<1x128xf32>, vector<1x128xf32>, vector<1x128xf32>, vector<1x128xf32>, vector<1x128xf32>, vector<1x128xf32> -> vector<8x128xf32>
    %cst_45 = arith.constant -1.000000e+00 : f32
    %cst_46 = arith.constant 1.000000e+00 : f32
    %505 = vector.broadcast %cst_45 : f32 to vector<8x128xf32>
    %506 = arith.maximumf %505, %504 : vector<8x128xf32>
    %507 = vector.broadcast %cst_46 : f32 to vector<8x128xf32>
    %508 = arith.minimumf %507, %506 : vector<8x128xf32>
    %509 = arith.index_cast %452 : i32 to index
    %c0_47 = arith.constant 0 : index
    %510 = vector.load %arg4[%509, %c0_47] : memref<128x128xf32, #tpu.memory_space<vmem>>, vector<8x128xf32>
    tpu.vector_store %arg4[%509, %c0_47], %508 {strides = array<i32>} : memref<128x128xf32, #tpu.memory_space<vmem>>, vector<8x128xf32>,
    %511 = vector.extract_strided_slice %454 {offsets = [7, 0], sizes = [1, 128], strides = [1, 1]} : vector<8x128xf32> to vector<1x128xf32>
    %512 = vector.extract_strided_slice %454 {offsets = [6, 0], sizes = [1, 128], strides = [1, 1]} : vector<8x128xf32> to vector<1x128xf32>
    %c8_i32_48 = arith.constant 8 : i32
    %c8_i32_49 = arith.constant 8 : i32
    %513 = arith.muli %c8_i32_48, %c8_i32_49 : i32
    %514 = tpu.assume_multiple %513, 8 : i32
    %515 = arith.index_cast %514 : i32 to index
    %c0_50 = arith.constant 0 : index
    %516 = vector.load %arg3[%515, %c0_50] : memref<128x128xf32, #tpu.memory_space<vmem>>, vector<8x128xf32>
    %517 = vector.extract_strided_slice %516 {offsets = [0, 0], sizes = [7, 128], strides = [1, 1]} : vector<8x128xf32> to vector<7x128xf32>
    %518 = tpu.concatenate %511, %517 in 0 : vector<1x128xf32>, vector<7x128xf32> -> vector<8x128xf32>
    %519 = vector.extract_strided_slice %516 {offsets = [0, 0], sizes = [6, 128], strides = [1, 1]} : vector<8x128xf32> to vector<6x128xf32>
    %520 = tpu.concatenate %512, %511, %519 in 0 : vector<1x128xf32>, vector<1x128xf32>, vector<6x128xf32> -> vector<8x128xf32>
    %521 = arith.mulf %8, %516 : vector<8x128xf32>
    %522 = arith.mulf %9, %518 : vector<8x128xf32>
    %523 = arith.addf %521, %522 : vector<8x128xf32>
    %524 = arith.mulf %10, %520 : vector<8x128xf32>
    %525 = arith.addf %523, %524 : vector<8x128xf32>
    %526 = vector.extract_strided_slice %525 {offsets = [0, 0], sizes = [1, 128], strides = [1, 1]} : vector<8x128xf32> to vector<1x128xf32>
    %527 = arith.mulf %11, %503 : vector<1x128xf32>
    %528 = arith.subf %526, %527 : vector<1x128xf32>
    %529 = arith.mulf %12, %498 : vector<1x128xf32>
    %530 = arith.subf %528, %529 : vector<1x128xf32>
    %531 = vector.extract_strided_slice %525 {offsets = [1, 0], sizes = [1, 128], strides = [1, 1]} : vector<8x128xf32> to vector<1x128xf32>
    %532 = arith.mulf %11, %530 : vector<1x128xf32>
    %533 = arith.subf %531, %532 : vector<1x128xf32>
    %534 = arith.mulf %12, %503 : vector<1x128xf32>
    %535 = arith.subf %533, %534 : vector<1x128xf32>
    %536 = vector.extract_strided_slice %525 {offsets = [2, 0], sizes = [1, 128], strides = [1, 1]} : vector<8x128xf32> to vector<1x128xf32>
    %537 = arith.mulf %11, %535 : vector<1x128xf32>
    %538 = arith.subf %536, %537 : vector<1x128xf32>
    %539 = arith.mulf %12, %530 : vector<1x128xf32>
    %540 = arith.subf %538, %539 : vector<1x128xf32>
    %541 = vector.extract_strided_slice %525 {offsets = [3, 0], sizes = [1, 128], strides = [1, 1]} : vector<8x128xf32> to vector<1x128xf32>
    %542 = arith.mulf %11, %540 : vector<1x128xf32>
    %543 = arith.subf %541, %542 : vector<1x128xf32>
    %544 = arith.mulf %12, %535 : vector<1x128xf32>
    %545 = arith.subf %543, %544 : vector<1x128xf32>
    %546 = vector.extract_strided_slice %525 {offsets = [4, 0], sizes = [1, 128], strides = [1, 1]} : vector<8x128xf32> to vector<1x128xf32>
    %547 = arith.mulf %11, %545 : vector<1x128xf32>
    %548 = arith.subf %546, %547 : vector<1x128xf32>
    %549 = arith.mulf %12, %540 : vector<1x128xf32>
    %550 = arith.subf %548, %549 : vector<1x128xf32>
    %551 = vector.extract_strided_slice %525 {offsets = [5, 0], sizes = [1, 128], strides = [1, 1]} : vector<8x128xf32> to vector<1x128xf32>
    %552 = arith.mulf %11, %550 : vector<1x128xf32>
    %553 = arith.subf %551, %552 : vector<1x128xf32>
    %554 = arith.mulf %12, %545 : vector<1x128xf32>
    %555 = arith.subf %553, %554 : vector<1x128xf32>
    %556 = vector.extract_strided_slice %525 {offsets = [6, 0], sizes = [1, 128], strides = [1, 1]} : vector<8x128xf32> to vector<1x128xf32>
    %557 = arith.mulf %11, %555 : vector<1x128xf32>
    %558 = arith.subf %556, %557 : vector<1x128xf32>
    %559 = arith.mulf %12, %550 : vector<1x128xf32>
    %560 = arith.subf %558, %559 : vector<1x128xf32>
    %561 = vector.extract_strided_slice %525 {offsets = [7, 0], sizes = [1, 128], strides = [1, 1]} : vector<8x128xf32> to vector<1x128xf32>
    %562 = arith.mulf %11, %560 : vector<1x128xf32>
    %563 = arith.subf %561, %562 : vector<1x128xf32>
    %564 = arith.mulf %12, %555 : vector<1x128xf32>
    %565 = arith.subf %563, %564 : vector<1x128xf32>
    %566 = tpu.concatenate %530, %535, %540, %545, %550, %555, %560, %565 in 0 : vector<1x128xf32>, vector<1x128xf32>, vector<1x128xf32>, vector<1x128xf32>, vector<1x128xf32>, vector<1x128xf32>, vector<1x128xf32>, vector<1x128xf32> -> vector<8x128xf32>
    %cst_51 = arith.constant -1.000000e+00 : f32
    %cst_52 = arith.constant 1.000000e+00 : f32
    %567 = vector.broadcast %cst_51 : f32 to vector<8x128xf32>
    %568 = arith.maximumf %567, %566 : vector<8x128xf32>
    %569 = vector.broadcast %cst_52 : f32 to vector<8x128xf32>
    %570 = arith.minimumf %569, %568 : vector<8x128xf32>
    %571 = arith.index_cast %514 : i32 to index
    %c0_53 = arith.constant 0 : index
    %572 = vector.load %arg4[%571, %c0_53] : memref<128x128xf32, #tpu.memory_space<vmem>>, vector<8x128xf32>
    tpu.vector_store %arg4[%571, %c0_53], %570 {strides = array<i32>} : memref<128x128xf32, #tpu.memory_space<vmem>>, vector<8x128xf32>,
    %573 = vector.extract_strided_slice %516 {offsets = [7, 0], sizes = [1, 128], strides = [1, 1]} : vector<8x128xf32> to vector<1x128xf32>
    %574 = vector.extract_strided_slice %516 {offsets = [6, 0], sizes = [1, 128], strides = [1, 1]} : vector<8x128xf32> to vector<1x128xf32>
    %c9_i32 = arith.constant 9 : i32
    %c8_i32_54 = arith.constant 8 : i32
    %575 = arith.muli %c9_i32, %c8_i32_54 : i32
    %576 = tpu.assume_multiple %575, 8 : i32
    %577 = arith.index_cast %576 : i32 to index
    %c0_55 = arith.constant 0 : index
    %578 = vector.load %arg3[%577, %c0_55] : memref<128x128xf32, #tpu.memory_space<vmem>>, vector<8x128xf32>
    %579 = vector.extract_strided_slice %578 {offsets = [0, 0], sizes = [7, 128], strides = [1, 1]} : vector<8x128xf32> to vector<7x128xf32>
    %580 = tpu.concatenate %573, %579 in 0 : vector<1x128xf32>, vector<7x128xf32> -> vector<8x128xf32>
    %581 = vector.extract_strided_slice %578 {offsets = [0, 0], sizes = [6, 128], strides = [1, 1]} : vector<8x128xf32> to vector<6x128xf32>
    %582 = tpu.concatenate %574, %573, %581 in 0 : vector<1x128xf32>, vector<1x128xf32>, vector<6x128xf32> -> vector<8x128xf32>
    %583 = arith.mulf %8, %578 : vector<8x128xf32>
    %584 = arith.mulf %9, %580 : vector<8x128xf32>
    %585 = arith.addf %583, %584 : vector<8x128xf32>
    %586 = arith.mulf %10, %582 : vector<8x128xf32>
    %587 = arith.addf %585, %586 : vector<8x128xf32>
    %588 = vector.extract_strided_slice %587 {offsets = [0, 0], sizes = [1, 128], strides = [1, 1]} : vector<8x128xf32> to vector<1x128xf32>
    %589 = arith.mulf %11, %565 : vector<1x128xf32>
    %590 = arith.subf %588, %589 : vector<1x128xf32>
    %591 = arith.mulf %12, %560 : vector<1x128xf32>
    %592 = arith.subf %590, %591 : vector<1x128xf32>
    %593 = vector.extract_strided_slice %587 {offsets = [1, 0], sizes = [1, 128], strides = [1, 1]} : vector<8x128xf32> to vector<1x128xf32>
    %594 = arith.mulf %11, %592 : vector<1x128xf32>
    %595 = arith.subf %593, %594 : vector<1x128xf32>
    %596 = arith.mulf %12, %565 : vector<1x128xf32>
    %597 = arith.subf %595, %596 : vector<1x128xf32>
    %598 = vector.extract_strided_slice %587 {offsets = [2, 0], sizes = [1, 128], strides = [1, 1]} : vector<8x128xf32> to vector<1x128xf32>
    %599 = arith.mulf %11, %597 : vector<1x128xf32>
    %600 = arith.subf %598, %599 : vector<1x128xf32>
    %601 = arith.mulf %12, %592 : vector<1x128xf32>
    %602 = arith.subf %600, %601 : vector<1x128xf32>
    %603 = vector.extract_strided_slice %587 {offsets = [3, 0], sizes = [1, 128], strides = [1, 1]} : vector<8x128xf32> to vector<1x128xf32>
    %604 = arith.mulf %11, %602 : vector<1x128xf32>
    %605 = arith.subf %603, %604 : vector<1x128xf32>
    %606 = arith.mulf %12, %597 : vector<1x128xf32>
    %607 = arith.subf %605, %606 : vector<1x128xf32>
    %608 = vector.extract_strided_slice %587 {offsets = [4, 0], sizes = [1, 128], strides = [1, 1]} : vector<8x128xf32> to vector<1x128xf32>
    %609 = arith.mulf %11, %607 : vector<1x128xf32>
    %610 = arith.subf %608, %609 : vector<1x128xf32>
    %611 = arith.mulf %12, %602 : vector<1x128xf32>
    %612 = arith.subf %610, %611 : vector<1x128xf32>
    %613 = vector.extract_strided_slice %587 {offsets = [5, 0], sizes = [1, 128], strides = [1, 1]} : vector<8x128xf32> to vector<1x128xf32>
    %614 = arith.mulf %11, %612 : vector<1x128xf32>
    %615 = arith.subf %613, %614 : vector<1x128xf32>
    %616 = arith.mulf %12, %607 : vector<1x128xf32>
    %617 = arith.subf %615, %616 : vector<1x128xf32>
    %618 = vector.extract_strided_slice %587 {offsets = [6, 0], sizes = [1, 128], strides = [1, 1]} : vector<8x128xf32> to vector<1x128xf32>
    %619 = arith.mulf %11, %617 : vector<1x128xf32>
    %620 = arith.subf %618, %619 : vector<1x128xf32>
    %621 = arith.mulf %12, %612 : vector<1x128xf32>
    %622 = arith.subf %620, %621 : vector<1x128xf32>
    %623 = vector.extract_strided_slice %587 {offsets = [7, 0], sizes = [1, 128], strides = [1, 1]} : vector<8x128xf32> to vector<1x128xf32>
    %624 = arith.mulf %11, %622 : vector<1x128xf32>
    %625 = arith.subf %623, %624 : vector<1x128xf32>
    %626 = arith.mulf %12, %617 : vector<1x128xf32>
    %627 = arith.subf %625, %626 : vector<1x128xf32>
    %628 = tpu.concatenate %592, %597, %602, %607, %612, %617, %622, %627 in 0 : vector<1x128xf32>, vector<1x128xf32>, vector<1x128xf32>, vector<1x128xf32>, vector<1x128xf32>, vector<1x128xf32>, vector<1x128xf32>, vector<1x128xf32> -> vector<8x128xf32>
    %cst_56 = arith.constant -1.000000e+00 : f32
    %cst_57 = arith.constant 1.000000e+00 : f32
    %629 = vector.broadcast %cst_56 : f32 to vector<8x128xf32>
    %630 = arith.maximumf %629, %628 : vector<8x128xf32>
    %631 = vector.broadcast %cst_57 : f32 to vector<8x128xf32>
    %632 = arith.minimumf %631, %630 : vector<8x128xf32>
    %633 = arith.index_cast %576 : i32 to index
    %c0_58 = arith.constant 0 : index
    %634 = vector.load %arg4[%633, %c0_58] : memref<128x128xf32, #tpu.memory_space<vmem>>, vector<8x128xf32>
    tpu.vector_store %arg4[%633, %c0_58], %632 {strides = array<i32>} : memref<128x128xf32, #tpu.memory_space<vmem>>, vector<8x128xf32>,
    %635 = vector.extract_strided_slice %578 {offsets = [7, 0], sizes = [1, 128], strides = [1, 1]} : vector<8x128xf32> to vector<1x128xf32>
    %636 = vector.extract_strided_slice %578 {offsets = [6, 0], sizes = [1, 128], strides = [1, 1]} : vector<8x128xf32> to vector<1x128xf32>
    %c10_i32 = arith.constant 10 : i32
    %c8_i32_59 = arith.constant 8 : i32
    %637 = arith.muli %c10_i32, %c8_i32_59 : i32
    %638 = tpu.assume_multiple %637, 8 : i32
    %639 = arith.index_cast %638 : i32 to index
    %c0_60 = arith.constant 0 : index
    %640 = vector.load %arg3[%639, %c0_60] : memref<128x128xf32, #tpu.memory_space<vmem>>, vector<8x128xf32>
    %641 = vector.extract_strided_slice %640 {offsets = [0, 0], sizes = [7, 128], strides = [1, 1]} : vector<8x128xf32> to vector<7x128xf32>
    %642 = tpu.concatenate %635, %641 in 0 : vector<1x128xf32>, vector<7x128xf32> -> vector<8x128xf32>
    %643 = vector.extract_strided_slice %640 {offsets = [0, 0], sizes = [6, 128], strides = [1, 1]} : vector<8x128xf32> to vector<6x128xf32>
    %644 = tpu.concatenate %636, %635, %643 in 0 : vector<1x128xf32>, vector<1x128xf32>, vector<6x128xf32> -> vector<8x128xf32>
    %645 = arith.mulf %8, %640 : vector<8x128xf32>
    %646 = arith.mulf %9, %642 : vector<8x128xf32>
    %647 = arith.addf %645, %646 : vector<8x128xf32>
    %648 = arith.mulf %10, %644 : vector<8x128xf32>
    %649 = arith.addf %647, %648 : vector<8x128xf32>
    %650 = vector.extract_strided_slice %649 {offsets = [0, 0], sizes = [1, 128], strides = [1, 1]} : vector<8x128xf32> to vector<1x128xf32>
    %651 = arith.mulf %11, %627 : vector<1x128xf32>
    %652 = arith.subf %650, %651 : vector<1x128xf32>
    %653 = arith.mulf %12, %622 : vector<1x128xf32>
    %654 = arith.subf %652, %653 : vector<1x128xf32>
    %655 = vector.extract_strided_slice %649 {offsets = [1, 0], sizes = [1, 128], strides = [1, 1]} : vector<8x128xf32> to vector<1x128xf32>
    %656 = arith.mulf %11, %654 : vector<1x128xf32>
    %657 = arith.subf %655, %656 : vector<1x128xf32>
    %658 = arith.mulf %12, %627 : vector<1x128xf32>
    %659 = arith.subf %657, %658 : vector<1x128xf32>
    %660 = vector.extract_strided_slice %649 {offsets = [2, 0], sizes = [1, 128], strides = [1, 1]} : vector<8x128xf32> to vector<1x128xf32>
    %661 = arith.mulf %11, %659 : vector<1x128xf32>
    %662 = arith.subf %660, %661 : vector<1x128xf32>
    %663 = arith.mulf %12, %654 : vector<1x128xf32>
    %664 = arith.subf %662, %663 : vector<1x128xf32>
    %665 = vector.extract_strided_slice %649 {offsets = [3, 0], sizes = [1, 128], strides = [1, 1]} : vector<8x128xf32> to vector<1x128xf32>
    %666 = arith.mulf %11, %664 : vector<1x128xf32>
    %667 = arith.subf %665, %666 : vector<1x128xf32>
    %668 = arith.mulf %12, %659 : vector<1x128xf32>
    %669 = arith.subf %667, %668 : vector<1x128xf32>
    %670 = vector.extract_strided_slice %649 {offsets = [4, 0], sizes = [1, 128], strides = [1, 1]} : vector<8x128xf32> to vector<1x128xf32>
    %671 = arith.mulf %11, %669 : vector<1x128xf32>
    %672 = arith.subf %670, %671 : vector<1x128xf32>
    %673 = arith.mulf %12, %664 : vector<1x128xf32>
    %674 = arith.subf %672, %673 : vector<1x128xf32>
    %675 = vector.extract_strided_slice %649 {offsets = [5, 0], sizes = [1, 128], strides = [1, 1]} : vector<8x128xf32> to vector<1x128xf32>
    %676 = arith.mulf %11, %674 : vector<1x128xf32>
    %677 = arith.subf %675, %676 : vector<1x128xf32>
    %678 = arith.mulf %12, %669 : vector<1x128xf32>
    %679 = arith.subf %677, %678 : vector<1x128xf32>
    %680 = vector.extract_strided_slice %649 {offsets = [6, 0], sizes = [1, 128], strides = [1, 1]} : vector<8x128xf32> to vector<1x128xf32>
    %681 = arith.mulf %11, %679 : vector<1x128xf32>
    %682 = arith.subf %680, %681 : vector<1x128xf32>
    %683 = arith.mulf %12, %674 : vector<1x128xf32>
    %684 = arith.subf %682, %683 : vector<1x128xf32>
    %685 = vector.extract_strided_slice %649 {offsets = [7, 0], sizes = [1, 128], strides = [1, 1]} : vector<8x128xf32> to vector<1x128xf32>
    %686 = arith.mulf %11, %684 : vector<1x128xf32>
    %687 = arith.subf %685, %686 : vector<1x128xf32>
    %688 = arith.mulf %12, %679 : vector<1x128xf32>
    %689 = arith.subf %687, %688 : vector<1x128xf32>
    %690 = tpu.concatenate %654, %659, %664, %669, %674, %679, %684, %689 in 0 : vector<1x128xf32>, vector<1x128xf32>, vector<1x128xf32>, vector<1x128xf32>, vector<1x128xf32>, vector<1x128xf32>, vector<1x128xf32>, vector<1x128xf32> -> vector<8x128xf32>
    %cst_61 = arith.constant -1.000000e+00 : f32
    %cst_62 = arith.constant 1.000000e+00 : f32
    %691 = vector.broadcast %cst_61 : f32 to vector<8x128xf32>
    %692 = arith.maximumf %691, %690 : vector<8x128xf32>
    %693 = vector.broadcast %cst_62 : f32 to vector<8x128xf32>
    %694 = arith.minimumf %693, %692 : vector<8x128xf32>
    %695 = arith.index_cast %638 : i32 to index
    %c0_63 = arith.constant 0 : index
    %696 = vector.load %arg4[%695, %c0_63] : memref<128x128xf32, #tpu.memory_space<vmem>>, vector<8x128xf32>
    tpu.vector_store %arg4[%695, %c0_63], %694 {strides = array<i32>} : memref<128x128xf32, #tpu.memory_space<vmem>>, vector<8x128xf32>,
    %697 = vector.extract_strided_slice %640 {offsets = [7, 0], sizes = [1, 128], strides = [1, 1]} : vector<8x128xf32> to vector<1x128xf32>
    %698 = vector.extract_strided_slice %640 {offsets = [6, 0], sizes = [1, 128], strides = [1, 1]} : vector<8x128xf32> to vector<1x128xf32>
    %c11_i32 = arith.constant 11 : i32
    %c8_i32_64 = arith.constant 8 : i32
    %699 = arith.muli %c11_i32, %c8_i32_64 : i32
    %700 = tpu.assume_multiple %699, 8 : i32
    %701 = arith.index_cast %700 : i32 to index
    %c0_65 = arith.constant 0 : index
    %702 = vector.load %arg3[%701, %c0_65] : memref<128x128xf32, #tpu.memory_space<vmem>>, vector<8x128xf32>
    %703 = vector.extract_strided_slice %702 {offsets = [0, 0], sizes = [7, 128], strides = [1, 1]} : vector<8x128xf32> to vector<7x128xf32>
    %704 = tpu.concatenate %697, %703 in 0 : vector<1x128xf32>, vector<7x128xf32> -> vector<8x128xf32>
    %705 = vector.extract_strided_slice %702 {offsets = [0, 0], sizes = [6, 128], strides = [1, 1]} : vector<8x128xf32> to vector<6x128xf32>
    %706 = tpu.concatenate %698, %697, %705 in 0 : vector<1x128xf32>, vector<1x128xf32>, vector<6x128xf32> -> vector<8x128xf32>
    %707 = arith.mulf %8, %702 : vector<8x128xf32>
    %708 = arith.mulf %9, %704 : vector<8x128xf32>
    %709 = arith.addf %707, %708 : vector<8x128xf32>
    %710 = arith.mulf %10, %706 : vector<8x128xf32>
    %711 = arith.addf %709, %710 : vector<8x128xf32>
    %712 = vector.extract_strided_slice %711 {offsets = [0, 0], sizes = [1, 128], strides = [1, 1]} : vector<8x128xf32> to vector<1x128xf32>
    %713 = arith.mulf %11, %689 : vector<1x128xf32>
    %714 = arith.subf %712, %713 : vector<1x128xf32>
    %715 = arith.mulf %12, %684 : vector<1x128xf32>
    %716 = arith.subf %714, %715 : vector<1x128xf32>
    %717 = vector.extract_strided_slice %711 {offsets = [1, 0], sizes = [1, 128], strides = [1, 1]} : vector<8x128xf32> to vector<1x128xf32>
    %718 = arith.mulf %11, %716 : vector<1x128xf32>
    %719 = arith.subf %717, %718 : vector<1x128xf32>
    %720 = arith.mulf %12, %689 : vector<1x128xf32>
    %721 = arith.subf %719, %720 : vector<1x128xf32>
    %722 = vector.extract_strided_slice %711 {offsets = [2, 0], sizes = [1, 128], strides = [1, 1]} : vector<8x128xf32> to vector<1x128xf32>
    %723 = arith.mulf %11, %721 : vector<1x128xf32>
    %724 = arith.subf %722, %723 : vector<1x128xf32>
    %725 = arith.mulf %12, %716 : vector<1x128xf32>
    %726 = arith.subf %724, %725 : vector<1x128xf32>
    %727 = vector.extract_strided_slice %711 {offsets = [3, 0], sizes = [1, 128], strides = [1, 1]} : vector<8x128xf32> to vector<1x128xf32>
    %728 = arith.mulf %11, %726 : vector<1x128xf32>
    %729 = arith.subf %727, %728 : vector<1x128xf32>
    %730 = arith.mulf %12, %721 : vector<1x128xf32>
    %731 = arith.subf %729, %730 : vector<1x128xf32>
    %732 = vector.extract_strided_slice %711 {offsets = [4, 0], sizes = [1, 128], strides = [1, 1]} : vector<8x128xf32> to vector<1x128xf32>
    %733 = arith.mulf %11, %731 : vector<1x128xf32>
    %734 = arith.subf %732, %733 : vector<1x128xf32>
    %735 = arith.mulf %12, %726 : vector<1x128xf32>
    %736 = arith.subf %734, %735 : vector<1x128xf32>
    %737 = vector.extract_strided_slice %711 {offsets = [5, 0], sizes = [1, 128], strides = [1, 1]} : vector<8x128xf32> to vector<1x128xf32>
    %738 = arith.mulf %11, %736 : vector<1x128xf32>
    %739 = arith.subf %737, %738 : vector<1x128xf32>
    %740 = arith.mulf %12, %731 : vector<1x128xf32>
    %741 = arith.subf %739, %740 : vector<1x128xf32>
    %742 = vector.extract_strided_slice %711 {offsets = [6, 0], sizes = [1, 128], strides = [1, 1]} : vector<8x128xf32> to vector<1x128xf32>
    %743 = arith.mulf %11, %741 : vector<1x128xf32>
    %744 = arith.subf %742, %743 : vector<1x128xf32>
    %745 = arith.mulf %12, %736 : vector<1x128xf32>
    %746 = arith.subf %744, %745 : vector<1x128xf32>
    %747 = vector.extract_strided_slice %711 {offsets = [7, 0], sizes = [1, 128], strides = [1, 1]} : vector<8x128xf32> to vector<1x128xf32>
    %748 = arith.mulf %11, %746 : vector<1x128xf32>
    %749 = arith.subf %747, %748 : vector<1x128xf32>
    %750 = arith.mulf %12, %741 : vector<1x128xf32>
    %751 = arith.subf %749, %750 : vector<1x128xf32>
    %752 = tpu.concatenate %716, %721, %726, %731, %736, %741, %746, %751 in 0 : vector<1x128xf32>, vector<1x128xf32>, vector<1x128xf32>, vector<1x128xf32>, vector<1x128xf32>, vector<1x128xf32>, vector<1x128xf32>, vector<1x128xf32> -> vector<8x128xf32>
    %cst_66 = arith.constant -1.000000e+00 : f32
    %cst_67 = arith.constant 1.000000e+00 : f32
    %753 = vector.broadcast %cst_66 : f32 to vector<8x128xf32>
    %754 = arith.maximumf %753, %752 : vector<8x128xf32>
    %755 = vector.broadcast %cst_67 : f32 to vector<8x128xf32>
    %756 = arith.minimumf %755, %754 : vector<8x128xf32>
    %757 = arith.index_cast %700 : i32 to index
    %c0_68 = arith.constant 0 : index
    %758 = vector.load %arg4[%757, %c0_68] : memref<128x128xf32, #tpu.memory_space<vmem>>, vector<8x128xf32>
    tpu.vector_store %arg4[%757, %c0_68], %756 {strides = array<i32>} : memref<128x128xf32, #tpu.memory_space<vmem>>, vector<8x128xf32>,
    %759 = vector.extract_strided_slice %702 {offsets = [7, 0], sizes = [1, 128], strides = [1, 1]} : vector<8x128xf32> to vector<1x128xf32>
    %760 = vector.extract_strided_slice %702 {offsets = [6, 0], sizes = [1, 128], strides = [1, 1]} : vector<8x128xf32> to vector<1x128xf32>
    %c12_i32 = arith.constant 12 : i32
    %c8_i32_69 = arith.constant 8 : i32
    %761 = arith.muli %c12_i32, %c8_i32_69 : i32
    %762 = tpu.assume_multiple %761, 8 : i32
    %763 = arith.index_cast %762 : i32 to index
    %c0_70 = arith.constant 0 : index
    %764 = vector.load %arg3[%763, %c0_70] : memref<128x128xf32, #tpu.memory_space<vmem>>, vector<8x128xf32>
    %765 = vector.extract_strided_slice %764 {offsets = [0, 0], sizes = [7, 128], strides = [1, 1]} : vector<8x128xf32> to vector<7x128xf32>
    %766 = tpu.concatenate %759, %765 in 0 : vector<1x128xf32>, vector<7x128xf32> -> vector<8x128xf32>
    %767 = vector.extract_strided_slice %764 {offsets = [0, 0], sizes = [6, 128], strides = [1, 1]} : vector<8x128xf32> to vector<6x128xf32>
    %768 = tpu.concatenate %760, %759, %767 in 0 : vector<1x128xf32>, vector<1x128xf32>, vector<6x128xf32> -> vector<8x128xf32>
    %769 = arith.mulf %8, %764 : vector<8x128xf32>
    %770 = arith.mulf %9, %766 : vector<8x128xf32>
    %771 = arith.addf %769, %770 : vector<8x128xf32>
    %772 = arith.mulf %10, %768 : vector<8x128xf32>
    %773 = arith.addf %771, %772 : vector<8x128xf32>
    %774 = vector.extract_strided_slice %773 {offsets = [0, 0], sizes = [1, 128], strides = [1, 1]} : vector<8x128xf32> to vector<1x128xf32>
    %775 = arith.mulf %11, %751 : vector<1x128xf32>
    %776 = arith.subf %774, %775 : vector<1x128xf32>
    %777 = arith.mulf %12, %746 : vector<1x128xf32>
    %778 = arith.subf %776, %777 : vector<1x128xf32>
    %779 = vector.extract_strided_slice %773 {offsets = [1, 0], sizes = [1, 128], strides = [1, 1]} : vector<8x128xf32> to vector<1x128xf32>
    %780 = arith.mulf %11, %778 : vector<1x128xf32>
    %781 = arith.subf %779, %780 : vector<1x128xf32>
    %782 = arith.mulf %12, %751 : vector<1x128xf32>
    %783 = arith.subf %781, %782 : vector<1x128xf32>
    %784 = vector.extract_strided_slice %773 {offsets = [2, 0], sizes = [1, 128], strides = [1, 1]} : vector<8x128xf32> to vector<1x128xf32>
    %785 = arith.mulf %11, %783 : vector<1x128xf32>
    %786 = arith.subf %784, %785 : vector<1x128xf32>
    %787 = arith.mulf %12, %778 : vector<1x128xf32>
    %788 = arith.subf %786, %787 : vector<1x128xf32>
    %789 = vector.extract_strided_slice %773 {offsets = [3, 0], sizes = [1, 128], strides = [1, 1]} : vector<8x128xf32> to vector<1x128xf32>
    %790 = arith.mulf %11, %788 : vector<1x128xf32>
    %791 = arith.subf %789, %790 : vector<1x128xf32>
    %792 = arith.mulf %12, %783 : vector<1x128xf32>
    %793 = arith.subf %791, %792 : vector<1x128xf32>
    %794 = vector.extract_strided_slice %773 {offsets = [4, 0], sizes = [1, 128], strides = [1, 1]} : vector<8x128xf32> to vector<1x128xf32>
    %795 = arith.mulf %11, %793 : vector<1x128xf32>
    %796 = arith.subf %794, %795 : vector<1x128xf32>
    %797 = arith.mulf %12, %788 : vector<1x128xf32>
    %798 = arith.subf %796, %797 : vector<1x128xf32>
    %799 = vector.extract_strided_slice %773 {offsets = [5, 0], sizes = [1, 128], strides = [1, 1]} : vector<8x128xf32> to vector<1x128xf32>
    %800 = arith.mulf %11, %798 : vector<1x128xf32>
    %801 = arith.subf %799, %800 : vector<1x128xf32>
    %802 = arith.mulf %12, %793 : vector<1x128xf32>
    %803 = arith.subf %801, %802 : vector<1x128xf32>
    %804 = vector.extract_strided_slice %773 {offsets = [6, 0], sizes = [1, 128], strides = [1, 1]} : vector<8x128xf32> to vector<1x128xf32>
    %805 = arith.mulf %11, %803 : vector<1x128xf32>
    %806 = arith.subf %804, %805 : vector<1x128xf32>
    %807 = arith.mulf %12, %798 : vector<1x128xf32>
    %808 = arith.subf %806, %807 : vector<1x128xf32>
    %809 = vector.extract_strided_slice %773 {offsets = [7, 0], sizes = [1, 128], strides = [1, 1]} : vector<8x128xf32> to vector<1x128xf32>
    %810 = arith.mulf %11, %808 : vector<1x128xf32>
    %811 = arith.subf %809, %810 : vector<1x128xf32>
    %812 = arith.mulf %12, %803 : vector<1x128xf32>
    %813 = arith.subf %811, %812 : vector<1x128xf32>
    %814 = tpu.concatenate %778, %783, %788, %793, %798, %803, %808, %813 in 0 : vector<1x128xf32>, vector<1x128xf32>, vector<1x128xf32>, vector<1x128xf32>, vector<1x128xf32>, vector<1x128xf32>, vector<1x128xf32>, vector<1x128xf32> -> vector<8x128xf32>
    %cst_71 = arith.constant -1.000000e+00 : f32
    %cst_72 = arith.constant 1.000000e+00 : f32
    %815 = vector.broadcast %cst_71 : f32 to vector<8x128xf32>
    %816 = arith.maximumf %815, %814 : vector<8x128xf32>
    %817 = vector.broadcast %cst_72 : f32 to vector<8x128xf32>
    %818 = arith.minimumf %817, %816 : vector<8x128xf32>
    %819 = arith.index_cast %762 : i32 to index
    %c0_73 = arith.constant 0 : index
    %820 = vector.load %arg4[%819, %c0_73] : memref<128x128xf32, #tpu.memory_space<vmem>>, vector<8x128xf32>
    tpu.vector_store %arg4[%819, %c0_73], %818 {strides = array<i32>} : memref<128x128xf32, #tpu.memory_space<vmem>>, vector<8x128xf32>,
    %821 = vector.extract_strided_slice %764 {offsets = [7, 0], sizes = [1, 128], strides = [1, 1]} : vector<8x128xf32> to vector<1x128xf32>
    %822 = vector.extract_strided_slice %764 {offsets = [6, 0], sizes = [1, 128], strides = [1, 1]} : vector<8x128xf32> to vector<1x128xf32>
    %c13_i32 = arith.constant 13 : i32
    %c8_i32_74 = arith.constant 8 : i32
    %823 = arith.muli %c13_i32, %c8_i32_74 : i32
    %824 = tpu.assume_multiple %823, 8 : i32
    %825 = arith.index_cast %824 : i32 to index
    %c0_75 = arith.constant 0 : index
    %826 = vector.load %arg3[%825, %c0_75] : memref<128x128xf32, #tpu.memory_space<vmem>>, vector<8x128xf32>
    %827 = vector.extract_strided_slice %826 {offsets = [0, 0], sizes = [7, 128], strides = [1, 1]} : vector<8x128xf32> to vector<7x128xf32>
    %828 = tpu.concatenate %821, %827 in 0 : vector<1x128xf32>, vector<7x128xf32> -> vector<8x128xf32>
    %829 = vector.extract_strided_slice %826 {offsets = [0, 0], sizes = [6, 128], strides = [1, 1]} : vector<8x128xf32> to vector<6x128xf32>
    %830 = tpu.concatenate %822, %821, %829 in 0 : vector<1x128xf32>, vector<1x128xf32>, vector<6x128xf32> -> vector<8x128xf32>
    %831 = arith.mulf %8, %826 : vector<8x128xf32>
    %832 = arith.mulf %9, %828 : vector<8x128xf32>
    %833 = arith.addf %831, %832 : vector<8x128xf32>
    %834 = arith.mulf %10, %830 : vector<8x128xf32>
    %835 = arith.addf %833, %834 : vector<8x128xf32>
    %836 = vector.extract_strided_slice %835 {offsets = [0, 0], sizes = [1, 128], strides = [1, 1]} : vector<8x128xf32> to vector<1x128xf32>
    %837 = arith.mulf %11, %813 : vector<1x128xf32>
    %838 = arith.subf %836, %837 : vector<1x128xf32>
    %839 = arith.mulf %12, %808 : vector<1x128xf32>
    %840 = arith.subf %838, %839 : vector<1x128xf32>
    %841 = vector.extract_strided_slice %835 {offsets = [1, 0], sizes = [1, 128], strides = [1, 1]} : vector<8x128xf32> to vector<1x128xf32>
    %842 = arith.mulf %11, %840 : vector<1x128xf32>
    %843 = arith.subf %841, %842 : vector<1x128xf32>
    %844 = arith.mulf %12, %813 : vector<1x128xf32>
    %845 = arith.subf %843, %844 : vector<1x128xf32>
    %846 = vector.extract_strided_slice %835 {offsets = [2, 0], sizes = [1, 128], strides = [1, 1]} : vector<8x128xf32> to vector<1x128xf32>
    %847 = arith.mulf %11, %845 : vector<1x128xf32>
    %848 = arith.subf %846, %847 : vector<1x128xf32>
    %849 = arith.mulf %12, %840 : vector<1x128xf32>
    %850 = arith.subf %848, %849 : vector<1x128xf32>
    %851 = vector.extract_strided_slice %835 {offsets = [3, 0], sizes = [1, 128], strides = [1, 1]} : vector<8x128xf32> to vector<1x128xf32>
    %852 = arith.mulf %11, %850 : vector<1x128xf32>
    %853 = arith.subf %851, %852 : vector<1x128xf32>
    %854 = arith.mulf %12, %845 : vector<1x128xf32>
    %855 = arith.subf %853, %854 : vector<1x128xf32>
    %856 = vector.extract_strided_slice %835 {offsets = [4, 0], sizes = [1, 128], strides = [1, 1]} : vector<8x128xf32> to vector<1x128xf32>
    %857 = arith.mulf %11, %855 : vector<1x128xf32>
    %858 = arith.subf %856, %857 : vector<1x128xf32>
    %859 = arith.mulf %12, %850 : vector<1x128xf32>
    %860 = arith.subf %858, %859 : vector<1x128xf32>
    %861 = vector.extract_strided_slice %835 {offsets = [5, 0], sizes = [1, 128], strides = [1, 1]} : vector<8x128xf32> to vector<1x128xf32>
    %862 = arith.mulf %11, %860 : vector<1x128xf32>
    %863 = arith.subf %861, %862 : vector<1x128xf32>
    %864 = arith.mulf %12, %855 : vector<1x128xf32>
    %865 = arith.subf %863, %864 : vector<1x128xf32>
    %866 = vector.extract_strided_slice %835 {offsets = [6, 0], sizes = [1, 128], strides = [1, 1]} : vector<8x128xf32> to vector<1x128xf32>
    %867 = arith.mulf %11, %865 : vector<1x128xf32>
    %868 = arith.subf %866, %867 : vector<1x128xf32>
    %869 = arith.mulf %12, %860 : vector<1x128xf32>
    %870 = arith.subf %868, %869 : vector<1x128xf32>
    %871 = vector.extract_strided_slice %835 {offsets = [7, 0], sizes = [1, 128], strides = [1, 1]} : vector<8x128xf32> to vector<1x128xf32>
    %872 = arith.mulf %11, %870 : vector<1x128xf32>
    %873 = arith.subf %871, %872 : vector<1x128xf32>
    %874 = arith.mulf %12, %865 : vector<1x128xf32>
    %875 = arith.subf %873, %874 : vector<1x128xf32>
    %876 = tpu.concatenate %840, %845, %850, %855, %860, %865, %870, %875 in 0 : vector<1x128xf32>, vector<1x128xf32>, vector<1x128xf32>, vector<1x128xf32>, vector<1x128xf32>, vector<1x128xf32>, vector<1x128xf32>, vector<1x128xf32> -> vector<8x128xf32>
    %cst_76 = arith.constant -1.000000e+00 : f32
    %cst_77 = arith.constant 1.000000e+00 : f32
    %877 = vector.broadcast %cst_76 : f32 to vector<8x128xf32>
    %878 = arith.maximumf %877, %876 : vector<8x128xf32>
    %879 = vector.broadcast %cst_77 : f32 to vector<8x128xf32>
    %880 = arith.minimumf %879, %878 : vector<8x128xf32>
    %881 = arith.index_cast %824 : i32 to index
    %c0_78 = arith.constant 0 : index
    %882 = vector.load %arg4[%881, %c0_78] : memref<128x128xf32, #tpu.memory_space<vmem>>, vector<8x128xf32>
    tpu.vector_store %arg4[%881, %c0_78], %880 {strides = array<i32>} : memref<128x128xf32, #tpu.memory_space<vmem>>, vector<8x128xf32>,
    %883 = vector.extract_strided_slice %826 {offsets = [7, 0], sizes = [1, 128], strides = [1, 1]} : vector<8x128xf32> to vector<1x128xf32>
    %884 = vector.extract_strided_slice %826 {offsets = [6, 0], sizes = [1, 128], strides = [1, 1]} : vector<8x128xf32> to vector<1x128xf32>
    %c14_i32 = arith.constant 14 : i32
    %c8_i32_79 = arith.constant 8 : i32
    %885 = arith.muli %c14_i32, %c8_i32_79 : i32
    %886 = tpu.assume_multiple %885, 8 : i32
    %887 = arith.index_cast %886 : i32 to index
    %c0_80 = arith.constant 0 : index
    %888 = vector.load %arg3[%887, %c0_80] : memref<128x128xf32, #tpu.memory_space<vmem>>, vector<8x128xf32>
    %889 = vector.extract_strided_slice %888 {offsets = [0, 0], sizes = [7, 128], strides = [1, 1]} : vector<8x128xf32> to vector<7x128xf32>
    %890 = tpu.concatenate %883, %889 in 0 : vector<1x128xf32>, vector<7x128xf32> -> vector<8x128xf32>
    %891 = vector.extract_strided_slice %888 {offsets = [0, 0], sizes = [6, 128], strides = [1, 1]} : vector<8x128xf32> to vector<6x128xf32>
    %892 = tpu.concatenate %884, %883, %891 in 0 : vector<1x128xf32>, vector<1x128xf32>, vector<6x128xf32> -> vector<8x128xf32>
    %893 = arith.mulf %8, %888 : vector<8x128xf32>
    %894 = arith.mulf %9, %890 : vector<8x128xf32>
    %895 = arith.addf %893, %894 : vector<8x128xf32>
    %896 = arith.mulf %10, %892 : vector<8x128xf32>
    %897 = arith.addf %895, %896 : vector<8x128xf32>
    %898 = vector.extract_strided_slice %897 {offsets = [0, 0], sizes = [1, 128], strides = [1, 1]} : vector<8x128xf32> to vector<1x128xf32>
    %899 = arith.mulf %11, %875 : vector<1x128xf32>
    %900 = arith.subf %898, %899 : vector<1x128xf32>
    %901 = arith.mulf %12, %870 : vector<1x128xf32>
    %902 = arith.subf %900, %901 : vector<1x128xf32>
    %903 = vector.extract_strided_slice %897 {offsets = [1, 0], sizes = [1, 128], strides = [1, 1]} : vector<8x128xf32> to vector<1x128xf32>
    %904 = arith.mulf %11, %902 : vector<1x128xf32>
    %905 = arith.subf %903, %904 : vector<1x128xf32>
    %906 = arith.mulf %12, %875 : vector<1x128xf32>
    %907 = arith.subf %905, %906 : vector<1x128xf32>
    %908 = vector.extract_strided_slice %897 {offsets = [2, 0], sizes = [1, 128], strides = [1, 1]} : vector<8x128xf32> to vector<1x128xf32>
    %909 = arith.mulf %11, %907 : vector<1x128xf32>
    %910 = arith.subf %908, %909 : vector<1x128xf32>
    %911 = arith.mulf %12, %902 : vector<1x128xf32>
    %912 = arith.subf %910, %911 : vector<1x128xf32>
    %913 = vector.extract_strided_slice %897 {offsets = [3, 0], sizes = [1, 128], strides = [1, 1]} : vector<8x128xf32> to vector<1x128xf32>
    %914 = arith.mulf %11, %912 : vector<1x128xf32>
    %915 = arith.subf %913, %914 : vector<1x128xf32>
    %916 = arith.mulf %12, %907 : vector<1x128xf32>
    %917 = arith.subf %915, %916 : vector<1x128xf32>
    %918 = vector.extract_strided_slice %897 {offsets = [4, 0], sizes = [1, 128], strides = [1, 1]} : vector<8x128xf32> to vector<1x128xf32>
    %919 = arith.mulf %11, %917 : vector<1x128xf32>
    %920 = arith.subf %918, %919 : vector<1x128xf32>
    %921 = arith.mulf %12, %912 : vector<1x128xf32>
    %922 = arith.subf %920, %921 : vector<1x128xf32>
    %923 = vector.extract_strided_slice %897 {offsets = [5, 0], sizes = [1, 128], strides = [1, 1]} : vector<8x128xf32> to vector<1x128xf32>
    %924 = arith.mulf %11, %922 : vector<1x128xf32>
    %925 = arith.subf %923, %924 : vector<1x128xf32>
    %926 = arith.mulf %12, %917 : vector<1x128xf32>
    %927 = arith.subf %925, %926 : vector<1x128xf32>
    %928 = vector.extract_strided_slice %897 {offsets = [6, 0], sizes = [1, 128], strides = [1, 1]} : vector<8x128xf32> to vector<1x128xf32>
    %929 = arith.mulf %11, %927 : vector<1x128xf32>
    %930 = arith.subf %928, %929 : vector<1x128xf32>
    %931 = arith.mulf %12, %922 : vector<1x128xf32>
    %932 = arith.subf %930, %931 : vector<1x128xf32>
    %933 = vector.extract_strided_slice %897 {offsets = [7, 0], sizes = [1, 128], strides = [1, 1]} : vector<8x128xf32> to vector<1x128xf32>
    %934 = arith.mulf %11, %932 : vector<1x128xf32>
    %935 = arith.subf %933, %934 : vector<1x128xf32>
    %936 = arith.mulf %12, %927 : vector<1x128xf32>
    %937 = arith.subf %935, %936 : vector<1x128xf32>
    %938 = tpu.concatenate %902, %907, %912, %917, %922, %927, %932, %937 in 0 : vector<1x128xf32>, vector<1x128xf32>, vector<1x128xf32>, vector<1x128xf32>, vector<1x128xf32>, vector<1x128xf32>, vector<1x128xf32>, vector<1x128xf32> -> vector<8x128xf32>
    %cst_81 = arith.constant -1.000000e+00 : f32
    %cst_82 = arith.constant 1.000000e+00 : f32
    %939 = vector.broadcast %cst_81 : f32 to vector<8x128xf32>
    %940 = arith.maximumf %939, %938 : vector<8x128xf32>
    %941 = vector.broadcast %cst_82 : f32 to vector<8x128xf32>
    %942 = arith.minimumf %941, %940 : vector<8x128xf32>
    %943 = arith.index_cast %886 : i32 to index
    %c0_83 = arith.constant 0 : index
    %944 = vector.load %arg4[%943, %c0_83] : memref<128x128xf32, #tpu.memory_space<vmem>>, vector<8x128xf32>
    tpu.vector_store %arg4[%943, %c0_83], %942 {strides = array<i32>} : memref<128x128xf32, #tpu.memory_space<vmem>>, vector<8x128xf32>,
    %945 = vector.extract_strided_slice %888 {offsets = [7, 0], sizes = [1, 128], strides = [1, 1]} : vector<8x128xf32> to vector<1x128xf32>
    %946 = vector.extract_strided_slice %888 {offsets = [6, 0], sizes = [1, 128], strides = [1, 1]} : vector<8x128xf32> to vector<1x128xf32>
    %c15_i32 = arith.constant 15 : i32
    %c8_i32_84 = arith.constant 8 : i32
    %947 = arith.muli %c15_i32, %c8_i32_84 : i32
    %948 = tpu.assume_multiple %947, 8 : i32
    %949 = arith.index_cast %948 : i32 to index
    %c0_85 = arith.constant 0 : index
    %950 = vector.load %arg3[%949, %c0_85] : memref<128x128xf32, #tpu.memory_space<vmem>>, vector<8x128xf32>
    %951 = vector.extract_strided_slice %950 {offsets = [0, 0], sizes = [7, 128], strides = [1, 1]} : vector<8x128xf32> to vector<7x128xf32>
    %952 = tpu.concatenate %945, %951 in 0 : vector<1x128xf32>, vector<7x128xf32> -> vector<8x128xf32>
    %953 = vector.extract_strided_slice %950 {offsets = [0, 0], sizes = [6, 128], strides = [1, 1]} : vector<8x128xf32> to vector<6x128xf32>
    %954 = tpu.concatenate %946, %945, %953 in 0 : vector<1x128xf32>, vector<1x128xf32>, vector<6x128xf32> -> vector<8x128xf32>
    %955 = arith.mulf %8, %950 : vector<8x128xf32>
    %956 = arith.mulf %9, %952 : vector<8x128xf32>
    %957 = arith.addf %955, %956 : vector<8x128xf32>
    %958 = arith.mulf %10, %954 : vector<8x128xf32>
    %959 = arith.addf %957, %958 : vector<8x128xf32>
    %960 = vector.extract_strided_slice %959 {offsets = [0, 0], sizes = [1, 128], strides = [1, 1]} : vector<8x128xf32> to vector<1x128xf32>
    %961 = arith.mulf %11, %937 : vector<1x128xf32>
    %962 = arith.subf %960, %961 : vector<1x128xf32>
    %963 = arith.mulf %12, %932 : vector<1x128xf32>
    %964 = arith.subf %962, %963 : vector<1x128xf32>
    %965 = vector.extract_strided_slice %959 {offsets = [1, 0], sizes = [1, 128], strides = [1, 1]} : vector<8x128xf32> to vector<1x128xf32>
    %966 = arith.mulf %11, %964 : vector<1x128xf32>
    %967 = arith.subf %965, %966 : vector<1x128xf32>
    %968 = arith.mulf %12, %937 : vector<1x128xf32>
    %969 = arith.subf %967, %968 : vector<1x128xf32>
    %970 = vector.extract_strided_slice %959 {offsets = [2, 0], sizes = [1, 128], strides = [1, 1]} : vector<8x128xf32> to vector<1x128xf32>
    %971 = arith.mulf %11, %969 : vector<1x128xf32>
    %972 = arith.subf %970, %971 : vector<1x128xf32>
    %973 = arith.mulf %12, %964 : vector<1x128xf32>
    %974 = arith.subf %972, %973 : vector<1x128xf32>
    %975 = vector.extract_strided_slice %959 {offsets = [3, 0], sizes = [1, 128], strides = [1, 1]} : vector<8x128xf32> to vector<1x128xf32>
    %976 = arith.mulf %11, %974 : vector<1x128xf32>
    %977 = arith.subf %975, %976 : vector<1x128xf32>
    %978 = arith.mulf %12, %969 : vector<1x128xf32>
    %979 = arith.subf %977, %978 : vector<1x128xf32>
    %980 = vector.extract_strided_slice %959 {offsets = [4, 0], sizes = [1, 128], strides = [1, 1]} : vector<8x128xf32> to vector<1x128xf32>
    %981 = arith.mulf %11, %979 : vector<1x128xf32>
    %982 = arith.subf %980, %981 : vector<1x128xf32>
    %983 = arith.mulf %12, %974 : vector<1x128xf32>
    %984 = arith.subf %982, %983 : vector<1x128xf32>
    %985 = vector.extract_strided_slice %959 {offsets = [5, 0], sizes = [1, 128], strides = [1, 1]} : vector<8x128xf32> to vector<1x128xf32>
    %986 = arith.mulf %11, %984 : vector<1x128xf32>
    %987 = arith.subf %985, %986 : vector<1x128xf32>
    %988 = arith.mulf %12, %979 : vector<1x128xf32>
    %989 = arith.subf %987, %988 : vector<1x128xf32>
    %990 = vector.extract_strided_slice %959 {offsets = [6, 0], sizes = [1, 128], strides = [1, 1]} : vector<8x128xf32> to vector<1x128xf32>
    %991 = arith.mulf %11, %989 : vector<1x128xf32>
    %992 = arith.subf %990, %991 : vector<1x128xf32>
    %993 = arith.mulf %12, %984 : vector<1x128xf32>
    %994 = arith.subf %992, %993 : vector<1x128xf32>
    %995 = vector.extract_strided_slice %959 {offsets = [7, 0], sizes = [1, 128], strides = [1, 1]} : vector<8x128xf32> to vector<1x128xf32>
    %996 = arith.mulf %11, %994 : vector<1x128xf32>
    %997 = arith.subf %995, %996 : vector<1x128xf32>
    %998 = arith.mulf %12, %989 : vector<1x128xf32>
    %999 = arith.subf %997, %998 : vector<1x128xf32>
    %1000 = tpu.concatenate %964, %969, %974, %979, %984, %989, %994, %999 in 0 : vector<1x128xf32>, vector<1x128xf32>, vector<1x128xf32>, vector<1x128xf32>, vector<1x128xf32>, vector<1x128xf32>, vector<1x128xf32>, vector<1x128xf32> -> vector<8x128xf32>
    %cst_86 = arith.constant -1.000000e+00 : f32
    %cst_87 = arith.constant 1.000000e+00 : f32
    %1001 = vector.broadcast %cst_86 : f32 to vector<8x128xf32>
    %1002 = arith.maximumf %1001, %1000 : vector<8x128xf32>
    %1003 = vector.broadcast %cst_87 : f32 to vector<8x128xf32>
    %1004 = arith.minimumf %1003, %1002 : vector<8x128xf32>
    %1005 = arith.index_cast %948 : i32 to index
    %c0_88 = arith.constant 0 : index
    %1006 = vector.load %arg4[%1005, %c0_88] : memref<128x128xf32, #tpu.memory_space<vmem>>, vector<8x128xf32>
    tpu.vector_store %arg4[%1005, %c0_88], %1004 {strides = array<i32>} : memref<128x128xf32, #tpu.memory_space<vmem>>, vector<8x128xf32>,
    %1007 = vector.extract_strided_slice %950 {offsets = [7, 0], sizes = [1, 128], strides = [1, 1]} : vector<8x128xf32> to vector<1x128xf32>
    %1008 = vector.extract_strided_slice %950 {offsets = [6, 0], sizes = [1, 128], strides = [1, 1]} : vector<8x128xf32> to vector<1x128xf32>
    %c16_i32 = arith.constant 16 : i32
    %c0_89 = arith.constant 0 : index
    %c0_90 = arith.constant 0 : index
    %1009 = vector.load %arg5[%c0_89, %c0_90] : memref<4x128xf32, #tpu.memory_space<vmem>>, vector<1x128xf32>
    tpu.vector_store %arg5[%c0_89, %c0_90], %1007 {strides = array<i32>} : memref<4x128xf32, #tpu.memory_space<vmem>>, vector<1x128xf32>,
    %c1_91 = arith.constant 1 : index
    %c0_92 = arith.constant 0 : index
    %1010 = vector.load %arg5[%c1_91, %c0_92] : memref<4x128xf32, #tpu.memory_space<vmem>>, vector<1x128xf32>
    tpu.vector_store %arg5[%c1_91, %c0_92], %1008 {strides = array<i32>} : memref<4x128xf32, #tpu.memory_space<vmem>>, vector<1x128xf32>,
    %c2_93 = arith.constant 2 : index
    %c0_94 = arith.constant 0 : index
    %1011 = vector.load %arg5[%c2_93, %c0_94] : memref<4x128xf32, #tpu.memory_space<vmem>>, vector<1x128xf32>
    tpu.vector_store %arg5[%c2_93, %c0_94], %999 {strides = array<i32>} : memref<4x128xf32, #tpu.memory_space<vmem>>, vector<1x128xf32>,
    %c3_95 = arith.constant 3 : index
    %c0_96 = arith.constant 0 : index
    %1012 = vector.load %arg5[%c3_95, %c0_96] : memref<4x128xf32, #tpu.memory_space<vmem>>, vector<1x128xf32>
    tpu.vector_store %arg5[%c3_95, %c0_96], %994 {strides = array<i32>} : memref<4x128xf32, #tpu.memory_space<vmem>>, vector<1x128xf32>,
    return
  }
  func.func @transform_0(%arg0: i32, %arg1: i32) -> i32 {
    %c0_i32 = arith.constant 0 : i32
    %c0_i32_0 = arith.constant 0 : i32
    return %c0_i32 : i32
  }
  func.func @transform_1(%arg0: i32, %arg1: i32) -> (i32, i32) {
    %c0_i32 = arith.constant 0 : i32
    return %arg1, %arg0 : i32, i32
  }
  func.func @transform_2(%arg0: i32, %arg1: i32) -> (i32, i32) {
    %c0_i32 = arith.constant 0 : i32
    return %arg1, %arg0 : i32, i32
  }
}

</mosaic_0001>

<bundles_post_ra>
// kernel: tpu_custom_call.1
= control target key start
LH: loop header
LB: loop body
LE: loop exit
PB: predicated region body
PF: predicated region fallthrough
CT: control target
= control target key end

     0   :  { %7 = vsyncpa [#allocation6], 0  ;;  %s3338_s0 = inlined_call_operand.hbm [shape: f32[5], index: 0, kind: input, shape index: {}]   ;;  %s3339_s1 = inlined_call_operand.hbm [shape: f32[384,128], index: 1, kind: input, shape index: {}]   ;;  %s3340_s2 = inlined_call_operand.hbm [shape: f32[384,128], index: 2, kind: output, shape index: {}]  }
   0x1   :  { %8 = vsyncpa [#allocation4], 0 }
   0x2   :  { %10 = vsyncpa [#allocation4 + $0x1], 0 }
   0x3   :  { %11 = vsyncpa [#allocation5], 0 }
   0x4   :  { %13 = vsyncpa [#allocation5 + $0x1], 0  ;;  %s2313_s9 = smov 0   ;;  %s2315_s10 = smov 0  }
   0x5   :  { %s2317_s11 = smov 0   ;;  %s2319_s12 = smov 0  }
   0x6   :  { %s2321_s13 = smov 0   ;;  %s2323_s14 = smov 0  }
   0x7 LB: > { %s2011_s15 = sadd.s32 4294967295, %s2288_s14   ;;  %s2012_s16 = sadd.s32 4294967294, %s2288_s14   ;;  %s2288_s14 = sphi %s2323_s14, %s19_s14   ;;  %s2284_s13 = sphi %s2321_s13, %s3359_s13   ;;  %s2280_s12 = sphi %s2319_s12, %s3358_s12   ;;  %s2276_s11 = sphi %s2317_s11, %s3357_s11   ;;  %s2272_s10 = sphi %s2315_s10, %s3356_s10   ;;  %s2268_s9 = sphi %s2313_s9, %s3355_s9  }
   0x8   : > { %s61_s17 = sadd.s32 1, %s2276_s11  ;;  %p68_p0 = scmp.ne.s32.totalorder %s2276_s11, %s2272_s10 }
   0x9   : > { %p69_p1 = scmp.eq.s32.totalorder %s2288_s14, 0  ;;  %p74_p2 = scmp.ne.s32.totalorder %s2272_s10, %s2268_s9 }
   0xa   : > { %p2351_p3 = scmp.eq.s32.totalorder %s2011_s15, 0  ;;  %p100_p4 = scmp.eq.s32.totalorder %s2011_s15, 2 }
   0xb   : > { %p70_p5 = por %p69_p1, %p68_p0  ;;  %p106_p6 = scmp.eq.s32.totalorder %s2012_s16, 2 }
   0xc   : > { %s3345_s18 = scalar_select %p2351_p3, 1, 0 }
   0xd   : > { %p2357_p7 = por %p2351_p3, %p74_p2  ;;  %p2361_p8 = por %p100_p4, %p68_p0 }
   0xe   : > { %p2365_p9 = por %p106_p6, %p74_p2  ;;  %p2013_p10 = scmp.ge.s32.totalorder %s2288_s14, 1 }
   0xf   : > { %s3346_s19 = scalar_select %p2357_p7, 1, 0 }
  0x10   : > { %s3347_s20 = scalar_select %p2361_p8, 1, 0 }
  0x11   : > { %s3348_s21 = scalar_select %p2365_p9, 1, 0 }
  0x12   : > { %p113_p11 = scmp.lt.s32.totalorder %s2288_s14, 4  ;;  %p2102_p13 = scmp.lt.s32.totalorder %s2288_s14, 3 }
  0x13   : > { %s135_s23 = sand.u32 1, %s2276_s11   ;;  %s28_s25 = sadd.s32 1, %s2284_s13 }
  0x14   : > { %p2371_p12 = pnand %p2013_p10, %p113_p11  ;;  %p2379_p7 = pnand %p2102_p13, %p70_p5 }
  0x15   : > { %s2016_s26 = sshll.u32 %s135_s23, 7  ;;  %p29_p2 = scmp.ge.s32.totalorder %s28_s25, 3 }
  0x16   : > { %p2089_p1 = pneg %p2371_p12  ;;  %s2159_s29 = scalar_lea.hbm %s3338_s0, 16 }
  0x17   : > { %p2160_p4 = scmp.ne.s32.totalorder %s3338_s0, %s2159_s29  ;;  %p2166_p5 = scmp.lt.u32.totalorder %s2159_s29, %s3338_s0 }
  0x18   : > { %p2090_p0 = pnand %p2089_p1, %p2351_p3 }
  0x1a   : > { %p2161_p6 = pneg %p2090_p0 }
  0x1c   : > { %p2162_p10 = pnand %p2161_p6, %p2160_p4 }
  0x1e   : > { %p2163_p11 = pneg %p2162_p10 }
  0x20   : > { %p2168_p13 = pnand %p2166_p5, %p2163_p11 }
  0x22   : > { %2171 = shalt.err (!%p2168_p13)
}
  0x23   : > { %s2290_s6 = smov [#allocation3]   ;;  %s3361_s25 = smov (%p29_p2, %s28_s25), 0 }
  0x24   : > { %2092 = dma.hbm_to_smem (!%p2090_p0), %s3338_s0, 16, %s2290_s6, [#allocation6]  }
  0x25   : > { %s2079_s15 = sshll.u32 %s2284_s13, 11  ;;  %s56_s16 = ssub.s32 %s2284_s13, %s3361_s25 }
  0x26   : > { %s2406_s29 = scalar_lea.hbm %s3339_s1, %s2079_s15  ;;  %p59_p1 = scmp.eq.s32.totalorder %s56_s16, 0 }
  0x27   : > { %s139_s30 = scalar_lea.vmem [#allocation7], %s2016_s26  ;;  %s2415_s5 = scalar_lea.sflag [#allocation4], %s135_s23 }
  0x28   : > { %s147_s3 = sshll.u32 %s139_s30, 4  ;;  %s2172_s6 = scalar_lea.hbm %s2406_s29, 2048  ;;  %s2408_s3 = int_to_ptr.vmem [resolvable:$true] %s147_s3 }
  0x29   : > { %s2413_s4 = scalar_select %p59_p1, %s2276_s11, %s61_s17  }
  0x2a   : > { %p2173_p0 = scmp.ne.s32.totalorder %s2406_s29, %s2172_s6  ;;  %p2174_p2 = pneg %p2379_p7 }
  0x2b   : > { %s2177_s26 = scalar_lea.hbm %s3339_s1, 6144  ;;  %p2178_p10 = scmp.lt.u32.totalorder %s2406_s29, %s3339_s1 }
  0x2c   : > { %p2175_p4 = pnand %p2174_p2, %p2173_p0  ;;  %p2179_p11 = scmp.lt.u32.totalorder %s2177_s26, %s2172_s6 }
  0x2d   : > { %p2181_p13 = scmp.lt.u32.totalorder %s2172_s6, %s2406_s29 }
  0x2e   : > { %p2176_p6 = pneg %p2175_p4  ;;  %p2180_p5 = por %p2179_p11, %p2178_p10 }
  0x30   : > { %p2182_p1 = por %p2181_p13, %p2180_p5 }
  0x32   : > { %p2183_p9 = pnand %p2182_p1, %p2176_p6 }
  0x34   : > { %2186 = shalt.err (!%p2183_p9)
}
  0x35   : > { %s2187_s17 = scalar_lea.vmem %s2408_s3, 2048  ;;  %s2291_s23 = smov [#allocation7]  }
  0x36   : > { %p2188_p0 = scmp.ne.s32.totalorder %s2408_s3, %s2187_s17  ;;  %s2192_s27 = sshll.u32 %s2291_s23, 4  ;;  %s2193_s27 = int_to_ptr.vmem [resolvable:$false] %s2192_s27 }
  0x37   : > { %s2194_s28 = scalar_lea.vmem %s2193_s27, 4096  ;;  %p2195_p3 = scmp.lt.s32.totalorder %s2408_s3, %s2193_s27 }
  0x38   : > { %p2190_p4 = pnand %p2188_p0, %p2174_p2  ;;  %p2196_p10 = scmp.lt.s32.totalorder %s2194_s28, %s2187_s17 }
  0x3a   : > { %p2191_p8 = pneg %p2190_p4  ;;  %p2197_p11 = por %p2196_p10, %p2195_p3 }
  0x3c   : > { %p2198_p5 = pnand %p2197_p11, %p2191_p8 }
  0x3e   : > { %2201 = shalt.err (!%p2198_p5)
}
  0x3f   : > { %s2292_s30 = smov 128   ;;  %s2293_s6 = smov 8  }
  0x40   : > { %2096 = dma.hbm_to_vmem [thread:$0]  (!%p2379_p7), %s2406_s29, 2048, %s2408_s3, %s2415_s5, %s2292_s30, %s2292_s30, %s2293_s6  }
  0x41   : > { %159 = sbr.rel (%p2371_p12) target bundleno = 1139 (0x473), region = 28  ;;  %p3351_p9 = scmp.ne.s32.totalorder (!%p2371_p12), %s3345_s18, 0 }
  0x48   : > { %2255 = dma.done.wait (%p3351_p9), [#allocation6], 16  }
  0x49   : > { %2257 = vsyncadd (%p3351_p9), [#allocation6], 4294967280  ;;  %s2450_s7 = sand.u32 1, %s2272_s10   ;;  %p3352_p3 = scmp.ne.s32.totalorder %s3346_s19, 0 }
  0x4a   : > { %s2021_s8 = sshll.u32 %s2450_s7, 7  ;;  %s166_s26 = scalar_lea.sflag [#allocation4], %s2450_s7 }
  0x4b   : > { %s2454_s15 = scalar_lea.vmem [#allocation7], %s2021_s8 }
  0x4c   : > { %2259 = dma.done.wait (%p3352_p3), %s166_s26, 2048  }
  0x4d   : > { %2261 = vsyncadd (%p3352_p3), %s166_s26, 4294965248 }
  0x4e   : > { %174 = sfence }
  0x4f   : > { %s2460_s22 = scalar_lea.vmem [#allocation8], %s2021_s8  ;;  %p2023_p7 = scmp.ne.s32.totalorder %s2280_s12, 0 }
  0x50   : > { %v2294_v0 = vmov (!%p2023_p7), 0.0  }
  0x51   : > { %196 = sbr.rel (%p2023_p7) target bundleno = 88 (0x58), region = 40  ;;  %197 = vst [vmem:[#allocation2] sm:$0xf] (!%p2023_p7), %v2294_v0 }
  0x58 PF: > { %s198_s18 = sld [smem:[#allocation3]]  ;;  %s2024_s24 = sld [smem:[#allocation3 + $0x1]]  ;;  %v208_v1 = vld [vmem:[#allocation2] sm:$0x1]  ;;  %v209_v2 = vld [vmem:[#allocation2 + $0x1] sm:$0x1] }
  0x59   : > { %s2025_s29 = sld [smem:[#allocation3 + $0x2]]  ;;  %s2026_s3 = sld [smem:[#allocation3 + $0x3]]  ;;  %v212_v3 = vld [vmem:[%s2454_s15] sm:$0xff]  ;;  %vm216_vm0 = vcmask 1040384   ;;  %v219_v4 = vrot.slane %v208_v1, 7  ;;  %vm224_vm1 = vcmask 1041408  }
  0x5a   : > { %s2027_s5 = sld [smem:[#allocation3 + $0x4]]  ;;  %v2029_v5 = vld [vmem:[%s2454_s15 + $0x8] sm:$0xff]  ;;  %v214_v6 = vrot.slane %v212_v3, 7  ;;  %v221_v7 = vrot.slane %v212_v3, 6  ;;  %v210_v12 = vld [vmem:[#allocation2 + $0x2] sm:$0x1] }
  0x5b   : > { %v223_v8 = vsel %vm216_vm0, %v209_v2, %v219_v4  ;;  %v323_v9 = vrot.slane %v2029_v5, 7  ;;  %v2479_v19 = vld [vmem:[%s2454_s15 + $0x10] sm:$0xff]  ;;  %v211_v21 = vld [vmem:[#allocation2 + $0x3] sm:$0x1]  ;;  %v326_v26 = vrot.slane %v2029_v5, 6  ;;  %vm307_vm2 = vcmask 1042432  }
  0x5c   : > { %v217_v13 = vsel %vm216_vm0, %v208_v1, %v214_v6  ;;  %v225_v14 = vsel %vm224_vm1, %v223_v8, %v221_v7  ;;  %v428_v29 = vrot.slane %v2479_v19, 7  ;;  %v431_v30 = vrot.slane %v2479_v19, 6  ;;  %s2080_s19 = sshll.u32 %s2280_s12, 11  ;;  %s1914_s16 = sshll.u32 %s2460_s22, 4  ;;  %s3289_s16 = int_to_ptr.vmem [resolvable:$true] %s1914_s16 }
  0x5d   : > { %v325_v23 = vsel %vm216_vm0, %v214_v6, %v323_v9  ;;  %v328_v33 = vsel %vm224_vm1, %v221_v7, %v326_v26  ;;  %vm309_vm3 = vcmask 1043456   ;;  %vm311_vm4 = vcmask 1044480   ;;  %s3287_s27 = scalar_lea.hbm %s3340_s2, %s2080_s19  ;;  %s1900_s28 = scalar_lea.sflag [#allocation5], %s2450_s7 }
  0x5e   : > { %v2466_v10 = vstv %s198_s18  ;;  %v2468_v11 = vstv %s2024_s24  ;;  %v430_v37 = vsel %vm216_vm0, %v323_v9, %v428_v29  ;;  %v433_v38 = vsel %vm224_vm1, %v326_v26, %v431_v30  ;;  %s2202_s30 = scalar_lea.vmem %s3289_s16, 2048  ;;  %p3353_p12 = scmp.ne.s32.totalorder %s3347_s20, 0 }
  0x5f   : > { %v2472_v15 = vstv %s2025_s29  ;;  %v2474_v16 = vstv %s2026_s3  ;;  %v226_v17 = vmul.f32 %v212_v3, %v2466_v10  ;;  %v227_v18 = vmul.f32 %v217_v13, %v2468_v11  ;;  %p2203_p8 = scmp.ne.s32.totalorder %s3289_s16, %s2202_s30  ;;  %s2295_s12 = smov [#allocation8]  }
  0x60   : > { %v2481_v20 = vstv %s2027_s5  ;;  %v229_v22 = vmul.f32 %v225_v14, %v2472_v15  ;;  %v231_v25 = vmul.f32 %v210_v12, %v2474_v16  ;;  %v329_v27 = vmul.f32 %v2029_v5, %v2466_v10  ;;  %s2206_s6 = sshll.u32 %s2295_s12, 4  ;;  %s2207_s6 = int_to_ptr.vmem [resolvable:$false] %s2206_s6 }
  0x61   : > { %v228_v24 = vadd.f32 %v227_v18, %v226_v17  ;;  %v330_v28 = vmul.f32 %v325_v23, %v2468_v11  ;;  %v233_v32 = vmul.f32 %v211_v21, %v2481_v20  ;;  %v434_v34 = vmul.f32 %v2479_v19, %v2466_v10  ;;  %p2204_p2 = pnand %p2203_p8, %p3353_p12  ;;  %s2208_s8 = scalar_lea.vmem %s2207_s6, 4096 }
  0x62   : > { %v332_v36 = vmul.f32 %v328_v33, %v2472_v15  ;;  %v435_v40 = vmul.f32 %v430_v37, %v2468_v11  ;;  %v437_v41 = vmul.f32 %v433_v38, %v2472_v15  ;;  %v240_v44 = vmul.f32 %v210_v12, %v2481_v20  ;;  %p2209_p13 = scmp.lt.s32.totalorder %s3289_s16, %s2207_s6  ;;  %p2210_p1 = scmp.lt.s32.totalorder %s2208_s8, %s2202_s30 }
  0x63   : > { %v2490_v31 = vadd.f32 %v229_v22, %v228_v24  ;;  %v331_v35 = vadd.f32 %v330_v28, %v329_v27  ;;  %vm313_vm5 = vcmask 1045504   ;;  %vm315_vm6 = vcmask 1046528   ;;  %p2205_p6 = pneg %p2204_p2 }
  0x64   : > { %v436_v45 = vadd.f32 %v435_v40, %v434_v34  ;;  %v242_v49 = vrot.slane %v240_v44, 7  ;;  %p2211_p0 = por %p2210_p1, %p2209_p13 }
  0x65   : > { %v232_v39 = vsub.f32 %v2490_v31, %v231_v25  ;;  %v2506_v42 = vadd.f32 %v332_v36, %v331_v35  ;;  %v2536_v36 = vld [vmem:[%s2454_s15 + $0x18] sm:$0xff] }
  0x66   : > { %v2510_v47 = vadd.f32 %v437_v41, %v436_v45  ;;  %v533_v37 = vrot.slane %v2536_v36, 7  ;;  %v536_v41 = vrot.slane %v2536_v36, 6  ;;  %v539_v45 = vmul.f32 %v2536_v36, %v2466_v10  ;;  %p2212_p4 = pnand %p2211_p0, %p2205_p6 }
  0x67   : > { %v234_v43 = vsub.f32 %v232_v39, %v233_v32 }
  0x68   : > { %v535_v40 = vsel %vm216_vm0, %v428_v29, %v533_v37 }
  0x69   : > { %v235_v46 = vmul.f32 %v234_v43, %v2474_v16  ;;  %v250_v52 = vmul.f32 %v234_v43, %v2481_v20 }
  0x6b   : > { %v237_v48 = vrot.slane %v235_v46, 7  ;;  %v252_v55 = vrot.slane %v250_v52, 6  ;;  %v538_v46 = vsel %vm224_vm1, %v431_v30, %v536_v41 }
  0x6d   : > { %v239_v50 = vsub.f32 %v2490_v31, %v237_v48 }
  0x6f   : > { %v244_v51 = vsub.f32 %v239_v50, %v242_v49 }
  0x71   : > { %v245_v53 = vmul.f32 %v244_v51, %v2474_v16  ;;  %v260_v58 = vmul.f32 %v244_v51, %v2481_v20  ;;  %v305_v17 = vsel %vm216_vm0, %v234_v43, %v244_v51  ;;  %v542_v51 = vmul.f32 %v538_v46, %v2472_v15 }
  0x73   : > { %v247_v54 = vrot.slane %v245_v53, 7  ;;  %v262_v61 = vrot.slane %v260_v58, 6 }
  0x75   : > { %v249_v56 = vsub.f32 %v2490_v31, %v247_v54 }
  0x77   : > { %v254_v57 = vsub.f32 %v249_v56, %v252_v55 }
  0x79   : > { %v255_v59 = vmul.f32 %v254_v57, %v2474_v16  ;;  %v270_v0 = vmul.f32 %v254_v57, %v2481_v20  ;;  %v306_v21 = vsel %vm224_vm1, %v305_v17, %v254_v57 }
  0x7b   : > { %v257_v60 = vrot.slane %v255_v59, 7  ;;  %v272_v3 = vrot.slane %v270_v0, 6 }
  0x7d   : > { %v259_v62 = vsub.f32 %v2490_v31, %v257_v60 }
  0x7f   : > { %v264_v63 = vsub.f32 %v259_v62, %v262_v61 }
  0x81   : > { %v265_v1 = vmul.f32 %v264_v63, %v2474_v16  ;;  %v280_v6 = vmul.f32 %v264_v63, %v2481_v20  ;;  %v308_v25 = vsel %vm307_vm2, %v306_v21, %v264_v63 }
  0x83   : > { %v267_v2 = vrot.slane %v265_v1, 7  ;;  %v282_v9 = vrot.slane %v280_v6, 6 }
  0x85   : > { %v269_v4 = vsub.f32 %v2490_v31, %v267_v2 }
  0x87   : > { %v274_v5 = vsub.f32 %v269_v4, %v272_v3 }
  0x89   : > { %v275_v7 = vmul.f32 %v274_v5, %v2474_v16  ;;  %v290_v14 = vmul.f32 %v274_v5, %v2481_v20  ;;  %v310_v28 = vsel %vm309_vm3, %v308_v25, %v274_v5 }
  0x8b   : > { %v277_v8 = vrot.slane %v275_v7, 7  ;;  %v292_v23 = vrot.slane %v290_v14, 6 }
  0x8d   : > { %v279_v12 = vsub.f32 %v2490_v31, %v277_v8 }
  0x8f   : > { %v284_v13 = vsub.f32 %v279_v12, %v282_v9 }
  0x91   : > { %v285_v18 = vmul.f32 %v284_v13, %v2474_v16  ;;  %v300_v27 = vmul.f32 %v284_v13, %v2481_v20  ;;  %v312_v35 = vsel %vm311_vm4, %v310_v28, %v284_v13 }
  0x93   : > { %v287_v22 = vrot.slane %v285_v18, 7  ;;  %v302_v34 = vrot.slane %v300_v27, 6 }
  0x95   : > { %v289_v24 = vsub.f32 %v2490_v31, %v287_v22 }
  0x97   : > { %v294_v26 = vsub.f32 %v289_v24, %v292_v23 }
  0x99   : > { %v295_v32 = vmul.f32 %v294_v26, %v2474_v16  ;;  %v314_v39 = vsel %vm313_vm5, %v312_v35, %v294_v26  ;;  %v339_v44 = vmul.f32 %v294_v26, %v2481_v20 }
  0x9b   : > { %v297_v33 = vrot.slane %v295_v32, 7  ;;  %v341_v53 = vrot.slane %v339_v44, 6 }
  0x9d   : > { %v299_v38 = vsub.f32 %v2490_v31, %v297_v33  ;;  %v540_v31 = vmul.f32 %v535_v40, %v2468_v11 }
  0x9f   : > { %v304_v43 = vsub.f32 %v299_v38, %v302_v34  ;;  %v541_v49 = vadd.f32 %v540_v31, %v539_v45 }
  0xa1   : > { %v316_v48 = vsel %vm315_vm6, %v314_v39, %v304_v43  ;;  %v334_v29 = vmul.f32 %v304_v43, %v2474_v16  ;;  %v2560_v54 = vadd.f32 %v542_v51, %v541_v49  ;;  %v349_v19 = vmul.f32 %v304_v43, %v2481_v20 }
  0xa2   : > { %v2028_v50 = vclamps-f32 %v316_v48, 1.0 }
  0xa3   : > { %v336_v52 = vrot.slane %v334_v29, 7  ;;  %v351_v58 = vrot.slane %v349_v19, 6  ;;  %v2589_v29 = vld [vmem:[%s2454_s15 + $0x20] sm:$0xff] }
  0xa4   : > { %319 = vst [vmem:[%s2460_s22] sm:$0xff] %v2028_v50  ;;  %v638_v49 = vrot.slane %v2589_v29, 7  ;;  %v644_v19 = vmul.f32 %v2589_v29, %v2466_v10 }
  0xa5   : > { %v338_v55 = vsub.f32 %v2506_v42, %v336_v52 }
  0xa6   : > { %v640_v52 = vsel %vm216_vm0, %v533_v37, %v638_v49 }
  0xa7   : > { %v343_v56 = vsub.f32 %v338_v55, %v341_v53  ;;  %v641_v53 = vrot.slane %v2589_v29, 6 }
  0xa9   : > { %v344_v30 = vmul.f32 %v343_v56, %v2474_v16  ;;  %v359_v61 = vmul.f32 %v343_v56, %v2481_v20 }
  0xab   : > { %v346_v57 = vrot.slane %v344_v30, 7  ;;  %v361_v0 = vrot.slane %v359_v61, 6  ;;  %v645_v30 = vmul.f32 %v640_v52, %v2468_v11 }
  0xad   : > { %v348_v59 = vsub.f32 %v2506_v42, %v346_v57 }
  0xaf   : > { %v353_v60 = vsub.f32 %v348_v59, %v351_v58  ;;  %v646_v58 = vadd.f32 %v645_v30, %v644_v19 }
  0xb1   : > { %v354_v62 = vmul.f32 %v353_v60, %v2474_v16  ;;  %v369_v3 = vmul.f32 %v353_v60, %v2481_v20  ;;  %v414_v28 = vsel %vm216_vm0, %v343_v56, %v353_v60 }
  0xb3   : > { %v356_v63 = vrot.slane %v354_v62, 7  ;;  %v371_v6 = vrot.slane %v369_v3, 6 }
  0xb5   : > { %v358_v1 = vsub.f32 %v2506_v42, %v356_v63 }
  0xb7   : > { %v363_v2 = vsub.f32 %v358_v1, %v361_v0 }
  0xb9   : > { %v364_v4 = vmul.f32 %v363_v2, %v2474_v16  ;;  %v379_v9 = vmul.f32 %v363_v2, %v2481_v20  ;;  %v415_v33 = vsel %vm224_vm1, %v414_v28, %v363_v2 }
  0xbb   : > { %v366_v5 = vrot.slane %v364_v4, 7  ;;  %v381_v14 = vrot.slane %v379_v9, 6 }
  0xbd   : > { %v368_v7 = vsub.f32 %v2506_v42, %v366_v5 }
  0xbf   : > { %v373_v8 = vsub.f32 %v368_v7, %v371_v6 }
  0xc1   : > { %v374_v12 = vmul.f32 %v373_v8, %v2474_v16  ;;  %v389_v21 = vmul.f32 %v373_v8, %v2481_v20  ;;  %v416_v39 = vsel %vm307_vm2, %v415_v33, %v373_v8 }
  0xc3   : > { %v376_v13 = vrot.slane %v374_v12, 7  ;;  %v391_v24 = vrot.slane %v389_v21, 6 }
  0xc5   : > { %v378_v17 = vsub.f32 %v2506_v42, %v376_v13 }
  0xc7   : > { %v383_v18 = vsub.f32 %v378_v17, %v381_v14 }
  0xc9   : > { %v384_v22 = vmul.f32 %v383_v18, %v2474_v16  ;;  %v399_v27 = vmul.f32 %v383_v18, %v2481_v20  ;;  %v417_v44 = vsel %vm309_vm3, %v416_v39, %v383_v18 }
  0xcb   : > { %v386_v23 = vrot.slane %v384_v22, 7  ;;  %v401_v35 = vrot.slane %v399_v27, 6 }
  0xcd   : > { %v388_v25 = vsub.f32 %v2506_v42, %v386_v23 }
  0xcf   : > { %v393_v26 = vsub.f32 %v388_v25, %v391_v24 }
  0xd1   : > { %v394_v32 = vmul.f32 %v393_v26, %v2474_v16  ;;  %v409_v43 = vmul.f32 %v393_v26, %v2481_v20  ;;  %v418_v48 = vsel %vm311_vm4, %v417_v44, %v393_v26 }
  0xd3   : > { %v396_v34 = vrot.slane %v394_v32, 7  ;;  %v411_v46 = vrot.slane %v409_v43, 6 }
  0xd5   : > { %v398_v38 = vsub.f32 %v2506_v42, %v396_v34 }
  0xd7   : > { %v403_v40 = vsub.f32 %v398_v38, %v401_v35 }
  0xd9   : > { %v404_v45 = vmul.f32 %v403_v40, %v2474_v16  ;;  %v419_v51 = vsel %vm313_vm5, %v418_v48, %v403_v40  ;;  %v444_v56 = vmul.f32 %v403_v40, %v2481_v20 }
  0xdb   : > { %v406_v31 = vrot.slane %v404_v45, 7  ;;  %v446_v62 = vrot.slane %v444_v56, 6 }
  0xdd   : > { %v408_v50 = vsub.f32 %v2506_v42, %v406_v31  ;;  %v643_v42 = vsel %vm224_vm1, %v536_v41, %v641_v53 }
  0xde   : > { %v647_v60 = vmul.f32 %v643_v42, %v2472_v15 }
  0xdf   : > { %v413_v55 = vsub.f32 %v408_v50, %v411_v46 }
  0xe0   : > { %v2613_v63 = vadd.f32 %v647_v60, %v646_v58  ;;  %v2643_v58 = vld [vmem:[%s2454_s15 + $0x28] sm:$0xff] }
  0xe1   : > { %v420_v57 = vsel %vm315_vm6, %v419_v51, %v413_v55  ;;  %v439_v37 = vmul.f32 %v413_v55, %v2474_v16  ;;  %v454_v36 = vmul.f32 %v413_v55, %v2481_v20 }
  0xe2   : > { %v2030_v59 = vclamps-f32 %v420_v57, 1.0 }
  0xe3   : > { %v441_v61 = vrot.slane %v439_v37, 7  ;;  %v456_v3 = vrot.slane %v454_v36, 6  ;;  %v749_v36 = vmul.f32 %v2643_v58, %v2466_v10 }
  0xe4   : > { %2031 = vst [vmem:[%s2460_s22 + $0x8] sm:$0xff] %v2030_v59  ;;  %v743_v59 = vrot.slane %v2643_v58, 7 }
  0xe5   : > { %v443_v0 = vsub.f32 %v2510_v47, %v441_v61 }
  0xe6   : > { %v745_v61 = vsel %vm216_vm0, %v638_v49, %v743_v59 }
  0xe7   : > { %v448_v1 = vsub.f32 %v443_v0, %v446_v62  ;;  %v746_v62 = vrot.slane %v2643_v58, 6 }
  0xe9   : > { %v449_v41 = vmul.f32 %v448_v1, %v2474_v16  ;;  %v464_v6 = vmul.f32 %v448_v1, %v2481_v20 }
  0xeb   : > { %v451_v2 = vrot.slane %v449_v41, 7  ;;  %v466_v12 = vrot.slane %v464_v6, 6  ;;  %v750_v41 = vmul.f32 %v745_v61, %v2468_v11 }
  0xed   : > { %v453_v4 = vsub.f32 %v2510_v47, %v451_v2 }
  0xef   : > { %v458_v5 = vsub.f32 %v453_v4, %v456_v3  ;;  %v751_v3 = vadd.f32 %v750_v41, %v749_v36 }
  0xf1   : > { %v459_v7 = vmul.f32 %v458_v5, %v2474_v16  ;;  %v519_v8 = vsel %vm216_vm0, %v448_v1, %v458_v5  ;;  %v474_v17 = vmul.f32 %v458_v5, %v2481_v20 }
  0xf3   : > { %v461_v9 = vrot.slane %v459_v7, 7  ;;  %v476_v23 = vrot.slane %v474_v17, 6 }
  0xf5   : > { %v463_v13 = vsub.f32 %v2510_v47, %v461_v9 }
  0xf7   : > { %v468_v14 = vsub.f32 %v463_v13, %v466_v12 }
  0xf9   : > { %v469_v18 = vmul.f32 %v468_v14, %v2474_v16  ;;  %v520_v21 = vsel %vm224_vm1, %v519_v8, %v468_v14  ;;  %v484_v26 = vmul.f32 %v468_v14, %v2481_v20 }
  0xfb   : > { %v471_v22 = vrot.slane %v469_v18, 7  ;;  %v486_v33 = vrot.slane %v484_v26, 6 }
  0xfd   : > { %v473_v24 = vsub.f32 %v2510_v47, %v471_v22 }
  0xff   : > { %v478_v25 = vsub.f32 %v473_v24, %v476_v23 }
 0x101   : > { %v479_v27 = vmul.f32 %v478_v25, %v2474_v16  ;;  %v521_v28 = vsel %vm307_vm2, %v520_v21, %v478_v25  ;;  %v494_v38 = vmul.f32 %v478_v25, %v2481_v20 }
 0x103   : > { %v481_v32 = vrot.slane %v479_v27, 7  ;;  %v496_v44 = vrot.slane %v494_v38, 6 }
 0x105   : > { %v483_v34 = vsub.f32 %v2510_v47, %v481_v32 }
 0x107   : > { %v488_v35 = vsub.f32 %v483_v34, %v486_v33 }
 0x109   : > { %v489_v39 = vmul.f32 %v488_v35, %v2474_v16  ;;  %v522_v40 = vsel %vm309_vm3, %v521_v28, %v488_v35  ;;  %v504_v46 = vmul.f32 %v488_v35, %v2481_v20 }
 0x10b   : > { %v491_v43 = vrot.slane %v489_v39, 7  ;;  %v506_v52 = vrot.slane %v504_v46, 6 }
 0x10d   : > { %v493_v45 = vsub.f32 %v2510_v47, %v491_v43 }
 0x10f   : > { %v498_v31 = vsub.f32 %v493_v45, %v496_v44 }
 0x111   : > { %v499_v48 = vmul.f32 %v498_v31, %v2474_v16  ;;  %v523_v50 = vsel %vm311_vm4, %v522_v40, %v498_v31  ;;  %v514_v19 = vmul.f32 %v498_v31, %v2481_v20 }
 0x113   : > { %v501_v51 = vrot.slane %v499_v48, 7  ;;  %v516_v37 = vrot.slane %v514_v19, 6 }
 0x115   : > { %v503_v55 = vsub.f32 %v2510_v47, %v501_v51 }
 0x117   : > { %v508_v56 = vsub.f32 %v503_v55, %v506_v52 }
 0x119   : > { %v509_v30 = vmul.f32 %v508_v56, %v2474_v16  ;;  %v524_v42 = vsel %vm313_vm5, %v523_v50, %v508_v56  ;;  %v549_v1 = vmul.f32 %v508_v56, %v2481_v20 }
 0x11b   : > { %v511_v57 = vrot.slane %v509_v30, 7  ;;  %v551_v7 = vrot.slane %v549_v1, 6 }
 0x11d   : > { %v513_v60 = vsub.f32 %v2510_v47, %v511_v57  ;;  %v748_v47 = vsel %vm224_vm1, %v641_v53, %v746_v62 }
 0x11e   : > { %v752_v5 = vmul.f32 %v748_v47, %v2472_v15 }
 0x11f   : > { %v518_v0 = vsub.f32 %v513_v60, %v516_v37 }
 0x120   : > { %v2666_v8 = vadd.f32 %v752_v5, %v751_v3  ;;  %v2696_v3 = vld [vmem:[%s2454_s15 + $0x30] sm:$0xff] }
 0x121   : > { %v525_v2 = vsel %vm315_vm6, %v524_v42, %v518_v0  ;;  %v544_v49 = vmul.f32 %v518_v0, %v2474_v16  ;;  %v559_v29 = vmul.f32 %v518_v0, %v2481_v20 }
 0x122   : > { %v2033_v4 = vclamps-f32 %v525_v2, 1.0 }
 0x123   : > { %v546_v6 = vrot.slane %v544_v49, 7  ;;  %v561_v14 = vrot.slane %v559_v29, 6  ;;  %v854_v29 = vmul.f32 %v2696_v3, %v2466_v10 }
 0x124   : > { %2034 = vst [vmem:[%s2460_s22 + $0x10] sm:$0xff] %v2033_v4  ;;  %v848_v4 = vrot.slane %v2696_v3, 7 }
 0x125   : > { %v548_v9 = vsub.f32 %v2560_v54, %v546_v6 }
 0x126   : > { %v850_v6 = vsel %vm216_vm0, %v743_v59, %v848_v4 }
 0x127   : > { %v553_v12 = vsub.f32 %v548_v9, %v551_v7  ;;  %v851_v7 = vrot.slane %v2696_v3, 6 }
 0x129   : > { %v554_v53 = vmul.f32 %v553_v12, %v2474_v16  ;;  %v569_v21 = vmul.f32 %v553_v12, %v2481_v20 }
 0x12b   : > { %v556_v13 = vrot.slane %v554_v53, 7  ;;  %v571_v25 = vrot.slane %v569_v21, 6  ;;  %v855_v53 = vmul.f32 %v850_v6, %v2468_v11 }
 0x12d   : > { %v558_v17 = vsub.f32 %v2560_v54, %v556_v13 }
 0x12f   : > { %v563_v18 = vsub.f32 %v558_v17, %v561_v14  ;;  %v856_v14 = vadd.f32 %v855_v53, %v854_v29 }
 0x131   : > { %v564_v22 = vmul.f32 %v563_v18, %v2474_v16  ;;  %v624_v23 = vsel %vm216_vm0, %v553_v12, %v563_v18  ;;  %v579_v28 = vmul.f32 %v563_v18, %v2481_v20 }
 0x133   : > { %v566_v24 = vrot.slane %v564_v22, 7  ;;  %v581_v35 = vrot.slane %v579_v28, 6 }
 0x135   : > { %v568_v26 = vsub.f32 %v2560_v54, %v566_v24 }
 0x137   : > { %v573_v27 = vsub.f32 %v568_v26, %v571_v25 }
 0x139   : > { %v574_v32 = vmul.f32 %v573_v27, %v2474_v16  ;;  %v625_v33 = vsel %vm224_vm1, %v624_v23, %v573_v27  ;;  %v589_v40 = vmul.f32 %v573_v27, %v2481_v20 }
 0x13b   : > { %v576_v34 = vrot.slane %v574_v32, 7  ;;  %v591_v31 = vrot.slane %v589_v40, 6 }
 0x13d   : > { %v578_v38 = vsub.f32 %v2560_v54, %v576_v34 }
 0x13f   : > { %v583_v39 = vsub.f32 %v578_v38, %v581_v35 }
 0x141   : > { %v584_v43 = vmul.f32 %v583_v39, %v2474_v16  ;;  %v626_v44 = vsel %vm307_vm2, %v625_v33, %v583_v39  ;;  %v599_v50 = vmul.f32 %v583_v39, %v2481_v20 }
 0x143   : > { %v586_v45 = vrot.slane %v584_v43, 7  ;;  %v601_v56 = vrot.slane %v599_v50, 6 }
 0x145   : > { %v588_v46 = vsub.f32 %v2560_v54, %v586_v45 }
 0x147   : > { %v593_v48 = vsub.f32 %v588_v46, %v591_v31 }
 0x149   : > { %v594_v51 = vmul.f32 %v593_v48, %v2474_v16  ;;  %v627_v52 = vsel %vm309_vm3, %v626_v44, %v593_v48  ;;  %v609_v42 = vmul.f32 %v593_v48, %v2481_v20 }
 0x14b   : > { %v596_v55 = vrot.slane %v594_v51, 7  ;;  %v611_v61 = vrot.slane %v609_v42, 6 }
 0x14d   : > { %v598_v19 = vsub.f32 %v2560_v54, %v596_v55 }
 0x14f   : > { %v603_v30 = vsub.f32 %v598_v19, %v601_v56 }
 0x151   : > { %v604_v57 = vmul.f32 %v603_v30, %v2474_v16  ;;  %v628_v37 = vsel %vm311_vm4, %v627_v52, %v603_v30  ;;  %v619_v36 = vmul.f32 %v603_v30, %v2481_v20 }
 0x153   : > { %v606_v60 = vrot.slane %v604_v57, 7  ;;  %v621_v49 = vrot.slane %v619_v36, 6 }
 0x155   : > { %v608_v0 = vsub.f32 %v2560_v54, %v606_v60 }
 0x157   : > { %v613_v1 = vsub.f32 %v608_v0, %v611_v61 }
 0x159   : > { %v614_v41 = vmul.f32 %v613_v1, %v2474_v16  ;;  %v629_v47 = vsel %vm313_vm5, %v628_v37, %v613_v1  ;;  %v654_v12 = vmul.f32 %v613_v1, %v2481_v20 }
 0x15b   : > { %v616_v2 = vrot.slane %v614_v41, 7  ;;  %v656_v22 = vrot.slane %v654_v12, 6 }
 0x15d   : > { %v618_v5 = vsub.f32 %v2560_v54, %v616_v2  ;;  %v853_v54 = vsel %vm224_vm1, %v746_v62, %v851_v7 }
 0x15e   : > { %v857_v18 = vmul.f32 %v853_v54, %v2472_v15 }
 0x15f   : > { %v623_v9 = vsub.f32 %v618_v5, %v621_v49 }
 0x160   : > { %v2719_v23 = vadd.f32 %v857_v18, %v856_v14  ;;  %v2749_v14 = vld [vmem:[%s2454_s15 + $0x38] sm:$0xff] }
 0x161   : > { %v630_v13 = vsel %vm315_vm6, %v629_v47, %v623_v9  ;;  %v649_v59 = vmul.f32 %v623_v9, %v2474_v16  ;;  %v664_v58 = vmul.f32 %v623_v9, %v2481_v20 }
 0x162   : > { %v2036_v17 = vclamps-f32 %v630_v13, 1.0 }
 0x163   : > { %v651_v21 = vrot.slane %v649_v59, 7  ;;  %v666_v27 = vrot.slane %v664_v58, 6  ;;  %v959_v58 = vmul.f32 %v2749_v14, %v2466_v10 }
 0x164   : > { %2037 = vst [vmem:[%s2460_s22 + $0x18] sm:$0xff] %v2036_v17  ;;  %v953_v17 = vrot.slane %v2749_v14, 7 }
 0x165   : > { %v653_v24 = vsub.f32 %v2613_v63, %v651_v21 }
 0x166   : > { %v955_v21 = vsel %vm216_vm0, %v848_v4, %v953_v17 }
 0x167   : > { %v658_v25 = vsub.f32 %v653_v24, %v656_v22  ;;  %v956_v22 = vrot.slane %v2749_v14, 6 }
 0x169   : > { %v659_v62 = vmul.f32 %v658_v25, %v2474_v16  ;;  %v674_v33 = vmul.f32 %v658_v25, %v2481_v20 }
 0x16b   : > { %v661_v26 = vrot.slane %v659_v62, 7  ;;  %v676_v39 = vrot.slane %v674_v33, 6  ;;  %v960_v62 = vmul.f32 %v955_v21, %v2468_v11 }
 0x16d   : > { %v663_v28 = vsub.f32 %v2613_v63, %v661_v26 }
 0x16f   : > { %v668_v32 = vsub.f32 %v663_v28, %v666_v27  ;;  %v961_v27 = vadd.f32 %v960_v62, %v959_v58 }
 0x171   : > { %v669_v34 = vmul.f32 %v668_v32, %v2474_v16  ;;  %v729_v35 = vsel %vm216_vm0, %v658_v25, %v668_v32  ;;  %v684_v44 = vmul.f32 %v668_v32, %v2481_v20 }
 0x173   : > { %v671_v38 = vrot.slane %v669_v34, 7  ;;  %v686_v48 = vrot.slane %v684_v44, 6 }
 0x175   : > { %v673_v40 = vsub.f32 %v2613_v63, %v671_v38 }
 0x177   : > { %v678_v43 = vsub.f32 %v673_v40, %v676_v39 }
 0x179   : > { %v679_v45 = vmul.f32 %v678_v43, %v2474_v16  ;;  %v730_v31 = vsel %vm224_vm1, %v729_v35, %v678_v43  ;;  %v694_v52 = vmul.f32 %v678_v43, %v2481_v20 }
 0x17b   : > { %v681_v46 = vrot.slane %v679_v45, 7  ;;  %v696_v30 = vrot.slane %v694_v52, 6 }
 0x17d   : > { %v683_v50 = vsub.f32 %v2613_v63, %v681_v46 }
 0x17f   : > { %v688_v51 = vsub.f32 %v683_v50, %v686_v48 }
 0x181   : > { %v689_v55 = vmul.f32 %v688_v51, %v2474_v16  ;;  %v731_v56 = vsel %vm307_vm2, %v730_v31, %v688_v51  ;;  %v704_v37 = vmul.f32 %v688_v51, %v2481_v20 }
 0x183   : > { %v691_v19 = vrot.slane %v689_v55, 7  ;;  %v706_v1 = vrot.slane %v704_v37, 6 }
 0x185   : > { %v693_v42 = vsub.f32 %v2613_v63, %v691_v19 }
 0x187   : > { %v698_v57 = vsub.f32 %v693_v42, %v696_v30 }
 0x189   : > { %v699_v60 = vmul.f32 %v698_v57, %v2474_v16  ;;  %v732_v61 = vsel %vm309_vm3, %v731_v56, %v698_v57  ;;  %v714_v47 = vmul.f32 %v698_v57, %v2481_v20 }
 0x18b   : > { %v701_v0 = vrot.slane %v699_v60, 7  ;;  %v716_v6 = vrot.slane %v714_v47, 6 }
 0x18d   : > { %v703_v36 = vsub.f32 %v2613_v63, %v701_v0 }
 0x18f   : > { %v708_v41 = vsub.f32 %v703_v36, %v706_v1 }
 0x191   : > { %v709_v2 = vmul.f32 %v708_v41, %v2474_v16  ;;  %v733_v49 = vsel %vm311_vm4, %v732_v61, %v708_v41  ;;  %v724_v29 = vmul.f32 %v708_v41, %v2481_v20 }
 0x193   : > { %v711_v5 = vrot.slane %v709_v2, 7  ;;  %v726_v59 = vrot.slane %v724_v29, 6 }
 0x195   : > { %v713_v9 = vsub.f32 %v2613_v63, %v711_v5 }
 0x197   : > { %v718_v12 = vsub.f32 %v713_v9, %v716_v6 }
 0x199   : > { %v719_v53 = vmul.f32 %v718_v12, %v2474_v16  ;;  %v734_v54 = vsel %vm313_vm5, %v733_v49, %v718_v12  ;;  %v759_v25 = vmul.f32 %v718_v12, %v2481_v20 }
 0x19b   : > { %v721_v13 = vrot.slane %v719_v53, 7  ;;  %v761_v34 = vrot.slane %v759_v25, 6 }
 0x19d   : > { %v723_v18 = vsub.f32 %v2613_v63, %v721_v13  ;;  %v958_v63 = vsel %vm224_vm1, %v851_v7, %v956_v22 }
 0x19e   : > { %v962_v32 = vmul.f32 %v958_v63, %v2472_v15 }
 0x19f   : > { %v728_v24 = vsub.f32 %v723_v18, %v726_v59 }
 0x1a0   : > { %v2772_v35 = vadd.f32 %v962_v32, %v961_v27  ;;  %v2802_v27 = vld [vmem:[%s2454_s15 + $0x40] sm:$0xff] }
 0x1a1   : > { %v735_v26 = vsel %vm315_vm6, %v734_v54, %v728_v24  ;;  %v754_v4 = vmul.f32 %v728_v24, %v2474_v16  ;;  %v769_v3 = vmul.f32 %v728_v24, %v2481_v20 }
 0x1a2   : > { %v2039_v28 = vclamps-f32 %v735_v26, 1.0 }
 0x1a3   : > { %v756_v33 = vrot.slane %v754_v4, 7  ;;  %v771_v43 = vrot.slane %v769_v3, 6  ;;  %v1064_v3 = vmul.f32 %v2802_v27, %v2466_v10 }
 0x1a4   : > { %2040 = vst [vmem:[%s2460_s22 + $0x20] sm:$0xff] %v2039_v28  ;;  %v1058_v28 = vrot.slane %v2802_v27, 7 }
 0x1a5   : > { %v758_v38 = vsub.f32 %v2666_v8, %v756_v33 }
 0x1a6   : > { %v1060_v33 = vsel %vm216_vm0, %v953_v17, %v1058_v28 }
 0x1a7   : > { %v763_v39 = vsub.f32 %v758_v38, %v761_v34  ;;  %v1061_v34 = vrot.slane %v2802_v27, 6 }
 0x1a9   : > { %v764_v7 = vmul.f32 %v763_v39, %v2474_v16  ;;  %v779_v31 = vmul.f32 %v763_v39, %v2481_v20 }
 0x1ab   : > { %v766_v40 = vrot.slane %v764_v7, 7  ;;  %v781_v51 = vrot.slane %v779_v31, 6  ;;  %v1065_v7 = vmul.f32 %v1060_v33, %v2468_v11 }
 0x1ad   : > { %v768_v44 = vsub.f32 %v2666_v8, %v766_v40 }
 0x1af   : > { %v773_v45 = vsub.f32 %v768_v44, %v771_v43  ;;  %v1066_v43 = vadd.f32 %v1065_v7, %v1064_v3 }
 0x1b1   : > { %v774_v46 = vmul.f32 %v773_v45, %v2474_v16  ;;  %v834_v48 = vsel %vm216_vm0, %v763_v39, %v773_v45  ;;  %v789_v56 = vmul.f32 %v773_v45, %v2481_v20 }
 0x1b3   : > { %v776_v50 = vrot.slane %v774_v46, 7  ;;  %v791_v57 = vrot.slane %v789_v56, 6 }
 0x1b5   : > { %v778_v52 = vsub.f32 %v2666_v8, %v776_v50 }
 0x1b7   : > { %v783_v55 = vsub.f32 %v778_v52, %v781_v51 }
 0x1b9   : > { %v784_v19 = vmul.f32 %v783_v55, %v2474_v16  ;;  %v835_v30 = vsel %vm224_vm1, %v834_v48, %v783_v55  ;;  %v799_v61 = vmul.f32 %v783_v55, %v2481_v20 }
 0x1bb   : > { %v786_v42 = vrot.slane %v784_v19, 7  ;;  %v801_v41 = vrot.slane %v799_v61, 6 }
 0x1bd   : > { %v788_v37 = vsub.f32 %v2666_v8, %v786_v42 }
 0x1bf   : > { %v793_v60 = vsub.f32 %v788_v37, %v791_v57 }
 0x1c1   : > { %v794_v0 = vmul.f32 %v793_v60, %v2474_v16  ;;  %v836_v1 = vsel %vm307_vm2, %v835_v30, %v793_v60  ;;  %v809_v49 = vmul.f32 %v793_v60, %v2481_v20 }
 0x1c3   : > { %v796_v36 = vrot.slane %v794_v0, 7  ;;  %v811_v12 = vrot.slane %v809_v49, 6 }
 0x1c5   : > { %v798_v47 = vsub.f32 %v2666_v8, %v796_v36 }
 0x1c7   : > { %v803_v2 = vsub.f32 %v798_v47, %v801_v41 }
 0x1c9   : > { %v804_v5 = vmul.f32 %v803_v2, %v2474_v16  ;;  %v837_v6 = vsel %vm309_vm3, %v836_v1, %v803_v2  ;;  %v819_v54 = vmul.f32 %v803_v2, %v2481_v20 }
 0x1cb   : > { %v806_v9 = vrot.slane %v804_v5, 7  ;;  %v821_v21 = vrot.slane %v819_v54, 6 }
 0x1cd   : > { %v808_v29 = vsub.f32 %v2666_v8, %v806_v9 }
 0x1cf   : > { %v813_v53 = vsub.f32 %v808_v29, %v811_v12 }
 0x1d1   : > { %v814_v13 = vmul.f32 %v813_v53, %v2474_v16  ;;  %v838_v59 = vsel %vm311_vm4, %v837_v6, %v813_v53  ;;  %v829_v58 = vmul.f32 %v813_v53, %v2481_v20 }
 0x1d3   : > { %v816_v18 = vrot.slane %v814_v13, 7  ;;  %v831_v4 = vrot.slane %v829_v58, 6 }
 0x1d5   : > { %v818_v24 = vsub.f32 %v2666_v8, %v816_v18 }
 0x1d7   : > { %v823_v25 = vsub.f32 %v818_v24, %v821_v21 }
 0x1d9   : > { %v824_v62 = vmul.f32 %v823_v25, %v2474_v16  ;;  %v839_v63 = vsel %vm313_vm5, %v838_v59, %v823_v25  ;;  %v864_v39 = vmul.f32 %v823_v25, %v2481_v20 }
 0x1db   : > { %v826_v26 = vrot.slane %v824_v62, 7  ;;  %v866_v46 = vrot.slane %v864_v39, 6 }
 0x1dd   : > { %v828_v32 = vsub.f32 %v2666_v8, %v826_v26  ;;  %v1063_v8 = vsel %vm224_vm1, %v956_v22, %v1061_v34 }
 0x1de   : > { %v1067_v45 = vmul.f32 %v1063_v8, %v2472_v15 }
 0x1df   : > { %v833_v38 = vsub.f32 %v828_v32, %v831_v4 }
 0x1e0   : > { %v2825_v48 = vadd.f32 %v1067_v45, %v1066_v43  ;;  %v2855_v43 = vld [vmem:[%s2454_s15 + $0x48] sm:$0xff] }
 0x1e1   : > { %v840_v40 = vsel %vm315_vm6, %v839_v63, %v833_v38  ;;  %v859_v17 = vmul.f32 %v833_v38, %v2474_v16  ;;  %v874_v14 = vmul.f32 %v833_v38, %v2481_v20 }
 0x1e2   : > { %v2042_v44 = vclamps-f32 %v840_v40, 1.0 }
 0x1e3   : > { %v861_v31 = vrot.slane %v859_v17, 7  ;;  %v876_v55 = vrot.slane %v874_v14, 6  ;;  %v1169_v14 = vmul.f32 %v2855_v43, %v2466_v10 }
 0x1e4   : > { %2043 = vst [vmem:[%s2460_s22 + $0x28] sm:$0xff] %v2042_v44  ;;  %v1163_v44 = vrot.slane %v2855_v43, 7 }
 0x1e5   : > { %v863_v50 = vsub.f32 %v2719_v23, %v861_v31 }
 0x1e6   : > { %v1165_v31 = vsel %vm216_vm0, %v1058_v28, %v1163_v44 }
 0x1e7   : > { %v868_v51 = vsub.f32 %v863_v50, %v866_v46  ;;  %v1166_v46 = vrot.slane %v2855_v43, 6 }
 0x1e9   : > { %v869_v22 = vmul.f32 %v868_v51, %v2474_v16  ;;  %v884_v30 = vmul.f32 %v868_v51, %v2481_v20 }
 0x1eb   : > { %v871_v52 = vrot.slane %v869_v22, 7  ;;  %v886_v60 = vrot.slane %v884_v30, 6  ;;  %v1170_v22 = vmul.f32 %v1165_v31, %v2468_v11 }
 0x1ed   : > { %v873_v56 = vsub.f32 %v2719_v23, %v871_v52 }
 0x1ef   : > { %v878_v19 = vsub.f32 %v873_v56, %v876_v55  ;;  %v1171_v55 = vadd.f32 %v1170_v22, %v1169_v14 }
 0x1f1   : > { %v879_v42 = vmul.f32 %v878_v19, %v2474_v16  ;;  %v939_v57 = vsel %vm216_vm0, %v868_v51, %v878_v19  ;;  %v894_v1 = vmul.f32 %v878_v19, %v2481_v20 }
 0x1f3   : > { %v881_v37 = vrot.slane %v879_v42, 7  ;;  %v896_v2 = vrot.slane %v894_v1, 6 }
 0x1f5   : > { %v883_v61 = vsub.f32 %v2719_v23, %v881_v37 }
 0x1f7   : > { %v888_v0 = vsub.f32 %v883_v61, %v886_v60 }
 0x1f9   : > { %v889_v36 = vmul.f32 %v888_v0, %v2474_v16  ;;  %v940_v41 = vsel %vm224_vm1, %v939_v57, %v888_v0  ;;  %v904_v6 = vmul.f32 %v888_v0, %v2481_v20 }
 0x1fb   : > { %v891_v47 = vrot.slane %v889_v36, 7  ;;  %v906_v53 = vrot.slane %v904_v6, 6 }
 0x1fd   : > { %v893_v49 = vsub.f32 %v2719_v23, %v891_v47 }
 0x1ff   : > { %v898_v5 = vsub.f32 %v893_v49, %v896_v2 }
 0x201   : > { %v899_v9 = vmul.f32 %v898_v5, %v2474_v16  ;;  %v941_v12 = vsel %vm307_vm2, %v940_v41, %v898_v5  ;;  %v914_v59 = vmul.f32 %v898_v5, %v2481_v20 }
 0x203   : > { %v901_v29 = vrot.slane %v899_v9, 7  ;;  %v916_v25 = vrot.slane %v914_v59, 6 }
 0x205   : > { %v903_v54 = vsub.f32 %v2719_v23, %v901_v29 }
 0x207   : > { %v908_v13 = vsub.f32 %v903_v54, %v906_v53 }
 0x209   : > { %v909_v18 = vmul.f32 %v908_v13, %v2474_v16  ;;  %v942_v21 = vsel %vm309_vm3, %v941_v12, %v908_v13  ;;  %v924_v63 = vmul.f32 %v908_v13, %v2481_v20 }
 0x20b   : > { %v911_v24 = vrot.slane %v909_v18, 7  ;;  %v926_v33 = vrot.slane %v924_v63, 6 }
 0x20d   : > { %v913_v58 = vsub.f32 %v2719_v23, %v911_v24 }
 0x20f   : > { %v918_v62 = vsub.f32 %v913_v58, %v916_v25 }
 0x211   : > { %v919_v26 = vmul.f32 %v918_v62, %v2474_v16  ;;  %v943_v4 = vsel %vm311_vm4, %v942_v21, %v918_v62  ;;  %v934_v3 = vmul.f32 %v918_v62, %v2481_v20 }
 0x213   : > { %v921_v32 = vrot.slane %v919_v26, 7  ;;  %v936_v17 = vrot.slane %v934_v3, 6 }
 0x215   : > { %v923_v38 = vsub.f32 %v2719_v23, %v921_v32 }
 0x217   : > { %v928_v39 = vsub.f32 %v923_v38, %v926_v33 }
 0x219   : > { %v929_v7 = vmul.f32 %v928_v39, %v2474_v16  ;;  %v944_v8 = vsel %vm313_vm5, %v943_v4, %v928_v39  ;;  %v969_v51 = vmul.f32 %v928_v39, %v2481_v20 }
 0x21b   : > { %v931_v40 = vrot.slane %v929_v7, 7  ;;  %v971_v42 = vrot.slane %v969_v51, 6 }
 0x21d   : > { %v933_v45 = vsub.f32 %v2719_v23, %v931_v40  ;;  %v1168_v23 = vsel %vm224_vm1, %v1061_v34, %v1166_v46 }
 0x21e   : > { %v1172_v19 = vmul.f32 %v1168_v23, %v2472_v15 }
 0x21f   : > { %v938_v50 = vsub.f32 %v933_v45, %v936_v17 }
 0x220   : > { %v2878_v57 = vadd.f32 %v1172_v19, %v1171_v55  ;;  %v2908_v55 = vld [vmem:[%s2454_s15 + $0x50] sm:$0xff] }
 0x221   : > { %v945_v52 = vsel %vm315_vm6, %v944_v8, %v938_v50  ;;  %v964_v28 = vmul.f32 %v938_v50, %v2474_v16  ;;  %v979_v27 = vmul.f32 %v938_v50, %v2481_v20 }
 0x222   : > { %v2045_v56 = vclamps-f32 %v945_v52, 1.0 }
 0x223   : > { %v966_v30 = vrot.slane %v964_v28, 7  ;;  %v981_v0 = vrot.slane %v979_v27, 6  ;;  %v1274_v27 = vmul.f32 %v2908_v55, %v2466_v10 }
 0x224   : > { %2046 = vst [vmem:[%s2460_s22 + $0x30] sm:$0xff] %v2045_v56  ;;  %v1268_v56 = vrot.slane %v2908_v55, 7 }
 0x225   : > { %v968_v37 = vsub.f32 %v2772_v35, %v966_v30 }
 0x226   : > { %v1270_v30 = vsel %vm216_vm0, %v1163_v44, %v1268_v56 }
 0x227   : > { %v973_v60 = vsub.f32 %v968_v37, %v971_v42  ;;  %v1271_v42 = vrot.slane %v2908_v55, 6 }
 0x229   : > { %v974_v34 = vmul.f32 %v973_v60, %v2474_v16  ;;  %v989_v41 = vmul.f32 %v973_v60, %v2481_v20 }
 0x22b   : > { %v976_v61 = vrot.slane %v974_v34, 7  ;;  %v991_v5 = vrot.slane %v989_v41, 6  ;;  %v1275_v34 = vmul.f32 %v1270_v30, %v2468_v11 }
 0x22d   : > { %v978_v1 = vsub.f32 %v2772_v35, %v976_v61 }
 0x22f   : > { %v983_v36 = vsub.f32 %v978_v1, %v981_v0  ;;  %v1276_v0 = vadd.f32 %v1275_v34, %v1274_v27 }
 0x231   : > { %v984_v47 = vmul.f32 %v983_v36, %v2474_v16  ;;  %v1044_v2 = vsel %vm216_vm0, %v973_v60, %v983_v36  ;;  %v999_v12 = vmul.f32 %v983_v36, %v2481_v20 }
 0x233   : > { %v986_v49 = vrot.slane %v984_v47, 7  ;;  %v1001_v13 = vrot.slane %v999_v12, 6 }
 0x235   : > { %v988_v6 = vsub.f32 %v2772_v35, %v986_v49 }
 0x237   : > { %v993_v9 = vsub.f32 %v988_v6, %v991_v5 }
 0x239   : > { %v994_v29 = vmul.f32 %v993_v9, %v2474_v16  ;;  %v1045_v53 = vsel %vm224_vm1, %v1044_v2, %v993_v9  ;;  %v1009_v21 = vmul.f32 %v993_v9, %v2481_v20 }
 0x23b   : > { %v996_v54 = vrot.slane %v994_v29, 7  ;;  %v1011_v62 = vrot.slane %v1009_v21, 6 }
 0x23d   : > { %v998_v59 = vsub.f32 %v2772_v35, %v996_v54 }
 0x23f   : > { %v1003_v18 = vsub.f32 %v998_v59, %v1001_v13 }
 0x241   : > { %v1004_v24 = vmul.f32 %v1003_v18, %v2474_v16  ;;  %v1046_v25 = vsel %vm307_vm2, %v1045_v53, %v1003_v18  ;;  %v1019_v4 = vmul.f32 %v1003_v18, %v2481_v20 }
 0x243   : > { %v1006_v58 = vrot.slane %v1004_v24, 7  ;;  %v1021_v39 = vrot.slane %v1019_v4, 6 }
 0x245   : > { %v1008_v63 = vsub.f32 %v2772_v35, %v1006_v58 }
 0x247   : > { %v1013_v26 = vsub.f32 %v1008_v63, %v1011_v62 }
 0x249   : > { %v1014_v32 = vmul.f32 %v1013_v26, %v2474_v16  ;;  %v1047_v33 = vsel %vm309_vm3, %v1046_v25, %v1013_v26  ;;  %v1029_v8 = vmul.f32 %v1013_v26, %v2481_v20 }
 0x24b   : > { %v1016_v38 = vrot.slane %v1014_v32, 7  ;;  %v1031_v31 = vrot.slane %v1029_v8, 6 }
 0x24d   : > { %v1018_v3 = vsub.f32 %v2772_v35, %v1016_v38 }
 0x24f   : > { %v1023_v7 = vsub.f32 %v1018_v3, %v1021_v39 }
 0x251   : > { %v1024_v40 = vmul.f32 %v1023_v7, %v2474_v16  ;;  %v1048_v17 = vsel %vm311_vm4, %v1047_v33, %v1023_v7  ;;  %v1039_v14 = vmul.f32 %v1023_v7, %v2481_v20 }
 0x253   : > { %v1026_v45 = vrot.slane %v1024_v40, 7  ;;  %v1041_v28 = vrot.slane %v1039_v14, 6 }
 0x255   : > { %v1028_v50 = vsub.f32 %v2772_v35, %v1026_v45 }
 0x257   : > { %v1033_v51 = vsub.f32 %v1028_v50, %v1031_v31 }
 0x259   : > { %v1034_v22 = vmul.f32 %v1033_v51, %v2474_v16  ;;  %v1049_v23 = vsel %vm313_vm5, %v1048_v17, %v1033_v51  ;;  %v1074_v60 = vmul.f32 %v1033_v51, %v2481_v20 }
 0x25b   : > { %v1036_v52 = vrot.slane %v1034_v22, 7  ;;  %v1076_v47 = vrot.slane %v1074_v60, 6 }
 0x25d   : > { %v1038_v19 = vsub.f32 %v2772_v35, %v1036_v52  ;;  %v1273_v35 = vsel %vm224_vm1, %v1166_v46, %v1271_v42 }
 0x25e   : > { %v1277_v36 = vmul.f32 %v1273_v35, %v2472_v15 }
 0x25f   : > { %v1043_v37 = vsub.f32 %v1038_v19, %v1041_v28 }
 0x260   : > { %v2931_v2 = vadd.f32 %v1277_v36, %v1276_v0  ;;  %v2961_v0 = vld [vmem:[%s2454_s15 + $0x58] sm:$0xff] }
 0x261   : > { %v1050_v61 = vsel %vm315_vm6, %v1049_v23, %v1043_v37  ;;  %v1069_v44 = vmul.f32 %v1043_v37, %v2474_v16  ;;  %v1084_v43 = vmul.f32 %v1043_v37, %v2481_v20 }
 0x262   : > { %v2048_v1 = vclamps-f32 %v1050_v61, 1.0 }
 0x263   : > { %v1071_v41 = vrot.slane %v1069_v44, 7  ;;  %v1086_v9 = vrot.slane %v1084_v43, 6  ;;  %v1379_v43 = vmul.f32 %v2961_v0, %v2466_v10 }
 0x264   : > { %2049 = vst [vmem:[%s2460_s22 + $0x38] sm:$0xff] %v2048_v1  ;;  %v1373_v1 = vrot.slane %v2961_v0, 7 }
 0x265   : > { %v1073_v49 = vsub.f32 %v2825_v48, %v1071_v41 }
 0x266   : > { %v1375_v41 = vsel %vm216_vm0, %v1268_v56, %v1373_v1 }
 0x267   : > { %v1078_v5 = vsub.f32 %v1073_v49, %v1076_v47  ;;  %v1376_v47 = vrot.slane %v2961_v0, 6 }
 0x269   : > { %v1079_v46 = vmul.f32 %v1078_v5, %v2474_v16  ;;  %v1094_v53 = vmul.f32 %v1078_v5, %v2481_v20 }
 0x26b   : > { %v1081_v6 = vrot.slane %v1079_v46, 7  ;;  %v1096_v18 = vrot.slane %v1094_v53, 6  ;;  %v1380_v46 = vmul.f32 %v1375_v41, %v2468_v11 }
 0x26d   : > { %v1083_v12 = vsub.f32 %v2825_v48, %v1081_v6 }
 0x26f   : > { %v1088_v29 = vsub.f32 %v1083_v12, %v1086_v9  ;;  %v1381_v9 = vadd.f32 %v1380_v46, %v1379_v43 }
 0x271   : > { %v1089_v54 = vmul.f32 %v1088_v29, %v2474_v16  ;;  %v1149_v13 = vsel %vm216_vm0, %v1078_v5, %v1088_v29  ;;  %v1104_v25 = vmul.f32 %v1088_v29, %v2481_v20 }
 0x273   : > { %v1091_v59 = vrot.slane %v1089_v54, 7  ;;  %v1106_v26 = vrot.slane %v1104_v25, 6 }
 0x275   : > { %v1093_v21 = vsub.f32 %v2825_v48, %v1091_v59 }
 0x277   : > { %v1098_v24 = vsub.f32 %v1093_v21, %v1096_v18 }
 0x279   : > { %v1099_v58 = vmul.f32 %v1098_v24, %v2474_v16  ;;  %v1150_v62 = vsel %vm224_vm1, %v1149_v13, %v1098_v24  ;;  %v1114_v33 = vmul.f32 %v1098_v24, %v2481_v20 }
 0x27b   : > { %v1101_v63 = vrot.slane %v1099_v58, 7  ;;  %v1116_v7 = vrot.slane %v1114_v33, 6 }
 0x27d   : > { %v1103_v4 = vsub.f32 %v2825_v48, %v1101_v63 }
 0x27f   : > { %v1108_v32 = vsub.f32 %v1103_v4, %v1106_v26 }
 0x281   : > { %v1109_v38 = vmul.f32 %v1108_v32, %v2474_v16  ;;  %v1151_v39 = vsel %vm307_vm2, %v1150_v62, %v1108_v32  ;;  %v1124_v17 = vmul.f32 %v1108_v32, %v2481_v20 }
 0x283   : > { %v1111_v3 = vrot.slane %v1109_v38, 7  ;;  %v1126_v51 = vrot.slane %v1124_v17, 6 }
 0x285   : > { %v1113_v8 = vsub.f32 %v2825_v48, %v1111_v3 }
 0x287   : > { %v1118_v40 = vsub.f32 %v1113_v8, %v1116_v7 }
 0x289   : > { %v1119_v45 = vmul.f32 %v1118_v40, %v2474_v16  ;;  %v1152_v31 = vsel %vm309_vm3, %v1151_v39, %v1118_v40  ;;  %v1134_v23 = vmul.f32 %v1118_v40, %v2481_v20 }
 0x28b   : > { %v1121_v50 = vrot.slane %v1119_v45, 7  ;;  %v1136_v30 = vrot.slane %v1134_v23, 6 }
 0x28d   : > { %v1123_v14 = vsub.f32 %v2825_v48, %v1121_v50 }
 0x28f   : > { %v1128_v22 = vsub.f32 %v1123_v14, %v1126_v51 }
 0x291   : > { %v1129_v52 = vmul.f32 %v1128_v22, %v2474_v16  ;;  %v1153_v28 = vsel %vm311_vm4, %v1152_v31, %v1128_v22  ;;  %v1144_v27 = vmul.f32 %v1128_v22, %v2481_v20 }
 0x293   : > { %v1131_v19 = vrot.slane %v1129_v52, 7  ;;  %v1146_v44 = vrot.slane %v1144_v27, 6 }
 0x295   : > { %v1133_v37 = vsub.f32 %v2825_v48, %v1131_v19 }
 0x297   : > { %v1138_v60 = vsub.f32 %v1133_v37, %v1136_v30 }
 0x299   : > { %v1139_v34 = vmul.f32 %v1138_v60, %v2474_v16  ;;  %v1154_v35 = vsel %vm313_vm5, %v1153_v28, %v1138_v60  ;;  %v1179_v5 = vmul.f32 %v1138_v60, %v2481_v20 }
 0x29b   : > { %v1141_v61 = vrot.slane %v1139_v34, 7  ;;  %v1181_v54 = vrot.slane %v1179_v5, 6 }
 0x29d   : > { %v1143_v36 = vsub.f32 %v2825_v48, %v1141_v61  ;;  %v1378_v48 = vsel %vm224_vm1, %v1271_v42, %v1376_v47 }
 0x29e   : > { %v1382_v29 = vmul.f32 %v1378_v48, %v2472_v15 }
 0x29f   : > { %v1148_v49 = vsub.f32 %v1143_v36, %v1146_v44 }
 0x2a0   : > { %v2984_v13 = vadd.f32 %v1382_v29, %v1381_v9  ;;  %v3014_v9 = vld [vmem:[%s2454_s15 + $0x60] sm:$0xff] }
 0x2a1   : > { %v1155_v6 = vsel %vm315_vm6, %v1154_v35, %v1148_v49  ;;  %v1174_v56 = vmul.f32 %v1148_v49, %v2474_v16  ;;  %v1189_v55 = vmul.f32 %v1148_v49, %v2481_v20 }
 0x2a2   : > { %v2051_v12 = vclamps-f32 %v1155_v6, 1.0 }
 0x2a3   : > { %v1176_v53 = vrot.slane %v1174_v56, 7  ;;  %v1191_v24 = vrot.slane %v1189_v55, 6  ;;  %v1484_v55 = vmul.f32 %v3014_v9, %v2466_v10 }
 0x2a4   : > { %2052 = vst [vmem:[%s2460_s22 + $0x40] sm:$0xff] %v2051_v12  ;;  %v1478_v12 = vrot.slane %v3014_v9, 7 }
 0x2a5   : > { %v1178_v59 = vsub.f32 %v2878_v57, %v1176_v53 }
 0x2a6   : > { %v1480_v53 = vsel %vm216_vm0, %v1373_v1, %v1478_v12 }
 0x2a7   : > { %v1183_v18 = vsub.f32 %v1178_v59, %v1181_v54  ;;  %v1481_v54 = vrot.slane %v3014_v9, 6 }
 0x2a9   : > { %v1184_v42 = vmul.f32 %v1183_v18, %v2474_v16  ;;  %v1199_v62 = vmul.f32 %v1183_v18, %v2481_v20 }
 0x2ab   : > { %v1186_v21 = vrot.slane %v1184_v42, 7  ;;  %v1201_v32 = vrot.slane %v1199_v62, 6  ;;  %v1485_v42 = vmul.f32 %v1480_v53, %v2468_v11 }
 0x2ad   : > { %v1188_v25 = vsub.f32 %v2878_v57, %v1186_v21 }
 0x2af   : > { %v1193_v58 = vsub.f32 %v1188_v25, %v1191_v24  ;;  %v1486_v24 = vadd.f32 %v1485_v42, %v1484_v55 }
 0x2b1   : > { %v1194_v63 = vmul.f32 %v1193_v58, %v2474_v16  ;;  %v1254_v26 = vsel %vm216_vm0, %v1183_v18, %v1193_v58  ;;  %v1209_v39 = vmul.f32 %v1193_v58, %v2481_v20 }
 0x2b3   : > { %v1196_v4 = vrot.slane %v1194_v63, 7  ;;  %v1211_v40 = vrot.slane %v1209_v39, 6 }
 0x2b5   : > { %v1198_v33 = vsub.f32 %v2878_v57, %v1196_v4 }
 0x2b7   : > { %v1203_v38 = vsub.f32 %v1198_v33, %v1201_v32 }
 0x2b9   : > { %v1204_v3 = vmul.f32 %v1203_v38, %v2474_v16  ;;  %v1255_v7 = vsel %vm224_vm1, %v1254_v26, %v1203_v38  ;;  %v1219_v31 = vmul.f32 %v1203_v38, %v2481_v20 }
 0x2bb   : > { %v1206_v8 = vrot.slane %v1204_v3, 7  ;;  %v1221_v22 = vrot.slane %v1219_v31, 6 }
 0x2bd   : > { %v1208_v17 = vsub.f32 %v2878_v57, %v1206_v8 }
 0x2bf   : > { %v1213_v45 = vsub.f32 %v1208_v17, %v1211_v40 }
 0x2c1   : > { %v1214_v50 = vmul.f32 %v1213_v45, %v2474_v16  ;;  %v1256_v51 = vsel %vm307_vm2, %v1255_v7, %v1213_v45  ;;  %v1229_v28 = vmul.f32 %v1213_v45, %v2481_v20 }
 0x2c3   : > { %v1216_v14 = vrot.slane %v1214_v50, 7  ;;  %v1231_v60 = vrot.slane %v1229_v28, 6 }
 0x2c5   : > { %v1218_v23 = vsub.f32 %v2878_v57, %v1216_v14 }
 0x2c7   : > { %v1223_v52 = vsub.f32 %v1218_v23, %v1221_v22 }
 0x2c9   : > { %v1224_v19 = vmul.f32 %v1223_v52, %v2474_v16  ;;  %v1257_v30 = vsel %vm309_vm3, %v1256_v51, %v1223_v52  ;;  %v1239_v35 = vmul.f32 %v1223_v52, %v2481_v20 }
 0x2cb   : > { %v1226_v37 = vrot.slane %v1224_v19, 7  ;;  %v1241_v41 = vrot.slane %v1239_v35, 6 }
 0x2cd   : > { %v1228_v27 = vsub.f32 %v2878_v57, %v1226_v37 }
 0x2cf   : > { %v1233_v34 = vsub.f32 %v1228_v27, %v1231_v60 }
 0x2d1   : > { %v1234_v61 = vmul.f32 %v1233_v34, %v2474_v16  ;;  %v1258_v44 = vsel %vm311_vm4, %v1257_v30, %v1233_v34  ;;  %v1249_v43 = vmul.f32 %v1233_v34, %v2481_v20 }
 0x2d3   : > { %v1236_v36 = vrot.slane %v1234_v61, 7  ;;  %v1251_v56 = vrot.slane %v1249_v43, 6 }
 0x2d5   : > { %v1238_v49 = vsub.f32 %v2878_v57, %v1236_v36 }
 0x2d7   : > { %v1243_v5 = vsub.f32 %v1238_v49, %v1241_v41 }
 0x2d9   : > { %v1244_v46 = vmul.f32 %v1243_v5, %v2474_v16  ;;  %v1259_v48 = vsel %vm313_vm5, %v1258_v44, %v1243_v5  ;;  %v1284_v18 = vmul.f32 %v1243_v5, %v2481_v20 }
 0x2db   : > { %v1246_v6 = vrot.slane %v1244_v46, 7  ;;  %v1286_v63 = vrot.slane %v1284_v18, 6 }
 0x2dd   : > { %v1248_v29 = vsub.f32 %v2878_v57, %v1246_v6  ;;  %v1483_v57 = vsel %vm224_vm1, %v1376_v47, %v1481_v54 }
 0x2de   : > { %v1487_v58 = vmul.f32 %v1483_v57, %v2472_v15 }
 0x2df   : > { %v1253_v59 = vsub.f32 %v1248_v29, %v1251_v56 }
 0x2e0   : > { %v3037_v26 = vadd.f32 %v1487_v58, %v1486_v24  ;;  %v3067_v24 = vld [vmem:[%s2454_s15 + $0x68] sm:$0xff] }
 0x2e1   : > { %v1260_v21 = vsel %vm315_vm6, %v1259_v48, %v1253_v59  ;;  %v1279_v1 = vmul.f32 %v1253_v59, %v2474_v16  ;;  %v1294_v0 = vmul.f32 %v1253_v59, %v2481_v20 }
 0x2e2   : > { %v2054_v25 = vclamps-f32 %v1260_v21, 1.0 }
 0x2e3   : > { %v1281_v62 = vrot.slane %v1279_v1, 7  ;;  %v1296_v38 = vrot.slane %v1294_v0, 6  ;;  %v1589_v0 = vmul.f32 %v3067_v24, %v2466_v10 }
 0x2e4   : > { %2055 = vst [vmem:[%s2460_s22 + $0x48] sm:$0xff] %v2054_v25  ;;  %v1583_v25 = vrot.slane %v3067_v24, 7 }
 0x2e5   : > { %v1283_v4 = vsub.f32 %v2931_v2, %v1281_v62 }
 0x2e6   : > { %v1585_v62 = vsel %vm216_vm0, %v1478_v12, %v1583_v25 }
 0x2e7   : > { %v1288_v32 = vsub.f32 %v1283_v4, %v1286_v63  ;;  %v1586_v63 = vrot.slane %v3067_v24, 6 }
 0x2e9   : > { %v1289_v47 = vmul.f32 %v1288_v32, %v2474_v16  ;;  %v1304_v7 = vmul.f32 %v1288_v32, %v2481_v20 }
 0x2eb   : > { %v1291_v33 = vrot.slane %v1289_v47, 7  ;;  %v1306_v45 = vrot.slane %v1304_v7, 6  ;;  %v1590_v47 = vmul.f32 %v1585_v62, %v2468_v11 }
 0x2ed   : > { %v1293_v39 = vsub.f32 %v2931_v2, %v1291_v33 }
 0x2ef   : > { %v1298_v3 = vsub.f32 %v1293_v39, %v1296_v38  ;;  %v1591_v38 = vadd.f32 %v1590_v47, %v1589_v0 }
 0x2f1   : > { %v1299_v8 = vmul.f32 %v1298_v3, %v2474_v16  ;;  %v1359_v40 = vsel %vm216_vm0, %v1288_v32, %v1298_v3  ;;  %v1314_v51 = vmul.f32 %v1298_v3, %v2481_v20 }
 0x2f3   : > { %v1301_v17 = vrot.slane %v1299_v8, 7  ;;  %v1316_v52 = vrot.slane %v1314_v51, 6 }
 0x2f5   : > { %v1303_v31 = vsub.f32 %v2931_v2, %v1301_v17 }
 0x2f7   : > { %v1308_v50 = vsub.f32 %v1303_v31, %v1306_v45 }
 0x2f9   : > { %v1309_v14 = vmul.f32 %v1308_v50, %v2474_v16  ;;  %v1360_v22 = vsel %vm224_vm1, %v1359_v40, %v1308_v50  ;;  %v1324_v30 = vmul.f32 %v1308_v50, %v2481_v20 }
 0x2fb   : > { %v1311_v23 = vrot.slane %v1309_v14, 7  ;;  %v1326_v34 = vrot.slane %v1324_v30, 6 }
 0x2fd   : > { %v1313_v28 = vsub.f32 %v2931_v2, %v1311_v23 }
 0x2ff   : > { %v1318_v19 = vsub.f32 %v1313_v28, %v1316_v52 }
 0x301   : > { %v1319_v37 = vmul.f32 %v1318_v19, %v2474_v16  ;;  %v1361_v60 = vsel %vm307_vm2, %v1360_v22, %v1318_v19  ;;  %v1334_v44 = vmul.f32 %v1318_v19, %v2481_v20 }
 0x303   : > { %v1321_v27 = vrot.slane %v1319_v37, 7  ;;  %v1336_v5 = vrot.slane %v1334_v44, 6 }
 0x305   : > { %v1323_v35 = vsub.f32 %v2931_v2, %v1321_v27 }
 0x307   : > { %v1328_v61 = vsub.f32 %v1323_v35, %v1326_v34 }
 0x309   : > { %v1329_v36 = vmul.f32 %v1328_v61, %v2474_v16  ;;  %v1362_v41 = vsel %vm309_vm3, %v1361_v60, %v1328_v61  ;;  %v1344_v48 = vmul.f32 %v1328_v61, %v2481_v20 }
 0x30b   : > { %v1331_v49 = vrot.slane %v1329_v36, 7  ;;  %v1346_v53 = vrot.slane %v1344_v48, 6 }
 0x30d   : > { %v1333_v43 = vsub.f32 %v2931_v2, %v1331_v49 }
 0x30f   : > { %v1338_v46 = vsub.f32 %v1333_v43, %v1336_v5 }
 0x311   : > { %v1339_v6 = vmul.f32 %v1338_v46, %v2474_v16  ;;  %v1363_v56 = vsel %vm311_vm4, %v1362_v41, %v1338_v46  ;;  %v1354_v55 = vmul.f32 %v1338_v46, %v2481_v20 }
 0x313   : > { %v1341_v29 = vrot.slane %v1339_v6, 7  ;;  %v1356_v1 = vrot.slane %v1354_v55, 6 }
 0x315   : > { %v1343_v59 = vsub.f32 %v2931_v2, %v1341_v29 }
 0x317   : > { %v1348_v18 = vsub.f32 %v1343_v59, %v1346_v53 }
 0x319   : > { %v1349_v42 = vmul.f32 %v1348_v18, %v2474_v16  ;;  %v1364_v57 = vsel %vm313_vm5, %v1363_v56, %v1348_v18  ;;  %v1389_v32 = vmul.f32 %v1348_v18, %v2481_v20 }
 0x31b   : > { %v1351_v21 = vrot.slane %v1349_v42, 7  ;;  %v1391_v8 = vrot.slane %v1389_v32, 6 }
 0x31d   : > { %v1353_v58 = vsub.f32 %v2931_v2, %v1351_v21  ;;  %v1588_v2 = vsel %vm224_vm1, %v1481_v54, %v1586_v63 }
 0x31e   : > { %v1592_v3 = vmul.f32 %v1588_v2, %v2472_v15 }
 0x31f   : > { %v1358_v4 = vsub.f32 %v1353_v58, %v1356_v1 }
 0x320   : > { %v3090_v40 = vadd.f32 %v1592_v3, %v1591_v38  ;;  %v3120_v38 = vld [vmem:[%s2454_s15 + $0x70] sm:$0xff] }
 0x321   : > { %v1365_v33 = vsel %vm315_vm6, %v1364_v57, %v1358_v4  ;;  %v1384_v12 = vmul.f32 %v1358_v4, %v2474_v16  ;;  %v1399_v9 = vmul.f32 %v1358_v4, %v2481_v20 }
 0x322   : > { %v2057_v39 = vclamps-f32 %v1365_v33, 1.0 }
 0x323   : > { %v1386_v7 = vrot.slane %v1384_v12, 7  ;;  %v1401_v50 = vrot.slane %v1399_v9, 6  ;;  %v1694_v9 = vmul.f32 %v3120_v38, %v2466_v10 }
 0x324   : > { %2058 = vst [vmem:[%s2460_s22 + $0x50] sm:$0xff] %v2057_v39  ;;  %v1688_v39 = vrot.slane %v3120_v38, 7 }
 0x325   : > { %v1388_v17 = vsub.f32 %v2984_v13, %v1386_v7 }
 0x326   : > { %v1690_v7 = vsel %vm216_vm0, %v1583_v25, %v1688_v39 }
 0x327   : > { %v1393_v45 = vsub.f32 %v1388_v17, %v1391_v8  ;;  %v1691_v8 = vrot.slane %v3120_v38, 6 }
 0x329   : > { %v1394_v54 = vmul.f32 %v1393_v45, %v2474_v16  ;;  %v1409_v22 = vmul.f32 %v1393_v45, %v2481_v20 }
 0x32b   : > { %v1396_v31 = vrot.slane %v1394_v54, 7  ;;  %v1411_v19 = vrot.slane %v1409_v22, 6  ;;  %v1695_v54 = vmul.f32 %v1690_v7, %v2468_v11 }
 0x32d   : > { %v1398_v51 = vsub.f32 %v2984_v13, %v1396_v31 }
 0x32f   : > { %v1403_v14 = vsub.f32 %v1398_v51, %v1401_v50  ;;  %v1696_v50 = vadd.f32 %v1695_v54, %v1694_v9 }
 0x331   : > { %v1404_v23 = vmul.f32 %v1403_v14, %v2474_v16  ;;  %v1464_v52 = vsel %vm216_vm0, %v1393_v45, %v1403_v14  ;;  %v1419_v60 = vmul.f32 %v1403_v14, %v2481_v20 }
 0x333   : > { %v1406_v28 = vrot.slane %v1404_v23, 7  ;;  %v1421_v61 = vrot.slane %v1419_v60, 6 }
 0x335   : > { %v1408_v30 = vsub.f32 %v2984_v13, %v1406_v28 }
 0x337   : > { %v1413_v37 = vsub.f32 %v1408_v30, %v1411_v19 }
 0x339   : > { %v1414_v27 = vmul.f32 %v1413_v37, %v2474_v16  ;;  %v1465_v34 = vsel %vm224_vm1, %v1464_v52, %v1413_v37  ;;  %v1429_v41 = vmul.f32 %v1413_v37, %v2481_v20 }
 0x33b   : > { %v1416_v35 = vrot.slane %v1414_v27, 7  ;;  %v1431_v46 = vrot.slane %v1429_v41, 6 }
 0x33d   : > { %v1418_v44 = vsub.f32 %v2984_v13, %v1416_v35 }
 0x33f   : > { %v1423_v36 = vsub.f32 %v1418_v44, %v1421_v61 }
 0x341   : > { %v1424_v49 = vmul.f32 %v1423_v36, %v2474_v16  ;;  %v1466_v5 = vsel %vm307_vm2, %v1465_v34, %v1423_v36  ;;  %v1439_v56 = vmul.f32 %v1423_v36, %v2481_v20 }
 0x343   : > { %v1426_v43 = vrot.slane %v1424_v49, 7  ;;  %v1441_v18 = vrot.slane %v1439_v56, 6 }
 0x345   : > { %v1428_v48 = vsub.f32 %v2984_v13, %v1426_v43 }
 0x347   : > { %v1433_v6 = vsub.f32 %v1428_v48, %v1431_v46 }
 0x349   : > { %v1434_v29 = vmul.f32 %v1433_v6, %v2474_v16  ;;  %v1467_v53 = vsel %vm309_vm3, %v1466_v5, %v1433_v6  ;;  %v1449_v57 = vmul.f32 %v1433_v6, %v2481_v20 }
 0x34b   : > { %v1436_v59 = vrot.slane %v1434_v29, 7  ;;  %v1451_v62 = vrot.slane %v1449_v57, 6 }
 0x34d   : > { %v1438_v55 = vsub.f32 %v2984_v13, %v1436_v59 }
 0x34f   : > { %v1443_v42 = vsub.f32 %v1438_v55, %v1441_v18 }
 0x351   : > { %v1444_v21 = vmul.f32 %v1443_v42, %v2474_v16  ;;  %v1468_v1 = vsel %vm311_vm4, %v1467_v53, %v1443_v42  ;;  %v1459_v0 = vmul.f32 %v1443_v42, %v2481_v20 }
 0x353   : > { %v1446_v58 = vrot.slane %v1444_v21, 7  ;;  %v1461_v12 = vrot.slane %v1459_v0, 6 }
 0x355   : > { %v1448_v4 = vsub.f32 %v2984_v13, %v1446_v58 }
 0x357   : > { %v1453_v32 = vsub.f32 %v1448_v4, %v1451_v62 }
 0x359   : > { %v1454_v47 = vmul.f32 %v1453_v32, %v2474_v16  ;;  %v1469_v2 = vsel %vm313_vm5, %v1468_v1, %v1453_v32  ;;  %v1494_v45 = vmul.f32 %v1453_v32, %v2481_v20 }
 0x35b   : > { %v1456_v33 = vrot.slane %v1454_v47, 7  ;;  %v1496_v23 = vrot.slane %v1494_v45, 6 }
 0x35d   : > { %v1458_v3 = vsub.f32 %v2984_v13, %v1456_v33  ;;  %v1693_v13 = vsel %vm224_vm1, %v1586_v63, %v1691_v8 }
 0x35e   : > { %v1697_v14 = vmul.f32 %v1693_v13, %v2472_v15 }
 0x35f   : > { %v1463_v17 = vsub.f32 %v1458_v3, %v1461_v12 }
 0x360   : > { %v3143_v52 = vadd.f32 %v1697_v14, %v1696_v50  ;;  %v2071_v50 = vld [vmem:[%s2454_s15 + $0x78] sm:$0xff] }
 0x361   : > { %v1470_v31 = vsel %vm315_vm6, %v1469_v2, %v1463_v17  ;;  %v1489_v25 = vmul.f32 %v1463_v17, %v2474_v16  ;;  %v1504_v24 = vmul.f32 %v1463_v17, %v2481_v20  ;;  %1895 = vst [vmem:[#allocation2 - $0x7] sm:$0x80] %v2071_v50  ;;  %1896 = vst [vmem:[#allocation2 - $0x5] sm:$0x40] %v2071_v50 }
 0x362   : > { %v2060_v51 = vclamps-f32 %v1470_v31, 1.0 }
 0x363   : > { %v1491_v22 = vrot.slane %v1489_v25, 7  ;;  %v1506_v37 = vrot.slane %v1504_v24, 6  ;;  %v1799_v24 = vmul.f32 %v2071_v50, %v2466_v10 }
 0x364   : > { %2061 = vst [vmem:[%s2460_s22 + $0x58] sm:$0xff] %v2060_v51  ;;  %v1793_v51 = vrot.slane %v2071_v50, 7 }
 0x365   : > { %v1493_v28 = vsub.f32 %v3037_v26, %v1491_v22 }
 0x366   : > { %v1795_v22 = vsel %vm216_vm0, %v1688_v39, %v1793_v51 }
 0x367   : > { %v1498_v19 = vsub.f32 %v1493_v28, %v1496_v23  ;;  %v1796_v23 = vrot.slane %v2071_v50, 6 }
 0x369   : > { %v1499_v63 = vmul.f32 %v1498_v19, %v2474_v16  ;;  %v1514_v34 = vmul.f32 %v1498_v19, %v2481_v20 }
 0x36b   : > { %v1501_v30 = vrot.slane %v1499_v63, 7  ;;  %v1516_v36 = vrot.slane %v1514_v34, 6  ;;  %v1800_v63 = vmul.f32 %v1795_v22, %v2468_v11 }
 0x36d   : > { %v1503_v60 = vsub.f32 %v3037_v26, %v1501_v30  ;;  %v1798_v30 = vsel %vm224_vm1, %v1691_v8, %v1796_v23 }
 0x36e   : > { %v1802_v39 = vmul.f32 %v1798_v30, %v2472_v15 }
 0x36f   : > { %v1508_v27 = vsub.f32 %v1503_v60, %v1506_v37  ;;  %v1801_v60 = vadd.f32 %v1800_v63, %v1799_v24 }
 0x371   : > { %v1509_v35 = vmul.f32 %v1508_v27, %v2474_v16  ;;  %v1569_v61 = vsel %vm216_vm0, %v1498_v19, %v1508_v27  ;;  %v1524_v5 = vmul.f32 %v1508_v27, %v2481_v20 }
 0x373   : > { %v1511_v44 = vrot.slane %v1509_v35, 7  ;;  %v1526_v6 = vrot.slane %v1524_v5, 6 }
 0x375   : > { %v1513_v41 = vsub.f32 %v3037_v26, %v1511_v44 }
 0x377   : > { %v1518_v49 = vsub.f32 %v1513_v41, %v1516_v36 }
 0x379   : > { %v1519_v43 = vmul.f32 %v1518_v49, %v2474_v16  ;;  %v1570_v46 = vsel %vm224_vm1, %v1569_v61, %v1518_v49  ;;  %v1534_v53 = vmul.f32 %v1518_v49, %v2481_v20  ;;  %v3187_v61 = vadd.f32 %v1802_v39, %v1801_v60 }
 0x37b   : > { %v1521_v48 = vrot.slane %v1519_v43, 7  ;;  %v1536_v42 = vrot.slane %v1534_v53, 6 }
 0x37d   : > { %v1523_v56 = vsub.f32 %v3037_v26, %v1521_v48 }
 0x37f   : > { %v1528_v29 = vsub.f32 %v1523_v56, %v1526_v6 }
 0x381   : > { %v1529_v59 = vmul.f32 %v1528_v29, %v2474_v16  ;;  %v1571_v18 = vsel %vm307_vm2, %v1570_v46, %v1528_v29  ;;  %v1544_v1 = vmul.f32 %v1528_v29, %v2481_v20 }
 0x383   : > { %v1531_v55 = vrot.slane %v1529_v59, 7  ;;  %v1546_v32 = vrot.slane %v1544_v1, 6 }
 0x385   : > { %v1533_v57 = vsub.f32 %v3037_v26, %v1531_v55 }
 0x387   : > { %v1538_v21 = vsub.f32 %v1533_v57, %v1536_v42 }
 0x389   : > { %v1539_v58 = vmul.f32 %v1538_v21, %v2474_v16  ;;  %v1572_v62 = vsel %vm309_vm3, %v1571_v18, %v1538_v21  ;;  %v1554_v2 = vmul.f32 %v1538_v21, %v2481_v20 }
 0x38b   : > { %v1541_v4 = vrot.slane %v1539_v58, 7  ;;  %v1556_v7 = vrot.slane %v1554_v2, 6 }
 0x38d   : > { %v1543_v0 = vsub.f32 %v3037_v26, %v1541_v4 }
 0x38f   : > { %v1548_v47 = vsub.f32 %v1543_v0, %v1546_v32 }
 0x391   : > { %v1549_v33 = vmul.f32 %v1548_v47, %v2474_v16  ;;  %v1573_v12 = vsel %vm311_vm4, %v1572_v62, %v1548_v47  ;;  %v1564_v9 = vmul.f32 %v1548_v47, %v2481_v20 }
 0x393   : > { %v1551_v3 = vrot.slane %v1549_v33, 7  ;;  %v1566_v25 = vrot.slane %v1564_v9, 6 }
 0x395   : > { %v1553_v17 = vsub.f32 %v3037_v26, %v1551_v3 }
 0x397   : > { %v1558_v45 = vsub.f32 %v1553_v17, %v1556_v7 }
 0x399   : > { %v1559_v54 = vmul.f32 %v1558_v45, %v2474_v16  ;;  %v1574_v13 = vsel %vm313_vm5, %v1573_v12, %v1558_v45  ;;  %v1599_v19 = vmul.f32 %v1558_v45, %v2481_v20 }
 0x39b   : > { %v1561_v31 = vrot.slane %v1559_v54, 7  ;;  %v1601_v35 = vrot.slane %v1599_v19, 6 }
 0x39d   : > { %v1563_v14 = vsub.f32 %v3037_v26, %v1561_v31 }
 0x39f   : > { %v1568_v28 = vsub.f32 %v1563_v14, %v1566_v25 }
 0x3a1   : > { %v1575_v37 = vsel %vm315_vm6, %v1574_v13, %v1568_v28  ;;  %v1594_v26 = vmul.f32 %v1568_v28, %v2474_v16  ;;  %v1609_v38 = vmul.f32 %v1568_v28, %v2481_v20 }
 0x3a2   : > { %v2063_v27 = vclamps-f32 %v1575_v37, 1.0 }
 0x3a3   : > { %v1596_v34 = vrot.slane %v1594_v26, 7  ;;  %v1611_v36 = vrot.slane %v1609_v38, 6 }
 0x3a4   : > { %2064 = vst [vmem:[%s2460_s22 + $0x60] sm:$0xff] %v2063_v27 }
 0x3a5   : > { %v1598_v10 = vsub.f32 %v3090_v40, %v1596_v34 }
 0x3a7   : > { %v1603_v11 = vsub.f32 %v1598_v10, %v1601_v35 }
 0x3a9   : > { %v1604_v8 = vmul.f32 %v1603_v11, %v2474_v16  ;;  %v1619_v5 = vmul.f32 %v1603_v11, %v2481_v20 }
 0x3ab   : > { %v1606_v44 = vrot.slane %v1604_v8, 7  ;;  %v1621_v48 = vrot.slane %v1619_v5, 6 }
 0x3ad   : > { %v1608_v41 = vsub.f32 %v3090_v40, %v1606_v44 }
 0x3af   : > { %v1613_v49 = vsub.f32 %v1608_v41, %v1611_v36 }
 0x3b1   : > { %v1614_v15 = vmul.f32 %v1613_v49, %v2474_v16  ;;  %v1674_v43 = vsel %vm216_vm0, %v1603_v11, %v1613_v49  ;;  %v1629_v29 = vmul.f32 %v1613_v49, %v2481_v20 }
 0x3b3   : > { %v1616_v46 = vrot.slane %v1614_v15, 7  ;;  %v1631_v55 = vrot.slane %v1629_v29, 6 }
 0x3b5   : > { %v1618_v6 = vsub.f32 %v3090_v40, %v1616_v46 }
 0x3b7   : > { %v1623_v56 = vsub.f32 %v1618_v6, %v1621_v48 }
 0x3b9   : > { %v1624_v53 = vmul.f32 %v1623_v56, %v2474_v16  ;;  %v1675_v59 = vsel %vm224_vm1, %v1674_v43, %v1623_v56  ;;  %v1639_v21 = vmul.f32 %v1623_v56, %v2481_v20 }
 0x3bb   : > { %v1626_v18 = vrot.slane %v1624_v53, 7  ;;  %v1641_v4 = vrot.slane %v1639_v21, 6 }
 0x3bd   : > { %v1628_v42 = vsub.f32 %v3090_v40, %v1626_v18 }
 0x3bf   : > { %v1633_v57 = vsub.f32 %v1628_v42, %v1631_v55 }
 0x3c1   : > { %v1634_v1 = vmul.f32 %v1633_v57, %v2474_v16  ;;  %v1676_v58 = vsel %vm307_vm2, %v1675_v59, %v1633_v57  ;;  %v1649_v47 = vmul.f32 %v1633_v57, %v2481_v20 }
 0x3c3   : > { %v1636_v62 = vrot.slane %v1634_v1, 7  ;;  %v1651_v3 = vrot.slane %v1649_v47, 6 }
 0x3c5   : > { %v1638_v32 = vsub.f32 %v3090_v40, %v1636_v62 }
 0x3c7   : > { %v1643_v0 = vsub.f32 %v1638_v32, %v1641_v4 }
 0x3c9   : > { %v1644_v2 = vmul.f32 %v1643_v0, %v2474_v16  ;;  %v1677_v33 = vsel %vm309_vm3, %v1676_v58, %v1643_v0  ;;  %v1659_v45 = vmul.f32 %v1643_v0, %v2481_v20 }
 0x3cb   : > { %v1646_v12 = vrot.slane %v1644_v2, 7  ;;  %v1661_v31 = vrot.slane %v1659_v45, 6 }
 0x3cd   : > { %v1648_v7 = vsub.f32 %v3090_v40, %v1646_v12 }
 0x3cf   : > { %v1653_v17 = vsub.f32 %v1648_v7, %v1651_v3 }
 0x3d1   : > { %v1654_v9 = vmul.f32 %v1653_v17, %v2474_v16  ;;  %v1678_v54 = vsel %vm311_vm4, %v1677_v33, %v1653_v17  ;;  %v1669_v51 = vmul.f32 %v1653_v17, %v2481_v20 }
 0x3d3   : > { %v1656_v13 = vrot.slane %v1654_v9, 7  ;;  %v1671_v28 = vrot.slane %v1669_v51, 6 }
 0x3d5   : > { %v1658_v25 = vsub.f32 %v3090_v40, %v1656_v13 }
 0x3d7   : > { %v1663_v50 = vsub.f32 %v1658_v25, %v1661_v31 }
 0x3d9   : > { %v1664_v14 = vmul.f32 %v1663_v50, %v2474_v16  ;;  %v1679_v22 = vsel %vm313_vm5, %v1678_v54, %v1663_v50  ;;  %v1704_v63 = vmul.f32 %v1663_v50, %v2481_v20 }
 0x3db   : > { %v1666_v23 = vrot.slane %v1664_v14, 7  ;;  %v1706_v27 = vrot.slane %v1704_v63, 6 }
 0x3dd   : > { %v1668_v19 = vsub.f32 %v3090_v40, %v1666_v23 }
 0x3df   : > { %v1673_v24 = vsub.f32 %v1668_v19, %v1671_v28 }
 0x3e1   : > { %v1680_v30 = vsel %vm315_vm6, %v1679_v22, %v1673_v24  ;;  %v1699_v37 = vmul.f32 %v1673_v24, %v2474_v16  ;;  %v1714_v35 = vmul.f32 %v1673_v24, %v2481_v20 }
 0x3e2   : > { %v2066_v26 = vclamps-f32 %v1680_v30, 1.0 }
 0x3e3   : > { %v1701_v60 = vrot.slane %v1699_v37, 7  ;;  %v1716_v40 = vrot.slane %v1714_v35, 6 }
 0x3e4   : > { %2067 = vst [vmem:[%s2460_s22 + $0x68] sm:$0xff] %v2066_v26 }
 0x3e5   : > { %v1703_v39 = vsub.f32 %v3143_v52, %v1701_v60 }
 0x3e7   : > { %v1708_v34 = vsub.f32 %v1703_v39, %v1706_v27 }
 0x3e9   : > { %v1709_v10 = vmul.f32 %v1708_v34, %v2474_v16  ;;  %v1724_v44 = vmul.f32 %v1708_v34, %v2481_v20 }
 0x3eb   : > { %v1711_v11 = vrot.slane %v1709_v10, 7  ;;  %v1726_v5 = vrot.slane %v1724_v44, 6 }
 0x3ed   : > { %v1713_v38 = vsub.f32 %v3143_v52, %v1711_v11 }
 0x3ef   : > { %v1718_v8 = vsub.f32 %v1713_v38, %v1716_v40 }
 0x3f1   : > { %v1719_v36 = vmul.f32 %v1718_v8, %v2474_v16  ;;  %v1779_v41 = vsel %vm216_vm0, %v1708_v34, %v1718_v8  ;;  %v1734_v46 = vmul.f32 %v1718_v8, %v2481_v20 }
 0x3f3   : > { %v1721_v49 = vrot.slane %v1719_v36, 7  ;;  %v1736_v29 = vrot.slane %v1734_v46, 6 }
 0x3f5   : > { %v1723_v15 = vsub.f32 %v3143_v52, %v1721_v49 }
 0x3f7   : > { %v1728_v43 = vsub.f32 %v1723_v15, %v1726_v5 }
 0x3f9   : > { %v1729_v48 = vmul.f32 %v1728_v43, %v2474_v16  ;;  %v1780_v6 = vsel %vm224_vm1, %v1779_v41, %v1728_v43  ;;  %v1744_v18 = vmul.f32 %v1728_v43, %v2481_v20 }
 0x3fb   : > { %v1731_v56 = vrot.slane %v1729_v48, 7  ;;  %v1746_v21 = vrot.slane %v1744_v18, 6 }
 0x3fd   : > { %v1733_v53 = vsub.f32 %v3143_v52, %v1731_v56 }
 0x3ff   : > { %v1738_v59 = vsub.f32 %v1733_v53, %v1736_v29 }
 0x401   : > { %v1739_v55 = vmul.f32 %v1738_v59, %v2474_v16  ;;  %v1781_v42 = vsel %vm307_vm2, %v1780_v6, %v1738_v59  ;;  %v1754_v62 = vmul.f32 %v1738_v59, %v2481_v20 }
 0x403   : > { %v1741_v57 = vrot.slane %v1739_v55, 7  ;;  %v1756_v47 = vrot.slane %v1754_v62, 6 }
 0x405   : > { %v1743_v1 = vsub.f32 %v3143_v52, %v1741_v57 }
 0x407   : > { %v1748_v58 = vsub.f32 %v1743_v1, %v1746_v21 }
 0x409   : > { %v1749_v4 = vmul.f32 %v1748_v58, %v2474_v16  ;;  %v1782_v32 = vsel %vm309_vm3, %v1781_v42, %v1748_v58  ;;  %v1764_v12 = vmul.f32 %v1748_v58, %v2481_v20 }
 0x40b   : > { %v1751_v0 = vrot.slane %v1749_v4, 7  ;;  %v1766_v45 = vrot.slane %v1764_v12, 6 }
 0x40d   : > { %v1753_v2 = vsub.f32 %v3143_v52, %v1751_v0 }
 0x40f   : > { %v1758_v33 = vsub.f32 %v1753_v2, %v1756_v47 }
 0x411   : > { %v1759_v3 = vmul.f32 %v1758_v33, %v2474_v16  ;;  %v1783_v7 = vsel %vm311_vm4, %v1782_v32, %v1758_v33  ;;  %v1774_v13 = vmul.f32 %v1758_v33, %v2481_v20 }
 0x413   : > { %v1761_v17 = vrot.slane %v1759_v3, 7  ;;  %v1776_v51 = vrot.slane %v1774_v13, 6 }
 0x415   : > { %v1763_v9 = vsub.f32 %v3143_v52, %v1761_v17 }
 0x417   : > { %v1768_v54 = vsub.f32 %v1763_v9, %v1766_v45 }
 0x419   : > { %v1769_v31 = vmul.f32 %v1768_v54, %v2474_v16  ;;  %v1784_v25 = vsel %vm313_vm5, %v1783_v7, %v1768_v54  ;;  %v1809_v23 = vmul.f32 %v1768_v54, %v2481_v20 }
 0x41b   : > { %v1771_v50 = vrot.slane %v1769_v31, 7  ;;  %v1811_v30 = vrot.slane %v1809_v23, 6 }
 0x41d   : > { %v1773_v14 = vsub.f32 %v3143_v52, %v1771_v50 }
 0x41f   : > { %v1778_v22 = vsub.f32 %v1773_v14, %v1776_v51 }
 0x421   : > { %v1785_v28 = vsel %vm315_vm6, %v1784_v25, %v1778_v22  ;;  %v1804_v19 = vmul.f32 %v1778_v22, %v2474_v16  ;;  %v1819_v60 = vmul.f32 %v1778_v22, %v2481_v20 }
 0x422   : > { %v2069_v24 = vclamps-f32 %v1785_v28, 1.0 }
 0x423   : > { %v1806_v63 = vrot.slane %v1804_v19, 7  ;;  %v1821_v52 = vrot.slane %v1819_v60, 6 }
 0x424   : > { %2070 = vst [vmem:[%s2460_s22 + $0x70] sm:$0xff] %v2069_v24 }
 0x425   : > { %v1808_v37 = vsub.f32 %v3187_v61, %v1806_v63 }
 0x427   : > { %v1813_v26 = vsub.f32 %v1808_v37, %v1811_v30 }
 0x429   : > { %v1814_v27 = vmul.f32 %v1813_v26, %v2474_v16  ;;  %v1829_v10 = vmul.f32 %v1813_v26, %v2481_v20 }
 0x42b   : > { %v1816_v39 = vrot.slane %v1814_v27, 7  ;;  %v1831_v8 = vrot.slane %v1829_v10, 6 }
 0x42d   : > { %v1818_v34 = vsub.f32 %v3187_v61, %v1816_v39 }
 0x42f   : > { %v1823_v35 = vsub.f32 %v1818_v34, %v1821_v52 }
 0x431   : > { %v1824_v11 = vmul.f32 %v1823_v35, %v2474_v16  ;;  %v1884_v40 = vsel %vm216_vm0, %v1813_v26, %v1823_v35  ;;  %v1839_v41 = vmul.f32 %v1823_v35, %v2481_v20 }
 0x433   : > { %v1826_v38 = vrot.slane %v1824_v11, 7  ;;  %v1841_v43 = vrot.slane %v1839_v41, 6 }
 0x435   : > { %v1828_v44 = vsub.f32 %v3187_v61, %v1826_v38 }
 0x437   : > { %v1833_v36 = vsub.f32 %v1828_v44, %v1831_v8 }
 0x439   : > { %v1834_v49 = vmul.f32 %v1833_v36, %v2474_v16  ;;  %v1885_v5 = vsel %vm224_vm1, %v1884_v40, %v1833_v36  ;;  %v1849_v6 = vmul.f32 %v1833_v36, %v2481_v20 }
 0x43b   : > { %v1836_v15 = vrot.slane %v1834_v49, 7  ;;  %v1851_v59 = vrot.slane %v1849_v6, 6 }
 0x43d   : > { %v1838_v46 = vsub.f32 %v3187_v61, %v1836_v15 }
 0x43f   : > { %v1843_v48 = vsub.f32 %v1838_v46, %v1841_v43 }
 0x441   : > { %v1844_v56 = vmul.f32 %v1843_v48, %v2474_v16  ;;  %v1886_v29 = vsel %vm307_vm2, %v1885_v5, %v1843_v48  ;;  %v1859_v42 = vmul.f32 %v1843_v48, %v2481_v20 }
 0x443   : > { %v1846_v53 = vrot.slane %v1844_v56, 7  ;;  %v1861_v58 = vrot.slane %v1859_v42, 6 }
 0x445   : > { %v1848_v18 = vsub.f32 %v3187_v61, %v1846_v53 }
 0x447   : > { %v1853_v55 = vsub.f32 %v1848_v18, %v1851_v59 }
 0x449   : > { %v1854_v57 = vmul.f32 %v1853_v55, %v2474_v16  ;;  %v1887_v21 = vsel %vm309_vm3, %v1886_v29, %v1853_v55  ;;  %v1869_v32 = vmul.f32 %v1853_v55, %v2481_v20 }
 0x44b   : > { %v1856_v1 = vrot.slane %v1854_v57, 7  ;;  %v1871_v33 = vrot.slane %v1869_v32, 6 }
 0x44d   : > { %v1858_v62 = vsub.f32 %v3187_v61, %v1856_v1 }
 0x44f   : > { %v1863_v4 = vsub.f32 %v1858_v62, %v1861_v58 }
 0x451   : > { %v1864_v0 = vmul.f32 %v1863_v4, %v2474_v16  ;;  %v1888_v47 = vsel %vm311_vm4, %v1887_v21, %v1863_v4  ;;  %v1879_v7 = vmul.f32 %v1863_v4, %v2481_v20 }
 0x453   : > { %v1866_v2 = vrot.slane %v1864_v0, 7  ;;  %v1881_v54 = vrot.slane %v1879_v7, 6 }
 0x455   : > { %v1868_v12 = vsub.f32 %v3187_v61, %v1866_v2 }
 0x457   : > { %v1873_v3 = vsub.f32 %v1868_v12, %v1871_v33 }
 0x459   : > { %v1874_v17 = vmul.f32 %v1873_v3, %v2474_v16  ;;  %v1889_v45 = vsel %vm313_vm5, %v1888_v47, %v1873_v3  ;;  %1898 = vst [vmem:[#allocation2 - $0x3] sm:$0x40] %v1873_v3 }
 0x45b   : > { %v1876_v9 = vrot.slane %v1874_v17, 7 }
 0x45d   : > { %v1878_v13 = vsub.f32 %v3187_v61, %v1876_v9 }
 0x45f   : > { %v1883_v31 = vsub.f32 %v1878_v13, %v1881_v54 }
 0x461   : > { %v1890_v25 = vsel %vm315_vm6, %v1889_v45, %v1883_v31  ;;  %1897 = vst [vmem:[#allocation2 - $0x5] sm:$0x80] %v1883_v31 }
 0x462   : > { %v2072_v16 = vclamps-f32 %v1890_v25, 1.0 }
 0x464   : > { %2073 = vst [vmem:[%s2460_s22 + $0x78] sm:$0xff] %v2072_v16 }
 0x465   : > { %2215 = shalt.err (!%p2212_p4)
}
 0x466   : > { %s2216_s26 = scalar_lea.hbm %s3287_s27, 2048  ;;  %s2220_s18 = scalar_lea.hbm %s3340_s2, 6144 }
 0x467   : > { %p2217_p10 = scmp.ne.s32.totalorder %s3287_s27, %s2216_s26  ;;  %p2221_p9 = scmp.lt.u32.totalorder %s3287_s27, %s3340_s2 }
 0x468   : > { %p2222_p3 = scmp.lt.u32.totalorder %s2220_s18, %s2216_s26  ;;  %p2224_p8 = scmp.lt.u32.totalorder %s2216_s26, %s3287_s27 }
 0x469   : > { %p2218_p11 = pnand %p2217_p10, %p3353_p12 }
 0x46a   : > { %p2223_p7 = por %p2222_p3, %p2221_p9 }
 0x46b   : > { %p2219_p5 = pneg %p2218_p11 }
 0x46c   : > { %p2225_p2 = por %p2224_p8, %p2223_p7 }
 0x46e   : > { %p2226_p6 = pnand %p2225_p2, %p2219_p5 }
 0x470   : > { %2229 = shalt.err (!%p2226_p6)
}
 0x471   : > { %s2296_s3 = smov 128   ;;  %s2297_s5 = smov 8  }
 0x472   : > { %2087 = dma.vmem_to_hbm [thread:$0]  (%p3353_p12), %s3289_s16, 2048, %s3287_s27, %s1900_s28, %s2296_s3, %s2296_s3, %s2297_s5  }
 0x473 PF: > { %p2104_p13 = scmp.ge.s32.totalorder %s2288_s14, 2  ;;  %s1929_s19 = sand.u32 1, %s2268_s9  }
 0x474   : > { %p3354_p1 = scmp.ne.s32.totalorder %s3348_s21, 0  ;;  %s1930_s17 = scalar_lea.sflag [#allocation5], %s1929_s19 }
 0x476   : > { %p2098_p0 = pnand %p2104_p13, %p3354_p1 }
 0x478   : > { %2263 = dma.done.wait (!%p2098_p0), %s1930_s17, 2048  }
 0x479   : > { %2265 = vsyncadd (!%p2098_p0), %s1930_s17, 4294965248  ;;  %s19_s14 = sadd.s32 1, %s2288_s14   ;;  %s3355_s9 = smov %s2272_s10 }
 0x47a   : > { %p16_p4 = scmp.ge.s32.totalorder %s19_s14, 5   ;;  %s3356_s10 = smov %s2276_s11 }
 0x47b   : > { %s3357_s11 = smov %s2413_s4  ;;  %s3358_s12 = smov %s2284_s13 }
 0x47c   : > { %s3359_s13 = smov %s3361_s25  ;;  %18 = sbr.rel (!%p16_p4) target bundleno = 7 (0x7), region = 112 }
 0x483   :  { %1935 = vsyncpa [#allocation4], 1 }
 0x484   :  { %1937 = vsyncpa [#allocation4 + $0x1], 1 }
 0x485   :  { %1938 = vsyncpa [#allocation5], 1 }
 0x486   :  { %1940 = vsyncpa [#allocation5 + $0x1], 1 }
 0x487   :  { %1941 = vsyncpa [#allocation6], 1 }
 0x488   :  { %1943 = vsyncpa [#allocation6 + $0x1], 1 }

</bundles_post_ra>
